<compile_context>
chip_gen: v7x
topology: tpu7x:2x2x1
jax: 0.10.0
libtpu: 0.0.40
codegen_flags: <defaults>
</compile_context>

<pallas_src>
import jax
import jax.numpy as jnp
from jax.experimental import pallas as pl
from jax.experimental.pallas import tpu as pltpu

# Use full f32 matmul precision everywhere (kernel dots and JAX reference) so
# the numerical check is apples-to-apples.
jax.config.update("jax_default_matmul_precision", "float32")


# ----------------------------------------------------------------------------- glue
def band_matrix(k5, C):
    # M[ci, co] = k5[ci - co + 2] inside the 5-wide band, else 0, so that the
    # zero-padded 5-tap conv along C becomes a (C, C) channel mix.
    ci = jnp.arange(C)[:, None]
    co = jnp.arange(C)[None, :]
    t = ci - co + 2
    vals = jnp.take(k5, jnp.clip(t, 0, 4))
    return jnp.where((t >= 0) & (t < 5), vals, 0.0).astype(jnp.float32)


def pack_params(params, C, H, W):
    """Fold each PydSpaSpeConv into one regrouped 3x3 conv and pack everything."""
    HW = H * W

    def to9(w):  # (3,3,Ci,Co) HWIO -> (Co, 9*Ci), column index = (kh*3+kw)*C + ci
        return jnp.transpose(w, (3, 0, 1, 2)).reshape(C, 9 * C)

    def fold_stage(s):
        w_spe_t = s['w_spe'].T                       # (co, ci)
        w_sse_t = s['w_sse'].T                       # (co, ci)
        w9 = to9(s['w_spa']) + jnp.dot(w_sse_t, to9(s['w_ssa']))
        w9 = w9.at[:, 4 * C:5 * C].add(w_spe_t)      # 1x1 spe folded into center tap
        b = s['b_spa'] + s['b_spe'] + jnp.dot(w_sse_t, s['b_ssa']) + s['b_sse']
        return jnp.concatenate([w9, b[:, None]], axis=1)          # (C, 9C+1)

    mh = band_matrix(params['kh'], C).T              # (co, ci)
    mw = band_matrix(params['kw'], C).T
    gate_slot = jnp.zeros((C, 9 * C + 1), jnp.float32)
    gate_slot = gate_slot.at[:, :C].set(mh).at[:, C:2 * C].set(mw)

    wpack = jnp.stack([fold_stage(params['stage1']),
                       fold_stage(params['stage2']),
                       gate_slot], axis=0)           # (3, C, 9C+1)

    # Edge masks for the 9 taps (center is all-ones), pre-broadcast over C so
    # applying a mask is a single vmul in the kernel.
    hh = jnp.arange(HW) // W
    ww = jnp.arange(HW) % W
    rows = []
    for kh in range(3):
        for kw in range(3):
            dh, dw = kh - 1, kw - 1
            ok = ((hh + dh >= 0) & (hh + dh < H) & (ww + dw >= 0) & (ww + dw < W))
            rows.append(jnp.broadcast_to(ok.astype(jnp.float32)[None, :], (C, HW)))
    masks = jnp.stack(rows, axis=0)                  # (9, C, HW)

    # Pooling / expansion matrices so the attention tail stays in (C, HW).
    p = jnp.arange(HW)
    Ph = (p[:, None] % W == jnp.arange(W)[None, :]).astype(jnp.float32) / H   # (HW, W)
    Pw = (p[:, None] // W == jnp.arange(H)[None, :]).astype(jnp.float32) / W  # (HW, H)
    poolm = jnp.concatenate([Ph, Pw], axis=1)        # (HW, W+H)
    Eh = (jnp.arange(W)[:, None] == (p[None, :] % W)).astype(jnp.float32)     # (W, HW)
    Ew = (jnp.arange(H)[:, None] == (p[None, :] // W)).astype(jnp.float32)    # (H, HW)
    expand = jnp.concatenate([Eh, Ew], axis=0)       # (W+H, HW)

    return wpack, masks, poolm, expand


# ----------------------------------------------------------------------------- pallas wrapper
def spa_spe_block(x_nchw, params):
    """x_nchw: (B, C, H, W) float32 (PyTorch layout).  params: dict from init_params."""
    B, C, H, W = x_nchw.shape
    HW = H * W
    x_flat = x_nchw.reshape(B, C, HW)                # lane-dense, zero-cost view of NCHW

    wpack, masks, poolm, expand = pack_params(params, C, H, W)
    prelu = params['prelu'].reshape(1).astype(jnp.float32)        # 1-D SMEM scalar

    # ------------------------------------------------------------------ kernel
    def kernel(x_ref, wpack_ref, masks_ref, poolm_ref, expand_ref, prelu_ref, out_ref):
        x = x_ref[0]                                 # (C, HW) residual / input

        def reg_conv3x3(a, slot):
            # Regrouped PydSpaSpeConv stage: 9 lane-rolled taps (XLU) * static
            # precomputed edge masks (1 vmul each), channel-mixed on the MXU.
            ws = wpack_ref[slot]                     # (C, 9C+1)
            acc = None
            for kh in range(3):
                for kw in range(3):
                    dh, dw = kh - 1, kw - 1
                    t = kh * 3 + kw
                    v = a
                    sft = dh * W + dw
                    if sft != 0:
                        v = pltpu.roll(v, shift=(-sft) % HW, axis=1)
                        v = v * masks_ref[t]
                    term = jnp.dot(ws[:, t * C:(t + 1) * C], v,
                                   preferred_element_type=jnp.float32)
                    acc = term if acc is None else acc + term
            return acc + ws[:, 9 * C:9 * C + 1]      # bias column -> (C, HW)

        # stage1 -> PReLU -> stage2
        h = reg_conv3x3(x, 0)
        slope = prelu_ref[0]                         # shared PReLU slope (SMEM)
        h = jnp.where(h > 0, h, slope * h)
        h = reg_conv3x3(h, 1)

        # AttentionCorECAModule, entirely in the flat (C, HW) layout:
        # mean pools as matmuls, 5-tap ECA convs as banded channel mixes,
        # gates expanded back to HW lanes via one-hot matmuls.
        pools = jnp.dot(h, poolm_ref[...], preferred_element_type=jnp.float32)  # (C, W+H)
        gw = wpack_ref[2]                             # gate band matrices slot
        y_h = jax.nn.sigmoid(jnp.dot(gw[:, :C], pools[:, :W],
                                     preferred_element_type=jnp.float32))       # (C, W)
        y_w = jax.nn.sigmoid(jnp.dot(gw[:, C:2 * C], pools[:, W:W + H],
                                     preferred_element_type=jnp.float32))       # (C, H)
        ex = expand_ref[...]
        gate = (jnp.dot(y_h, ex[:W, :], preferred_element_type=jnp.float32) *
                jnp.dot(y_w, ex[W:, :], preferred_element_type=jnp.float32))    # (C, HW)
        out_ref[0] = (h * gate + x).astype(out_ref.dtype)

    # ------------------------------------------------------------------ specs
    in_specs = [
        pl.BlockSpec((1, C, HW), lambda b: (b, 0, 0)),           # x: one sample per step
        pl.BlockSpec(wpack.shape, lambda b: (0, 0, 0)),          # packed weights
        pl.BlockSpec(masks.shape, lambda b: (0, 0, 0)),          # precomputed edge masks
        pl.BlockSpec(poolm.shape, lambda b: (0, 0)),             # pooling matrices
        pl.BlockSpec(expand.shape, lambda b: (0, 0)),            # gate expansion matrices
        pl.BlockSpec(memory_space=pltpu.MemorySpace.SMEM),       # PReLU slope (1,)
    ]

    out = pl.pallas_call(
        kernel,
        out_shape=jax.ShapeDtypeStruct((B, C, HW), jnp.float32),
        grid=(B,),
        in_specs=in_specs,
        out_specs=pl.BlockSpec((1, C, HW), lambda b: (b, 0, 0)),
        compiler_params=pltpu.CompilerParams(dimension_semantics=("parallel",)),
    )(x_flat, wpack, masks, poolm, expand, prelu)
    return out.reshape(B, C, H, W)


# ----------------------------------------------------------------------------- params
def init_params(C, key):
    ks = list(jax.random.split(key, 24))

    def rnd(shape, scale=0.1):
        return (scale * jax.random.normal(ks.pop(), shape)).astype(jnp.float32)

    def stage():
        return dict(
            w_spe=rnd((C, C)), b_spe=rnd((C,)),          # conv1x1 (ci, co)
            w_spa=rnd((3, 3, C, C)), b_spa=rnd((C,)),    # conv3x3 HWIO
            w_ssa=rnd((3, 3, C, C)), b_ssa=rnd((C,)),    # spa_spe_conv.spa
            w_sse=rnd((C, C)), b_sse=rnd((C,)),          # spa_spe_conv.spe
        )

    return dict(stage1=stage(),
                prelu=jnp.full((1,), 0.25, jnp.float32),     # nn.PReLU() shared slope
                stage2=stage(),
                kh=rnd((5,), 0.5),                           # gate_h 5-tap kernel
                kw=rnd((5,), 0.5))                           # gate_w 5-tap kernel


# ----------------------------------------------------------------------------- pure-JAX reference
def reference_forward(x, p):
    """x: (B, H, W, C) NHWC.  Computes the un-regrouped forward (spec semantics)."""
    def c11(a, w, b):
        return jnp.einsum('bhwc,co->bhwo', a, w) + b.reshape(1, 1, 1, -1)

    def c33(a, w, b):
        y = jax.lax.conv_general_dilated(a, w, (1, 1), 'SAME',
                                         dimension_numbers=('NHWC', 'HWIO', 'NHWC'))
        return y + b.reshape(1, 1, 1, -1)

    def stage(a, s):
        return (c11(a, s['w_spe'], s['b_spe'])
                + c33(a, s['w_spa'], s['b_spa'])
                + c11(c33(a, s['w_ssa'], s['b_ssa']), s['w_sse'], s['b_sse']))

    h = stage(x, p['stage1'])
    slope = p['prelu'].reshape(())
    h = jnp.where(h > 0, h, slope * h)
    h = stage(h, p['stage2'])

    C = x.shape[-1]
    pool_h = h.mean(axis=1)                                # (B, W, C)
    pool_w = h.mean(axis=2)                                # (B, H, C)

    def gate(pool, k5):
        pp = jnp.pad(pool, ((0, 0), (0, 0), (2, 2)))
        return sum(k5[t] * pp[:, :, t:t + C] for t in range(5))

    y_h = jax.nn.sigmoid(gate(pool_h, p['kh']))
    y_w = jax.nn.sigmoid(gate(pool_w, p['kw']))
    return h * y_h[:, None, :, :] * y_w[:, :, None, :] + x


# ----------------------------------------------------------------------------- main
if __name__ == "__main__":
    B, C, H, W = 2, 4, 16, 16                              # residual requires C_in == C_out
    key = jax.random.PRNGKey(0)
    kx, kp = jax.random.split(key)

    x_nchw = jax.random.normal(kx, (B, C, H, W), jnp.float32)   # PyTorch-style NCHW input
    params = init_params(C, kp)

    out = spa_spe_block(x_nchw, params)
    out = jax.block_until_ready(out)
    assert out.shape == (B, C, H, W)

    ref = jnp.transpose(
        reference_forward(jnp.transpose(x_nchw, (0, 2, 3, 1)), params),
        (0, 3, 1, 2))
    err = float(jnp.max(jnp.abs(out - ref)))
    if not jnp.allclose(out, ref, atol=1e-3, rtol=1e-3):
        raise AssertionError(f"Pallas kernel mismatch vs reference, max abs err = {err}")

    print("KERNEL_OK")
</pallas_src>

<mosaic_0001>
module attributes {stable_mosaic.version = 11 : i64} {
  func.func @kernel(%arg0: i32, %arg1: memref<1x4x256xf32, #tpu.memory_space<vmem>>, %arg2: memref<3x4x37xf32, #tpu.memory_space<vmem>>, %arg3: memref<9x4x256xf32, #tpu.memory_space<vmem>>, %arg4: memref<256x32xf32, #tpu.memory_space<vmem>>, %arg5: memref<32x256xf32, #tpu.memory_space<vmem>>, %arg6: memref<1xf32, #tpu.memory_space<smem>>, %arg7: memref<1x4x256xf32, #tpu.memory_space<vmem>>) attributes {dimension_semantics = [#tpu.dimension_semantics<parallel>], iteration_bounds = array<i64: 2>, scalar_prefetch = 0 : i64, scratch_operands = 0 : i64, tpu.core_type = #tpu.core_type<tc>, window_params = [{transform_indices = @transform_0, window_bounds = array<i64: 1, 4, 256>}, {pipeline_mode = #tpu.pipeline_mode<synchronous>, transform_indices = @transform_1, window_bounds = array<i64: 3, 4, 37>}, {pipeline_mode = #tpu.pipeline_mode<synchronous>, transform_indices = @transform_2, window_bounds = array<i64: 9, 4, 256>}, {pipeline_mode = #tpu.pipeline_mode<synchronous>, transform_indices = @transform_3, window_bounds = array<i64: 256, 32>}, {pipeline_mode = #tpu.pipeline_mode<synchronous>, transform_indices = @transform_4, window_bounds = array<i64: 32, 256>}, {transform_indices = @transform_5, window_bounds = array<i64: 1>}, {transform_indices = @transform_6, window_bounds = array<i64: 1, 4, 256>}]} {
    %c0 = arith.constant 0 : index
    %c0_0 = arith.constant 0 : index
    %c0_1 = arith.constant 0 : index
    %0 = vector.load %arg1[%c0, %c0_0, %c0_1] : memref<1x4x256xf32, #tpu.memory_space<vmem>>, vector<1x4x256xf32>
    %1 = vector.shape_cast %0 : vector<1x4x256xf32> to vector<4x256xf32>
    %c0_2 = arith.constant 0 : index
    %c0_3 = arith.constant 0 : index
    %c0_4 = arith.constant 0 : index
    %2 = vector.load %arg2[%c0_2, %c0_3, %c0_4] : memref<3x4x37xf32, #tpu.memory_space<vmem>>, vector<1x4x37xf32>
    %3 = vector.shape_cast %2 : vector<1x4x37xf32> to vector<4x37xf32>
    %c17_i32 = arith.constant 17 : i32
    %4 = tpu.dynamic_rotate %1 by %c17_i32 dim 1 : vector<4x256xf32>, i32 -> vector<4x256xf32>
    %c0_5 = arith.constant 0 : index
    %c0_6 = arith.constant 0 : index
    %c0_7 = arith.constant 0 : index
    %5 = vector.load %arg3[%c0_5, %c0_6, %c0_7] : memref<9x4x256xf32, #tpu.memory_space<vmem>>, vector<1x4x256xf32>
    %6 = vector.shape_cast %5 : vector<1x4x256xf32> to vector<4x256xf32>
    %7 = arith.mulf %4, %6 : vector<4x256xf32>
    %8 = vector.extract_strided_slice %3 {offsets = [0, 0], sizes = [4, 4], strides = [1, 1]} : vector<4x37xf32> to vector<4x4xf32>
    %cst = arith.constant dense<0.000000e+00> : vector<4x256xf32>
    %9 = tpu.matmul %8, %7, %cst {dimension_numbers = #tpu.dot_dimension_numbers<[1], [0], [0], [1], [0, 0, 1, 1], [], []>, precision = #tpu.contract_precision<fp32>} : vector<4x4xf32>, vector<4x256xf32>, vector<4x256xf32> -> vector<4x256xf32>
    %c16_i32 = arith.constant 16 : i32
    %10 = tpu.dynamic_rotate %1 by %c16_i32 dim 1 : vector<4x256xf32>, i32 -> vector<4x256xf32>
    %c1 = arith.constant 1 : index
    %c0_8 = arith.constant 0 : index
    %c0_9 = arith.constant 0 : index
    %11 = vector.load %arg3[%c1, %c0_8, %c0_9] : memref<9x4x256xf32, #tpu.memory_space<vmem>>, vector<1x4x256xf32>
    %12 = vector.shape_cast %11 : vector<1x4x256xf32> to vector<4x256xf32>
    %13 = arith.mulf %10, %12 : vector<4x256xf32>
    %14 = vector.extract_strided_slice %3 {offsets = [0, 4], sizes = [4, 4], strides = [1, 1]} : vector<4x37xf32> to vector<4x4xf32>
    %cst_10 = arith.constant dense<0.000000e+00> : vector<4x256xf32>
    %15 = tpu.matmul %14, %13, %cst_10 {dimension_numbers = #tpu.dot_dimension_numbers<[1], [0], [0], [1], [0, 0, 1, 1], [], []>, precision = #tpu.contract_precision<fp32>} : vector<4x4xf32>, vector<4x256xf32>, vector<4x256xf32> -> vector<4x256xf32>
    %16 = arith.addf %9, %15 : vector<4x256xf32>
    %c15_i32 = arith.constant 15 : i32
    %17 = tpu.dynamic_rotate %1 by %c15_i32 dim 1 : vector<4x256xf32>, i32 -> vector<4x256xf32>
    %c2 = arith.constant 2 : index
    %c0_11 = arith.constant 0 : index
    %c0_12 = arith.constant 0 : index
    %18 = vector.load %arg3[%c2, %c0_11, %c0_12] : memref<9x4x256xf32, #tpu.memory_space<vmem>>, vector<1x4x256xf32>
    %19 = vector.shape_cast %18 : vector<1x4x256xf32> to vector<4x256xf32>
    %20 = arith.mulf %17, %19 : vector<4x256xf32>
    %21 = vector.extract_strided_slice %3 {offsets = [0, 8], sizes = [4, 4], strides = [1, 1]} : vector<4x37xf32> to vector<4x4xf32>
    %cst_13 = arith.constant dense<0.000000e+00> : vector<4x256xf32>
    %22 = tpu.matmul %21, %20, %cst_13 {dimension_numbers = #tpu.dot_dimension_numbers<[1], [0], [0], [1], [0, 0, 1, 1], [], []>, precision = #tpu.contract_precision<fp32>} : vector<4x4xf32>, vector<4x256xf32>, vector<4x256xf32> -> vector<4x256xf32>
    %23 = arith.addf %16, %22 : vector<4x256xf32>
    %c1_i32 = arith.constant 1 : i32
    %24 = tpu.dynamic_rotate %1 by %c1_i32 dim 1 : vector<4x256xf32>, i32 -> vector<4x256xf32>
    %c3 = arith.constant 3 : index
    %c0_14 = arith.constant 0 : index
    %c0_15 = arith.constant 0 : index
    %25 = vector.load %arg3[%c3, %c0_14, %c0_15] : memref<9x4x256xf32, #tpu.memory_space<vmem>>, vector<1x4x256xf32>
    %26 = vector.shape_cast %25 : vector<1x4x256xf32> to vector<4x256xf32>
    %27 = arith.mulf %24, %26 : vector<4x256xf32>
    %28 = vector.extract_strided_slice %3 {offsets = [0, 12], sizes = [4, 4], strides = [1, 1]} : vector<4x37xf32> to vector<4x4xf32>
    %cst_16 = arith.constant dense<0.000000e+00> : vector<4x256xf32>
    %29 = tpu.matmul %28, %27, %cst_16 {dimension_numbers = #tpu.dot_dimension_numbers<[1], [0], [0], [1], [0, 0, 1, 1], [], []>, precision = #tpu.contract_precision<fp32>} : vector<4x4xf32>, vector<4x256xf32>, vector<4x256xf32> -> vector<4x256xf32>
    %30 = arith.addf %23, %29 : vector<4x256xf32>
    %31 = vector.extract_strided_slice %3 {offsets = [0, 16], sizes = [4, 4], strides = [1, 1]} : vector<4x37xf32> to vector<4x4xf32>
    %cst_17 = arith.constant dense<0.000000e+00> : vector<4x256xf32>
    %32 = tpu.matmul %31, %1, %cst_17 {dimension_numbers = #tpu.dot_dimension_numbers<[1], [0], [0], [1], [0, 0, 1, 1], [], []>, precision = #tpu.contract_precision<fp32>} : vector<4x4xf32>, vector<4x256xf32>, vector<4x256xf32> -> vector<4x256xf32>
    %33 = arith.addf %30, %32 : vector<4x256xf32>
    %c255_i32 = arith.constant 255 : i32
    %34 = tpu.dynamic_rotate %1 by %c255_i32 dim 1 : vector<4x256xf32>, i32 -> vector<4x256xf32>
    %c5 = arith.constant 5 : index
    %c0_18 = arith.constant 0 : index
    %c0_19 = arith.constant 0 : index
    %35 = vector.load %arg3[%c5, %c0_18, %c0_19] : memref<9x4x256xf32, #tpu.memory_space<vmem>>, vector<1x4x256xf32>
    %36 = vector.shape_cast %35 : vector<1x4x256xf32> to vector<4x256xf32>
    %37 = arith.mulf %34, %36 : vector<4x256xf32>
    %38 = vector.extract_strided_slice %3 {offsets = [0, 20], sizes = [4, 4], strides = [1, 1]} : vector<4x37xf32> to vector<4x4xf32>
    %cst_20 = arith.constant dense<0.000000e+00> : vector<4x256xf32>
    %39 = tpu.matmul %38, %37, %cst_20 {dimension_numbers = #tpu.dot_dimension_numbers<[1], [0], [0], [1], [0, 0, 1, 1], [], []>, precision = #tpu.contract_precision<fp32>} : vector<4x4xf32>, vector<4x256xf32>, vector<4x256xf32> -> vector<4x256xf32>
    %40 = arith.addf %33, %39 : vector<4x256xf32>
    %c241_i32 = arith.constant 241 : i32
    %41 = tpu.dynamic_rotate %1 by %c241_i32 dim 1 : vector<4x256xf32>, i32 -> vector<4x256xf32>
    %c6 = arith.constant 6 : index
    %c0_21 = arith.constant 0 : index
    %c0_22 = arith.constant 0 : index
    %42 = vector.load %arg3[%c6, %c0_21, %c0_22] : memref<9x4x256xf32, #tpu.memory_space<vmem>>, vector<1x4x256xf32>
    %43 = vector.shape_cast %42 : vector<1x4x256xf32> to vector<4x256xf32>
    %44 = arith.mulf %41, %43 : vector<4x256xf32>
    %45 = vector.extract_strided_slice %3 {offsets = [0, 24], sizes = [4, 4], strides = [1, 1]} : vector<4x37xf32> to vector<4x4xf32>
    %cst_23 = arith.constant dense<0.000000e+00> : vector<4x256xf32>
    %46 = tpu.matmul %45, %44, %cst_23 {dimension_numbers = #tpu.dot_dimension_numbers<[1], [0], [0], [1], [0, 0, 1, 1], [], []>, precision = #tpu.contract_precision<fp32>} : vector<4x4xf32>, vector<4x256xf32>, vector<4x256xf32> -> vector<4x256xf32>
    %47 = arith.addf %40, %46 : vector<4x256xf32>
    %c240_i32 = arith.constant 240 : i32
    %48 = tpu.dynamic_rotate %1 by %c240_i32 dim 1 : vector<4x256xf32>, i32 -> vector<4x256xf32>
    %c7 = arith.constant 7 : index
    %c0_24 = arith.constant 0 : index
    %c0_25 = arith.constant 0 : index
    %49 = vector.load %arg3[%c7, %c0_24, %c0_25] : memref<9x4x256xf32, #tpu.memory_space<vmem>>, vector<1x4x256xf32>
    %50 = vector.shape_cast %49 : vector<1x4x256xf32> to vector<4x256xf32>
    %51 = arith.mulf %48, %50 : vector<4x256xf32>
    %52 = vector.extract_strided_slice %3 {offsets = [0, 28], sizes = [4, 4], strides = [1, 1]} : vector<4x37xf32> to vector<4x4xf32>
    %cst_26 = arith.constant dense<0.000000e+00> : vector<4x256xf32>
    %53 = tpu.matmul %52, %51, %cst_26 {dimension_numbers = #tpu.dot_dimension_numbers<[1], [0], [0], [1], [0, 0, 1, 1], [], []>, precision = #tpu.contract_precision<fp32>} : vector<4x4xf32>, vector<4x256xf32>, vector<4x256xf32> -> vector<4x256xf32>
    %54 = arith.addf %47, %53 : vector<4x256xf32>
    %c239_i32 = arith.constant 239 : i32
    %55 = tpu.dynamic_rotate %1 by %c239_i32 dim 1 : vector<4x256xf32>, i32 -> vector<4x256xf32>
    %c8 = arith.constant 8 : index
    %c0_27 = arith.constant 0 : index
    %c0_28 = arith.constant 0 : index
    %56 = vector.load %arg3[%c8, %c0_27, %c0_28] : memref<9x4x256xf32, #tpu.memory_space<vmem>>, vector<1x4x256xf32>
    %57 = vector.shape_cast %56 : vector<1x4x256xf32> to vector<4x256xf32>
    %58 = arith.mulf %55, %57 : vector<4x256xf32>
    %59 = vector.extract_strided_slice %3 {offsets = [0, 32], sizes = [4, 4], strides = [1, 1]} : vector<4x37xf32> to vector<4x4xf32>
    %cst_29 = arith.constant dense<0.000000e+00> : vector<4x256xf32>
    %60 = tpu.matmul %59, %58, %cst_29 {dimension_numbers = #tpu.dot_dimension_numbers<[1], [0], [0], [1], [0, 0, 1, 1], [], []>, precision = #tpu.contract_precision<fp32>} : vector<4x4xf32>, vector<4x256xf32>, vector<4x256xf32> -> vector<4x256xf32>
    %61 = arith.addf %54, %60 : vector<4x256xf32>
    %62 = vector.extract_strided_slice %3 {offsets = [0, 36], sizes = [4, 1], strides = [1, 1]} : vector<4x37xf32> to vector<4x1xf32>
    %63 = vector.broadcast %62 : vector<4x1xf32> to vector<4x256xf32>
    %64 = arith.addf %61, %63 : vector<4x256xf32>
    %c0_30 = arith.constant 0 : index
    %65 = memref.load %arg6[%c0_30] : memref<1xf32, #tpu.memory_space<smem>>
    %cst_31 = arith.constant 0.000000e+00 : f32
    %66 = vector.broadcast %cst_31 : f32 to vector<4x256xf32>
    %67 = arith.cmpf ogt, %64, %66 : vector<4x256xf32>
    %68 = vector.broadcast %65 : f32 to vector<4x256xf32>
    %69 = arith.mulf %68, %64 : vector<4x256xf32>
    %70 = arith.select %67, %64, %69 : vector<4x256xi1>, vector<4x256xf32>
    %c1_32 = arith.constant 1 : index
    %c0_33 = arith.constant 0 : index
    %c0_34 = arith.constant 0 : index
    %71 = vector.load %arg2[%c1_32, %c0_33, %c0_34] : memref<3x4x37xf32, #tpu.memory_space<vmem>>, vector<1x4x37xf32>
    %72 = vector.shape_cast %71 : vector<1x4x37xf32> to vector<4x37xf32>
    %c17_i32_35 = arith.constant 17 : i32
    %73 = tpu.dynamic_rotate %70 by %c17_i32_35 dim 1 : vector<4x256xf32>, i32 -> vector<4x256xf32>
    %c0_36 = arith.constant 0 : index
    %c0_37 = arith.constant 0 : index
    %c0_38 = arith.constant 0 : index
    %74 = vector.load %arg3[%c0_36, %c0_37, %c0_38] : memref<9x4x256xf32, #tpu.memory_space<vmem>>, vector<1x4x256xf32>
    %75 = vector.shape_cast %74 : vector<1x4x256xf32> to vector<4x256xf32>
    %76 = arith.mulf %73, %75 : vector<4x256xf32>
    %77 = vector.extract_strided_slice %72 {offsets = [0, 0], sizes = [4, 4], strides = [1, 1]} : vector<4x37xf32> to vector<4x4xf32>
    %cst_39 = arith.constant dense<0.000000e+00> : vector<4x256xf32>
    %78 = tpu.matmul %77, %76, %cst_39 {dimension_numbers = #tpu.dot_dimension_numbers<[1], [0], [0], [1], [0, 0, 1, 1], [], []>, precision = #tpu.contract_precision<fp32>} : vector<4x4xf32>, vector<4x256xf32>, vector<4x256xf32> -> vector<4x256xf32>
    %c16_i32_40 = arith.constant 16 : i32
    %79 = tpu.dynamic_rotate %70 by %c16_i32_40 dim 1 : vector<4x256xf32>, i32 -> vector<4x256xf32>
    %c1_41 = arith.constant 1 : index
    %c0_42 = arith.constant 0 : index
    %c0_43 = arith.constant 0 : index
    %80 = vector.load %arg3[%c1_41, %c0_42, %c0_43] : memref<9x4x256xf32, #tpu.memory_space<vmem>>, vector<1x4x256xf32>
    %81 = vector.shape_cast %80 : vector<1x4x256xf32> to vector<4x256xf32>
    %82 = arith.mulf %79, %81 : vector<4x256xf32>
    %83 = vector.extract_strided_slice %72 {offsets = [0, 4], sizes = [4, 4], strides = [1, 1]} : vector<4x37xf32> to vector<4x4xf32>
    %cst_44 = arith.constant dense<0.000000e+00> : vector<4x256xf32>
    %84 = tpu.matmul %83, %82, %cst_44 {dimension_numbers = #tpu.dot_dimension_numbers<[1], [0], [0], [1], [0, 0, 1, 1], [], []>, precision = #tpu.contract_precision<fp32>} : vector<4x4xf32>, vector<4x256xf32>, vector<4x256xf32> -> vector<4x256xf32>
    %85 = arith.addf %78, %84 : vector<4x256xf32>
    %c15_i32_45 = arith.constant 15 : i32
    %86 = tpu.dynamic_rotate %70 by %c15_i32_45 dim 1 : vector<4x256xf32>, i32 -> vector<4x256xf32>
    %c2_46 = arith.constant 2 : index
    %c0_47 = arith.constant 0 : index
    %c0_48 = arith.constant 0 : index
    %87 = vector.load %arg3[%c2_46, %c0_47, %c0_48] : memref<9x4x256xf32, #tpu.memory_space<vmem>>, vector<1x4x256xf32>
    %88 = vector.shape_cast %87 : vector<1x4x256xf32> to vector<4x256xf32>
    %89 = arith.mulf %86, %88 : vector<4x256xf32>
    %90 = vector.extract_strided_slice %72 {offsets = [0, 8], sizes = [4, 4], strides = [1, 1]} : vector<4x37xf32> to vector<4x4xf32>
    %cst_49 = arith.constant dense<0.000000e+00> : vector<4x256xf32>
    %91 = tpu.matmul %90, %89, %cst_49 {dimension_numbers = #tpu.dot_dimension_numbers<[1], [0], [0], [1], [0, 0, 1, 1], [], []>, precision = #tpu.contract_precision<fp32>} : vector<4x4xf32>, vector<4x256xf32>, vector<4x256xf32> -> vector<4x256xf32>
    %92 = arith.addf %85, %91 : vector<4x256xf32>
    %c1_i32_50 = arith.constant 1 : i32
    %93 = tpu.dynamic_rotate %70 by %c1_i32_50 dim 1 : vector<4x256xf32>, i32 -> vector<4x256xf32>
    %c3_51 = arith.constant 3 : index
    %c0_52 = arith.constant 0 : index
    %c0_53 = arith.constant 0 : index
    %94 = vector.load %arg3[%c3_51, %c0_52, %c0_53] : memref<9x4x256xf32, #tpu.memory_space<vmem>>, vector<1x4x256xf32>
    %95 = vector.shape_cast %94 : vector<1x4x256xf32> to vector<4x256xf32>
    %96 = arith.mulf %93, %95 : vector<4x256xf32>
    %97 = vector.extract_strided_slice %72 {offsets = [0, 12], sizes = [4, 4], strides = [1, 1]} : vector<4x37xf32> to vector<4x4xf32>
    %cst_54 = arith.constant dense<0.000000e+00> : vector<4x256xf32>
    %98 = tpu.matmul %97, %96, %cst_54 {dimension_numbers = #tpu.dot_dimension_numbers<[1], [0], [0], [1], [0, 0, 1, 1], [], []>, precision = #tpu.contract_precision<fp32>} : vector<4x4xf32>, vector<4x256xf32>, vector<4x256xf32> -> vector<4x256xf32>
    %99 = arith.addf %92, %98 : vector<4x256xf32>
    %100 = vector.extract_strided_slice %72 {offsets = [0, 16], sizes = [4, 4], strides = [1, 1]} : vector<4x37xf32> to vector<4x4xf32>
    %cst_55 = arith.constant dense<0.000000e+00> : vector<4x256xf32>
    %101 = tpu.matmul %100, %70, %cst_55 {dimension_numbers = #tpu.dot_dimension_numbers<[1], [0], [0], [1], [0, 0, 1, 1], [], []>, precision = #tpu.contract_precision<fp32>} : vector<4x4xf32>, vector<4x256xf32>, vector<4x256xf32> -> vector<4x256xf32>
    %102 = arith.addf %99, %101 : vector<4x256xf32>
    %c255_i32_56 = arith.constant 255 : i32
    %103 = tpu.dynamic_rotate %70 by %c255_i32_56 dim 1 : vector<4x256xf32>, i32 -> vector<4x256xf32>
    %c5_57 = arith.constant 5 : index
    %c0_58 = arith.constant 0 : index
    %c0_59 = arith.constant 0 : index
    %104 = vector.load %arg3[%c5_57, %c0_58, %c0_59] : memref<9x4x256xf32, #tpu.memory_space<vmem>>, vector<1x4x256xf32>
    %105 = vector.shape_cast %104 : vector<1x4x256xf32> to vector<4x256xf32>
    %106 = arith.mulf %103, %105 : vector<4x256xf32>
    %107 = vector.extract_strided_slice %72 {offsets = [0, 20], sizes = [4, 4], strides = [1, 1]} : vector<4x37xf32> to vector<4x4xf32>
    %cst_60 = arith.constant dense<0.000000e+00> : vector<4x256xf32>
    %108 = tpu.matmul %107, %106, %cst_60 {dimension_numbers = #tpu.dot_dimension_numbers<[1], [0], [0], [1], [0, 0, 1, 1], [], []>, precision = #tpu.contract_precision<fp32>} : vector<4x4xf32>, vector<4x256xf32>, vector<4x256xf32> -> vector<4x256xf32>
    %109 = arith.addf %102, %108 : vector<4x256xf32>
    %c241_i32_61 = arith.constant 241 : i32
    %110 = tpu.dynamic_rotate %70 by %c241_i32_61 dim 1 : vector<4x256xf32>, i32 -> vector<4x256xf32>
    %c6_62 = arith.constant 6 : index
    %c0_63 = arith.constant 0 : index
    %c0_64 = arith.constant 0 : index
    %111 = vector.load %arg3[%c6_62, %c0_63, %c0_64] : memref<9x4x256xf32, #tpu.memory_space<vmem>>, vector<1x4x256xf32>
    %112 = vector.shape_cast %111 : vector<1x4x256xf32> to vector<4x256xf32>
    %113 = arith.mulf %110, %112 : vector<4x256xf32>
    %114 = vector.extract_strided_slice %72 {offsets = [0, 24], sizes = [4, 4], strides = [1, 1]} : vector<4x37xf32> to vector<4x4xf32>
    %cst_65 = arith.constant dense<0.000000e+00> : vector<4x256xf32>
    %115 = tpu.matmul %114, %113, %cst_65 {dimension_numbers = #tpu.dot_dimension_numbers<[1], [0], [0], [1], [0, 0, 1, 1], [], []>, precision = #tpu.contract_precision<fp32>} : vector<4x4xf32>, vector<4x256xf32>, vector<4x256xf32> -> vector<4x256xf32>
    %116 = arith.addf %109, %115 : vector<4x256xf32>
    %c240_i32_66 = arith.constant 240 : i32
    %117 = tpu.dynamic_rotate %70 by %c240_i32_66 dim 1 : vector<4x256xf32>, i32 -> vector<4x256xf32>
    %c7_67 = arith.constant 7 : index
    %c0_68 = arith.constant 0 : index
    %c0_69 = arith.constant 0 : index
    %118 = vector.load %arg3[%c7_67, %c0_68, %c0_69] : memref<9x4x256xf32, #tpu.memory_space<vmem>>, vector<1x4x256xf32>
    %119 = vector.shape_cast %118 : vector<1x4x256xf32> to vector<4x256xf32>
    %120 = arith.mulf %117, %119 : vector<4x256xf32>
    %121 = vector.extract_strided_slice %72 {offsets = [0, 28], sizes = [4, 4], strides = [1, 1]} : vector<4x37xf32> to vector<4x4xf32>
    %cst_70 = arith.constant dense<0.000000e+00> : vector<4x256xf32>
    %122 = tpu.matmul %121, %120, %cst_70 {dimension_numbers = #tpu.dot_dimension_numbers<[1], [0], [0], [1], [0, 0, 1, 1], [], []>, precision = #tpu.contract_precision<fp32>} : vector<4x4xf32>, vector<4x256xf32>, vector<4x256xf32> -> vector<4x256xf32>
    %123 = arith.addf %116, %122 : vector<4x256xf32>
    %c239_i32_71 = arith.constant 239 : i32
    %124 = tpu.dynamic_rotate %70 by %c239_i32_71 dim 1 : vector<4x256xf32>, i32 -> vector<4x256xf32>
    %c8_72 = arith.constant 8 : index
    %c0_73 = arith.constant 0 : index
    %c0_74 = arith.constant 0 : index
    %125 = vector.load %arg3[%c8_72, %c0_73, %c0_74] : memref<9x4x256xf32, #tpu.memory_space<vmem>>, vector<1x4x256xf32>
    %126 = vector.shape_cast %125 : vector<1x4x256xf32> to vector<4x256xf32>
    %127 = arith.mulf %124, %126 : vector<4x256xf32>
    %128 = vector.extract_strided_slice %72 {offsets = [0, 32], sizes = [4, 4], strides = [1, 1]} : vector<4x37xf32> to vector<4x4xf32>
    %cst_75 = arith.constant dense<0.000000e+00> : vector<4x256xf32>
    %129 = tpu.matmul %128, %127, %cst_75 {dimension_numbers = #tpu.dot_dimension_numbers<[1], [0], [0], [1], [0, 0, 1, 1], [], []>, precision = #tpu.contract_precision<fp32>} : vector<4x4xf32>, vector<4x256xf32>, vector<4x256xf32> -> vector<4x256xf32>
    %130 = arith.addf %123, %129 : vector<4x256xf32>
    %131 = vector.extract_strided_slice %72 {offsets = [0, 36], sizes = [4, 1], strides = [1, 1]} : vector<4x37xf32> to vector<4x1xf32>
    %132 = vector.broadcast %131 : vector<4x1xf32> to vector<4x256xf32>
    %133 = arith.addf %130, %132 : vector<4x256xf32>
    %c0_76 = arith.constant 0 : index
    %c0_77 = arith.constant 0 : index
    %134 = vector.load %arg4[%c0_76, %c0_77] : memref<256x32xf32, #tpu.memory_space<vmem>>, vector<256x32xf32>
    %cst_78 = arith.constant dense<0.000000e+00> : vector<4x32xf32>
    %135 = tpu.matmul %133, %134, %cst_78 {dimension_numbers = #tpu.dot_dimension_numbers<[1], [0], [0], [1], [0, 0, 1, 1], [], []>, precision = #tpu.contract_precision<fp32>} : vector<4x256xf32>, vector<256x32xf32>, vector<4x32xf32> -> vector<4x32xf32>
    %c2_79 = arith.constant 2 : index
    %c0_80 = arith.constant 0 : index
    %c0_81 = arith.constant 0 : index
    %136 = vector.load %arg2[%c2_79, %c0_80, %c0_81] : memref<3x4x37xf32, #tpu.memory_space<vmem>>, vector<1x4x37xf32>
    %137 = vector.shape_cast %136 : vector<1x4x37xf32> to vector<4x37xf32>
    %138 = vector.extract_strided_slice %137 {offsets = [0, 0], sizes = [4, 4], strides = [1, 1]} : vector<4x37xf32> to vector<4x4xf32>
    %139 = vector.extract_strided_slice %135 {offsets = [0, 0], sizes = [4, 16], strides = [1, 1]} : vector<4x32xf32> to vector<4x16xf32>
    %cst_82 = arith.constant dense<0.000000e+00> : vector<4x16xf32>
    %140 = tpu.matmul %138, %139, %cst_82 {dimension_numbers = #tpu.dot_dimension_numbers<[1], [0], [0], [1], [0, 0, 1, 1], [], []>, precision = #tpu.contract_precision<fp32>} : vector<4x4xf32>, vector<4x16xf32>, vector<4x16xf32> -> vector<4x16xf32>
    %141 = arith.negf %140 : vector<4x16xf32>
    %142 = math.exp %141 : vector<4x16xf32>
    %cst_83 = arith.constant 1.000000e+00 : f32
    %143 = vector.broadcast %cst_83 : f32 to vector<4x16xf32>
    %144 = arith.addf %143, %142 : vector<4x16xf32>
    %145 = arith.divf %143, %144 : vector<4x16xf32>
    %146 = vector.extract_strided_slice %137 {offsets = [0, 4], sizes = [4, 4], strides = [1, 1]} : vector<4x37xf32> to vector<4x4xf32>
    %147 = vector.extract_strided_slice %135 {offsets = [0, 16], sizes = [4, 16], strides = [1, 1]} : vector<4x32xf32> to vector<4x16xf32>
    %cst_84 = arith.constant dense<0.000000e+00> : vector<4x16xf32>
    %148 = tpu.matmul %146, %147, %cst_84 {dimension_numbers = #tpu.dot_dimension_numbers<[1], [0], [0], [1], [0, 0, 1, 1], [], []>, precision = #tpu.contract_precision<fp32>} : vector<4x4xf32>, vector<4x16xf32>, vector<4x16xf32> -> vector<4x16xf32>
    %149 = arith.negf %148 : vector<4x16xf32>
    %150 = math.exp %149 : vector<4x16xf32>
    %cst_85 = arith.constant 1.000000e+00 : f32
    %151 = vector.broadcast %cst_85 : f32 to vector<4x16xf32>
    %152 = arith.addf %151, %150 : vector<4x16xf32>
    %153 = arith.divf %151, %152 : vector<4x16xf32>
    %c0_86 = arith.constant 0 : index
    %c0_87 = arith.constant 0 : index
    %154 = vector.load %arg5[%c0_86, %c0_87] : memref<32x256xf32, #tpu.memory_space<vmem>>, vector<32x256xf32>
    %155 = vector.extract_strided_slice %154 {offsets = [0, 0], sizes = [16, 256], strides = [1, 1]} : vector<32x256xf32> to vector<16x256xf32>
    %cst_88 = arith.constant dense<0.000000e+00> : vector<4x256xf32>
    %156 = tpu.matmul %145, %155, %cst_88 {dimension_numbers = #tpu.dot_dimension_numbers<[1], [0], [0], [1], [0, 0, 1, 1], [], []>, precision = #tpu.contract_precision<fp32>} : vector<4x16xf32>, vector<16x256xf32>, vector<4x256xf32> -> vector<4x256xf32>
    %157 = vector.extract_strided_slice %154 {offsets = [16, 0], sizes = [16, 256], strides = [1, 1]} : vector<32x256xf32> to vector<16x256xf32>
    %cst_89 = arith.constant dense<0.000000e+00> : vector<4x256xf32>
    %158 = tpu.matmul %153, %157, %cst_89 {dimension_numbers = #tpu.dot_dimension_numbers<[1], [0], [0], [1], [0, 0, 1, 1], [], []>, precision = #tpu.contract_precision<fp32>} : vector<4x16xf32>, vector<16x256xf32>, vector<4x256xf32> -> vector<4x256xf32>
    %159 = arith.mulf %156, %158 : vector<4x256xf32>
    %160 = arith.mulf %133, %159 : vector<4x256xf32>
    %161 = arith.addf %160, %1 : vector<4x256xf32>
    %c0_90 = arith.constant 0 : index
    %c0_91 = arith.constant 0 : index
    %c0_92 = arith.constant 0 : index
    %162 = vector.load %arg7[%c0_90, %c0_91, %c0_92] : memref<1x4x256xf32, #tpu.memory_space<vmem>>, vector<1x4x256xf32>
    %163 = vector.shape_cast %162 : vector<1x4x256xf32> to vector<4x256xf32>
    %164 = vector.shape_cast %161 : vector<4x256xf32> to vector<1x4x256xf32>
    tpu.vector_store %arg7[%c0_90, %c0_91, %c0_92], %164 {strides = array<i32>} : memref<1x4x256xf32, #tpu.memory_space<vmem>>, vector<1x4x256xf32>,
    return
  }
  func.func @transform_0(%arg0: i32) -> (i32, i32, i32) {
    %c0_i32 = arith.constant 0 : i32
    %c0_i32_0 = arith.constant 0 : i32
    %c0_i32_1 = arith.constant 0 : i32
    return %arg0, %c0_i32, %c0_i32_0 : i32, i32, i32
  }
  func.func @transform_1(%arg0: i32) -> (i32, i32, i32) {
    %c0_i32 = arith.constant 0 : i32
    %c0_i32_0 = arith.constant 0 : i32
    %c0_i32_1 = arith.constant 0 : i32
    %c0_i32_2 = arith.constant 0 : i32
    return %c0_i32, %c0_i32_0, %c0_i32_1 : i32, i32, i32
  }
  func.func @transform_2(%arg0: i32) -> (i32, i32, i32) {
    %c0_i32 = arith.constant 0 : i32
    %c0_i32_0 = arith.constant 0 : i32
    %c0_i32_1 = arith.constant 0 : i32
    %c0_i32_2 = arith.constant 0 : i32
    return %c0_i32, %c0_i32_0, %c0_i32_1 : i32, i32, i32
  }
  func.func @transform_3(%arg0: i32) -> (i32, i32) {
    %c0_i32 = arith.constant 0 : i32
    %c0_i32_0 = arith.constant 0 : i32
    %c0_i32_1 = arith.constant 0 : i32
    return %c0_i32, %c0_i32_0 : i32, i32
  }
  func.func @transform_4(%arg0: i32) -> (i32, i32) {
    %c0_i32 = arith.constant 0 : i32
    %c0_i32_0 = arith.constant 0 : i32
    %c0_i32_1 = arith.constant 0 : i32
    return %c0_i32, %c0_i32_0 : i32, i32
  }
  func.func @transform_5(%arg0: i32) -> i32 {
    %c0_i32 = arith.constant 0 : i32
    %c0_i32_0 = arith.constant 0 : i32
    return %c0_i32 : i32
  }
  func.func @transform_6(%arg0: i32) -> (i32, i32, i32) {
    %c0_i32 = arith.constant 0 : i32
    %c0_i32_0 = arith.constant 0 : i32
    %c0_i32_1 = arith.constant 0 : i32
    return %arg0, %c0_i32, %c0_i32_0 : i32, i32, i32
  }
}

</mosaic_0001>

<bundles_post_ra>
// kernel: tpu_custom_call.1
= control target key start
LH: loop header
LB: loop body
LE: loop exit
PB: predicated region body
PF: predicated region fallthrough
CT: control target
= control target key end

     0   :  { %s14328_s0 = inlined_call_operand.vmem [shape: f32[2,4,256], index: 0, kind: input, shape index: {}]   ;;  %s14329_s1 = inlined_call_operand.vmem [shape: f32[3,4,37], index: 1, kind: input, shape index: {}]   ;;  %s14330_s2 = inlined_call_operand.vmem [shape: f32[9,4,256], index: 2, kind: input, shape index: {}]   ;;  %s14331_s3 = inlined_call_operand.vmem [shape: f32[256,32], index: 3, kind: input, shape index: {}]   ;;  %s14332_s4 = inlined_call_operand.vmem [shape: f32[32,256], index: 4, kind: input, shape index: {}]   ;;  %s14333_s5 = inlined_call_operand.<no memory space> [shape: f32[1], index: 5, kind: input, shape index: {}]   ;;  %s14334_s6 = inlined_call_operand.hbm [shape: f32[2,4,256], index: 6, kind: output, shape index: {}]  }
   0x1   :  { %11 = sst [smem:[#allocation2]] %s14333_s5 }
   0x2   :  { %12 = vsyncpa [#allocation4], 0 }
   0x3   :  { %14 = vsyncpa [#allocation4 + $0x1], 0  ;;  %s12940_s23 = smov 0   ;;  %s12942_s24 = smov 0  }
   0x4   :  { %s12944_s25 = smov 0   ;;  %s12946_s26 = smov 0  }
   0x5 LB: > { %s12961_s5 = sadd.s32 4294967295, %s12881_s26   ;;  %s11927_s27 = sadd.s32 4294967294, %s12881_s26   ;;  %s12881_s26 = sphi %s12946_s26, %s14462_s26   ;;  %s12877_s25 = sphi %s12944_s25, %s14461_s25   ;;  %s12873_s24 = sphi %s12942_s24, %s14460_s24   ;;  %s12869_s23 = sphi %s12940_s23, %s14459_s23  }
   0x6   : > { %s12965_s28 = sadd.s32 1, %s12881_s26   ;;  %s158_s29 = sadd.s32 1, %s12877_s25 }
   0x7   : > { %s155_s30 = ssub.s32 %s12881_s26, %s12965_s28  ;;  %p168_p0 = scmp.ne.s32.totalorder %s12877_s25, %s12873_s24 }
   0x8   : > { %p156_p1 = scmp.eq.s32.totalorder %s155_s30, 0  ;;  %p169_p2 = scmp.eq.s32.totalorder %s12961_s5, 1 }
   0x9   : > { %p174_p3 = scmp.ne.s32.totalorder %s12873_s24, %s12869_s23  ;;  %p175_p4 = scmp.eq.s32.totalorder %s11927_s27, 1 }
   0xa   : > { %s12976_s7 = scalar_select %p156_p1, %s12877_s25, %s158_s29  }
   0xb   : > { %p12978_p5 = por %p169_p2, %p168_p0  ;;  %p12982_p6 = por %p175_p4, %p174_p3 }
   0xc   : > { %p11930_p7 = scmp.ge.s32.totalorder %s12881_s26, 1  ;;  %p216_p8 = scmp.lt.s32.totalorder %s12881_s26, 3 }
   0xe   : > { %p217_p9 = pnand %p11930_p7, %p216_p8 }
  0x10   : > { %220 = sbr.rel (%p217_p9) target bundleno = 2536 (0x9e8), region = 44 }
  0x17   : > { %v12991_v0 = vld [vmem:[%s14329_s1] sm:$0xf]  ;;  %p246_p10 = scmp.lt.s32.totalorder %s12961_s5, 1  ;;  %s12883_s12 = smov 124   ;;  %v14345_v1 = vmov 0.0   ;;  %vm288_vm0 = vcmask 31744   ;;  %v260_v4 = vlaneseq }
  0x18   : > { %286 = vrot.lane.b32.xlu0 %v12991_v0, %s12883_s12  ;;  %364 = vmatprep.mubr.f32.mxu0 %v14345_v1  ;;  %s12885_s18 = smov 16   ;;  %s12886_s19 = smov 17   ;;  %v11934_v9 = vld [vmem:[%s14330_s2 + $0x8] sm:$0xff]  ;;  %vm291_vm2 = vcmask 1043456   ;;  %v265_v33 = vld [vmem:[%s14330_s2] sm:$0xff]  ;;  %v763_v43 = vsel %vm288_vm0, %v12991_v0, 0 }
  0x19   : > { %s247_s13 = scalar_select %p246_p10, %s12961_s5, 1  ;;  %4766 = vmatprep.mubr.f32.mxu1 %v14345_v1  ;;  %v13042_v8 = vand.u32 127, %v260_v4  ;;  %v13049_v12 = vcombine.high %v11934_v9, %v11934_v9  ;;  %v13065_v36 = vcombine.high %v265_v33, %v265_v33  ;;  %v13082_v46 = vand.u32 4294901760, %v763_v43  ;;  %v11935_v60 = vld [vmem:[%s14330_s2 + $0x10] sm:$0xff] }
  0x1a   : > { %s12887_s20 = smov 15   ;;  %s12888_s21 = smov 120   ;;  %v13100_v63 = vcombine.high %v11935_v60, %v11935_v60  ;;  %vm12900_vm12 = vmmov 0   ;;  %vm10853_vm13 = vcmask 130048  }
  0x1b   : > { %s11950_s14 = sshll.u32 %s247_s13, 3  ;;  %s12889_s22 = smov 116   ;;  %vm275_vm1 = vcmp.lt.s32.totalorder %v13042_v8, 16  ;;  %vm262_vm3 = vcmp.lt.s32.totalorder %v13042_v8, 17  ;;  %v839_v49 = vsub.f32 %v763_v43, %v13082_v46  ;;  %vm1240_vm4 = vcmp.lt.s32.totalorder %v13042_v8, 15 }
  0x1c   : > { %s13002_s17 = scalar_lea.vmem %s14328_s0, %s11950_s14  ;;  %s12890_s27 = smov 1   ;;  %vm1731_vm5 = vcmp.lt.s32.totalorder %v13042_v8, 1  ;;  %vm2697_vm6 = vcmp.lt.s32.totalorder %v13042_v8, 127  ;;  %vm3188_vm7 = vcmp.lt.s32.totalorder %v13042_v8, 113  ;;  %vm3679_vm8 = vcmp.lt.s32.totalorder %v13042_v8, 112 }
  0x1d   : > { %v13005_v2 = vld [vmem:[%s13002_s17] sm:$0xff]  ;;  %s12891_s29 = smov 112   ;;  %s12892_s30 = smov 108   ;;  %v840_v52 = vand.u32 4294901760, %v839_v49  ;;  %vm4170_vm9 = vcmp.lt.s32.totalorder %v13042_v8, 111 }
  0x1e   : > { %271 = vrot.lane.b32.xlu0 %v13005_v2, %s12885_s18  ;;  %v13011_v3 = vcombine.high %v13005_v2, %v13005_v2  ;;  %s12893_s10 = smov 127   ;;  %s12894_s16 = smov 104  }
  0x1f   : > { %s14339_s11 = smov 113   ;;  %v841_v55 = vsub.f32 %v839_v49, %v840_v52  ;;  %s14338_s15 = smov 100  }
  0x20   : > { %14389 = vst [vmem:[#allocation6_spill] sm:$0xff] %v13011_v3  ;;  %273 = vrot.lane.b32.xlu1 %v13011_v3, %s12885_s18  ;;  %s14337_s13 = smov 96   ;;  %s14335_s14 = smov 111  }
  0x21   : > { %v842_v57 = vand.u32 4294901760, %v841_v55 }
  0x22   : > { %258 = vrot.lane.b32.xlu0 %v13011_v3, %s12886_s19 }
  0x24   : > { %256 = vrot.lane.b32.xlu1 %v13005_v2, %s12886_s19 }
  0x26   : > { %1236 = vrot.lane.b32.xlu0 %v13005_v2, %s12887_s20 }
  0x28   : > { %1250 = vrot.lane.b32.xlu1 %v12991_v0, %s12888_s21 }
  0x2a   : > { %1741 = vrot.lane.b32.xlu0 %v12991_v0, %s12889_s22 }
  0x2c   : > { %1238 = vrot.lane.b32.xlu1 %v13011_v3, %s12887_s20 }
  0x2e   : > { %1729 = vrot.lane.b32.xlu0 %v13011_v3, %s12890_s27 }
  0x30   : > { %1727 = vrot.lane.b32.xlu1 %v13005_v2, %s12890_s27 }
  0x32   : > { %2707 = vrot.lane.b32.xlu0 %v12991_v0, %s12892_s30 }
  0x34   : > { %2218 = vrot.lane.b32.xlu1 %v12991_v0, %s12891_s29 }
  0x36   : > { %2695 = vrot.lane.b32.xlu0 %v13011_v3, %s12893_s10 }
  0x38   : > { %2693 = vrot.lane.b32.xlu1 %v13005_v2, %s12893_s10 }
  0x3a   : > { %3184 = vrot.lane.b32.xlu0 %v13005_v2, %s14339_s11 }
  0x3c   : > { %3198 = vrot.lane.b32.xlu1 %v12991_v0, %s12894_s16 }
  0x3e   : > { %3689 = vrot.lane.b32.xlu0 %v12991_v0, %s14338_s15 }
  0x40   : > { %3186 = vrot.lane.b32.xlu1 %v13011_v3, %s14339_s11 }
  0x42   : > { %3677 = vrot.lane.b32.xlu0 %v13011_v3, %s12891_s29 }
  0x44   : > { %3675 = vrot.lane.b32.xlu1 %v13005_v2, %s12891_s29 }
  0x46   : > { %4166 = vrot.lane.b32.xlu0 %v13005_v2, %s14335_s14 }
  0x48   : > { %4180 = vrot.lane.b32.xlu1 %v12991_v0, %s14337_s13  ;;  %s4663_s13 = sld [smem:[#allocation2]] }
  0x4c   : > { %4168 = vrot.lane.b32.xlu1 %v13011_v3, %s14335_s14 }
  0x8a   : > { %v287_v5 = vpop.permute.xlu0 %286 }
  0x8b   : > { %v289_v6 = vsel %vm288_vm0, %v287_v5, 0 }
  0x8c   : > { %v13040_v7 = vand.u32 4294901760, %v289_v6 }
  0x8e   : > { %v366_v10 = vsub.f32 %v289_v6, %v13040_v7 }
  0x90   : > { %v272_v11 = vpop.permute.xlu0 %271  ;;  %v367_v13 = vand.u32 4294901760, %v366_v10 }
  0x92   : > { %v274_v14 = vpop.permute.xlu1 %273  ;;  %v368_v19 = vsub.f32 %v366_v10, %v367_v13 }
  0x93   : > { %v276_v15 = vsel %vm275_vm1, %v272_v11, %v274_v14  ;;  %v277_v16 = vsel %vm275_vm1, %v274_v14, %v272_v11 }
  0x94   : > { %v283_v17 = vmul.f32 %v11934_v9, %v277_v16  ;;  %v284_v18 = vmul.f32 %v13049_v12, %v276_v15  ;;  %v369_v26 = vand.u32 4294901760, %v368_v19  ;;  %v259_v34 = vpop.permute.xlu0 %258 }
  0x96   : > { %v293_v20 = vsel %vm291_vm2, %v283_v17, 0  ;;  %v296_v21 = vsel %vm291_vm2, %v284_v18, 0  ;;  %v257_v35 = vpop.permute.xlu1 %256 }
  0x97   : > { %v298_v22 = vand.u32 4294901760, %v296_v21  ;;  %v300_v23 = vand.u32 4294901760, %v293_v20  ;;  %v263_v37 = vsel %vm262_vm3, %v257_v35, %v259_v34  ;;  %v264_v39 = vsel %vm262_vm3, %v259_v34, %v257_v35 }
  0x98   : > { %v270_v38 = vmul.f32 %v13065_v36, %v263_v37  ;;  %v269_v41 = vmul.f32 %v265_v33, %v264_v39  ;;  %v1237_v61 = vpop.permute.xlu0 %1236 }
  0x99   : > { %v377_v24 = vsub.f32 %v296_v21, %v298_v22  ;;  %v383_v25 = vsub.f32 %v293_v20, %v300_v23  ;;  %299 = vmatprep.subr.mxu0 %v298_v22 }
  0x9a   : > { %301 = vmatpush1.msra.mxu0 %v300_v23  ;;  %v769_v40 = vsel %vm291_vm2, %v270_v38, 0  ;;  %v766_v44 = vsel %vm291_vm2, %v269_v41, 0  ;;  %v1251_v59 = vpop.permute.xlu1 %1250 }
  0x9b   : > { %370 = vmatmul.mubr.f32.vlgmr.msra.gmra.mrb[0].mxu0 %v369_v26  ;;  %v378_v27 = vand.u32 4294901760, %v377_v24  ;;  %v384_v28 = vand.u32 4294901760, %v383_v25  ;;  %v771_v42 = vand.u32 4294901760, %v769_v40  ;;  %v773_v47 = vand.u32 4294901760, %v766_v44 }
  0x9c   : > { %450 = vmatprep.mubr.f32.mxu0 %v14345_v1  ;;  %v1252_v14 = vsel %vm288_vm0, %v1251_v59, 0  ;;  %v2222_v59 = vsel %vm291_vm2, %v13005_v2, 0 }
  0x9d   : > { %v379_v29 = vsub.f32 %v377_v24, %v378_v27  ;;  %v385_v30 = vsub.f32 %v383_v25, %v384_v28  ;;  %v850_v45 = vsub.f32 %v769_v40, %v771_v42  ;;  %v856_v50 = vsub.f32 %v766_v44, %v773_v47 }
  0x9e   : > { %v1239_v62 = vpop.permute.xlu1 %1238  ;;  %v13114_v16 = vand.u32 4294901760, %v1252_v14 }
  0x9f   : > { %v380_v31 = vand.u32 4294901760, %v379_v29  ;;  %v386_v32 = vand.u32 4294901760, %v385_v30  ;;  %v851_v48 = vand.u32 4294901760, %v850_v45  ;;  %v857_v53 = vand.u32 4294901760, %v856_v50  ;;  %v13128_v29 = vld [vmem:[%s14330_s2 + $0x18] sm:$0xff] }
  0xa0   : > { %v1241_v4 = vsel %vm1240_vm4, %v1237_v61, %v1239_v62  ;;  %v1242_v6 = vsel %vm1240_vm4, %v1239_v62, %v1237_v61  ;;  %v1328_v19 = vsub.f32 %v1252_v14, %v13114_v16  ;;  %v2228_v62 = vand.u32 4294901760, %v2222_v59 }
  0xa1   : > { %381 = vmatprep.subr.mxu0 %v380_v31  ;;  %v852_v51 = vsub.f32 %v850_v45, %v851_v48  ;;  %v858_v56 = vsub.f32 %v856_v50, %v857_v53  ;;  %v1249_v5 = vmul.f32 %v13100_v63, %v1241_v4  ;;  %v1248_v9 = vmul.f32 %v11935_v60, %v1242_v6 }
  0xa2   : > { %387 = vmatpush1.msra.mxu0 %v386_v32  ;;  %v1728_v31 = vpop.permute.xlu1 %1727  ;;  %v13134_v32 = vcombine.high %v13128_v29, %v13128_v29  ;;  %v2311_v6 = vsub.f32 %v2222_v59, %v2228_v62 }
  0xa3   : > { %452 = vmatmul.mubr.f32.vlgmr.msra.gmra.mrb[0].mxu0 %v13040_v7  ;;  %460 = vmatprep.subr.mxu0 %v377_v24  ;;  %v853_v54 = vand.u32 4294901760, %v852_v51  ;;  %v859_v58 = vand.u32 4294901760, %v858_v56  ;;  %v1255_v11 = vsel %vm291_vm2, %v1248_v9, 0  ;;  %v2224_v56 = vsel %vm291_vm2, %v13011_v3, 0 }
  0xa4   : > { %463 = vmatpush1.msra.mxu0 %v383_v25  ;;  %526 = vmatprep.mubr.f32.mxu0 %v14345_v1  ;;  %v1262_v15 = vand.u32 4294901760, %v1255_v11 }
  0xa5   : > { %536 = vmatprep.subr.mxu0 %v298_v22 }
  0xa6   : > { %v1345_v18 = vsub.f32 %v1255_v11, %v1262_v15 }
  0xa8   : > { %v1346_v21 = vand.u32 4294901760, %v1345_v18 }
  0xaa   : > { %v1347_v24 = vsub.f32 %v1345_v18, %v1346_v21 }
  0xab   : > { %529 = vmatmul.mubr.f32.vlgmr.msra.gmra.mrb[0].mxu0 %v366_v10 }
  0xac   : > { %538 = vmatpush1.msra.mxu0 %v300_v23  ;;  %601 = vmatprep.mubr.f32.mxu0 %v14345_v1  ;;  %v1348_v26 = vand.u32 4294901760, %v1347_v24 }
  0xad   : > { %614 = vmatprep.subr.mxu0 %v378_v27 }
  0xb3   : > { %605 = vmatmul.mubr.f32.vlgmr.msra.gmra.mrb[0].mxu0 %v367_v13 }
  0xb4   : > { %618 = vmatpush1.msra.mxu0 %v384_v28  ;;  %681 = vmatprep.mubr.f32.mxu0 %v14345_v1  ;;  %v1742_v28 = vpop.permute.xlu0 %1741 }
  0xb5   : > { %690 = vmatprep.subr.mxu0 %v298_v22  ;;  %v1329_v22 = vand.u32 4294901760, %v1328_v19 }
  0xb7   : > { %v1330_v25 = vsub.f32 %v1328_v19, %v1329_v22 }
  0xb8   : > { %v1730_v30 = vpop.permute.xlu0 %1729 }
  0xb9   : > { %v1331_v27 = vand.u32 4294901760, %v1330_v25  ;;  %v1732_v33 = vsel %vm1731_vm5, %v1728_v31, %v1730_v30  ;;  %v1733_v35 = vsel %vm1731_vm5, %v1730_v30, %v1728_v31 }
  0xba   : > { %v1740_v34 = vmul.f32 %v13134_v32, %v1732_v33  ;;  %v1739_v38 = vmul.f32 %v13128_v29, %v1733_v35 }
  0xbb   : > { %683 = vmatmul.mubr.f32.vlgmr.msra.gmra.mrb[0].mxu0 %v13040_v7 }
  0xbc   : > { %692 = vmatpush1.msra.mxu0 %v300_v23  ;;  %755 = vmatprep.mubr.f32.mxu0 %v14345_v1  ;;  %v1749_v37 = vsel %vm291_vm2, %v1740_v34, 0  ;;  %v1746_v40 = vsel %vm291_vm2, %v1739_v38, 0 }
  0xbd   : > { %772 = vmatprep.subr.mxu0 %v771_v42  ;;  %v1751_v39 = vand.u32 4294901760, %v1749_v37  ;;  %v1753_v43 = vand.u32 4294901760, %v1746_v40 }
  0xbf   : > { %v1830_v41 = vsub.f32 %v1749_v37, %v1751_v39 }
  0xc3   : > { %757 = vmatmul.mubr.f32.vlgmr.msra.gmra.mrb[0].mxu0 %v13040_v7  ;;  %v1258_v7 = vsel %vm291_vm2, %v1249_v5, 0 }
  0xc4   : > { %774 = vmatpush1.msra.mxu0 %v773_v47  ;;  %837 = vmatprep.mubr.f32.mxu0 %v14345_v1  ;;  %v1260_v10 = vand.u32 4294901760, %v1258_v7 }
  0xc5   : > { %854 = vmatprep.subr.mxu0 %v853_v54 }
  0xc6   : > { %v1339_v13 = vsub.f32 %v1258_v7, %v1260_v10 }
  0xc8   : > { %v1340_v17 = vand.u32 4294901760, %v1339_v13 }
  0xca   : > { %v1341_v20 = vsub.f32 %v1339_v13, %v1340_v17 }
  0xcb   : > { %843 = vmatmul.mubr.f32.vlgmr.msra.gmra.mrb[0].mxu0 %v842_v57  ;;  %v2226_v57 = vand.u32 4294901760, %v2224_v56 }
  0xcc   : > { %860 = vmatpush1.msra.mxu0 %v859_v58  ;;  %923 = vmatprep.mubr.f32.mxu0 %v14345_v1  ;;  %v1342_v23 = vand.u32 4294901760, %v1341_v20  ;;  %v2219_v58 = vpop.permute.xlu1 %2218 }
  0xcd   : > { %933 = vmatprep.subr.mxu0 %v850_v45  ;;  %v1831_v45 = vand.u32 4294901760, %v1830_v41  ;;  %v2305_v60 = vsub.f32 %v2224_v56, %v2226_v57  ;;  %v2220_v61 = vsel %vm288_vm0, %v2219_v58, 0 }
  0xce   : > { %v13166_v4 = vand.u32 4294901760, %v2220_v61 }
  0xcf   : > { %v2306_v5 = vand.u32 4294901760, %v2305_v60 }
  0xd0   : > { %v2294_v7 = vsub.f32 %v2220_v61, %v13166_v4  ;;  %v2694_v20 = vpop.permute.xlu1 %2693 }
  0xd1   : > { %v2307_v9 = vsub.f32 %v2305_v60, %v2306_v5 }
  0xd2   : > { %v2295_v11 = vand.u32 4294901760, %v2294_v7 }
  0xd3   : > { %925 = vmatmul.mubr.f32.vlgmr.msra.gmra.mrb[0].mxu0 %v13082_v46 }
  0xd4   : > { %936 = vmatpush1.msra.mxu0 %v856_v50  ;;  %999 = vmatprep.mubr.f32.mxu0 %v14345_v1  ;;  %v2296_v14 = vsub.f32 %v2294_v7, %v2295_v11 }
  0xd5   : > { %1009 = vmatprep.subr.mxu0 %v771_v42 }
  0xdb   : > { %1002 = vmatmul.mubr.f32.vlgmr.msra.gmra.mrb[0].mxu0 %v839_v49 }
  0xdc   : > { %1011 = vmatpush1.msra.mxu0 %v773_v47  ;;  %1074 = vmatprep.mubr.f32.mxu0 %v14345_v1 }
  0xdd   : > { %1087 = vmatprep.subr.mxu0 %v851_v48  ;;  %v1832_v48 = vsub.f32 %v1830_v41, %v1831_v45 }
  0xdf   : > { %v1833_v51 = vand.u32 4294901760, %v1832_v48  ;;  %v13207_v48 = vld [vmem:[%s14330_s2 + $0x30] sm:$0xff] }
  0xe3   : > { %1078 = vmatmul.mubr.f32.vlgmr.msra.gmra.mrb[0].mxu0 %v840_v52 }
  0xe4   : > { %1091 = vmatpush1.msra.mxu0 %v857_v53  ;;  %1154 = vmatprep.mubr.f32.mxu0 %v14345_v1 }
  0xe5   : > { %1163 = vmatprep.subr.mxu0 %v771_v42  ;;  %v1743_v42 = vsel %vm288_vm0, %v1742_v28, 0 }
  0xe6   : > { %v1818_v44 = vand.u32 4294901760, %v1743_v42 }
  0xeb   : > { %1156 = vmatmul.mubr.f32.vlgmr.msra.gmra.mrb[0].mxu0 %v13082_v46 }
  0xec   : > { %1165 = vmatpush1.msra.mxu0 %v773_v47  ;;  %1228 = vmatprep.mubr.f32.mxu0 %v14345_v1  ;;  %v1819_v47 = vsub.f32 %v1743_v42, %v1818_v44 }
  0xed   : > { %1261 = vmatprep.subr.mxu0 %v1260_v10 }
  0xee   : > { %v1820_v50 = vand.u32 4294901760, %v1819_v47 }
  0xf0   : > { %v1821_v53 = vsub.f32 %v1819_v47, %v1820_v50 }
  0xf2   : > { %v1822_v55 = vand.u32 4294901760, %v1821_v53 }
  0xf3   : > { %1230 = vmatmul.mubr.f32.vlgmr.msra.gmra.mrb[0].mxu0 %v13082_v46  ;;  %v1836_v46 = vsub.f32 %v1746_v40, %v1753_v43 }
  0xf4   : > { %1263 = vmatpush1.msra.mxu0 %v1262_v15  ;;  %1326 = vmatprep.mubr.f32.mxu0 %v14345_v1 }
  0xf5   : > { %1343 = vmatprep.subr.mxu0 %v1342_v23  ;;  %v1837_v49 = vand.u32 4294901760, %v1836_v46 }
  0xf7   : > { %v1838_v52 = vsub.f32 %v1836_v46, %v1837_v49 }
  0xf9   : > { %v1839_v54 = vand.u32 4294901760, %v1838_v52 }
  0xfb   : > { %1332 = vmatmul.mubr.f32.vlgmr.msra.gmra.mrb[0].mxu0 %v1331_v27 }
  0xfc   : > { %1349 = vmatpush1.msra.mxu0 %v1348_v26  ;;  %1412 = vmatprep.mubr.f32.mxu0 %v14345_v1 }
  0xfd   : > { %1422 = vmatprep.subr.mxu0 %v1339_v13  ;;  %v2308_v13 = vand.u32 4294901760, %v2307_v9 }
 0x103   : > { %1414 = vmatmul.mubr.f32.vlgmr.msra.gmra.mrb[0].mxu0 %v13114_v16 }
 0x104   : > { %1425 = vmatpush1.msra.mxu0 %v1345_v18  ;;  %1488 = vmatprep.mubr.f32.mxu0 %v14345_v1  ;;  %v13176_v18 = vld [vmem:[%s14330_s2 + $0x28] sm:$0xff] }
 0x105   : > { %1498 = vmatprep.subr.mxu0 %v1260_v10 }
 0x10b   : > { %1491 = vmatmul.mubr.f32.vlgmr.msra.gmra.mrb[0].mxu0 %v1328_v19 }
 0x10c   : > { %1500 = vmatpush1.msra.mxu0 %v1262_v15  ;;  %1563 = vmatprep.mubr.f32.mxu0 %v14345_v1 }
 0x10d   : > { %1576 = vmatprep.subr.mxu0 %v1340_v17  ;;  %v2708_v17 = vpop.permute.xlu0 %2707 }
 0x10e   : > { %v2709_v31 = vsel %vm288_vm0, %v2708_v17, 0  ;;  %v11939_v17 = vld [vmem:[%s14330_s2 + $0x38] sm:$0xff] }
 0x10f   : > { %v13195_v34 = vand.u32 4294901760, %v2709_v31 }
 0x111   : > { %v2696_v19 = vpop.permute.xlu0 %2695  ;;  %v2785_v38 = vsub.f32 %v2709_v31, %v13195_v34 }
 0x112   : > { %v2698_v24 = vsel %vm2697_vm6, %v2694_v20, %v2696_v19 }
 0x113   : > { %1567 = vmatmul.mubr.f32.vlgmr.msra.gmra.mrb[0].mxu0 %v1329_v22  ;;  %v2699_v22 = vsel %vm2697_vm6, %v2696_v19, %v2694_v20  ;;  %v2705_v26 = vmul.f32 %v13176_v18, %v2698_v24  ;;  %v13241_v19 = vld [vmem:[%s14329_s1 + $0x4] sm:$0xf]  ;;  %v13245_v24 = vcombine.high %v11939_v17, %v11939_v17 }
 0x114   : > { %1580 = vmatpush1.msra.mxu0 %v1346_v21  ;;  %1643 = vmatprep.mubr.f32.mxu0 %v14345_v1  ;;  %v13182_v21 = vcombine.high %v13176_v18, %v13176_v18 }
 0x115   : > { %1652 = vmatprep.subr.mxu0 %v1260_v10  ;;  %v2312_v10 = vand.u32 4294901760, %v2311_v6  ;;  %v2712_v28 = vsel %vm291_vm2, %v2705_v26, 0  ;;  %4690 = vrot.lane.b32.xlu1 %v13241_v19, %s12883_s12 }
 0x116   : > { %v2706_v23 = vmul.f32 %v13182_v21, %v2699_v22  ;;  %v2719_v33 = vand.u32 4294901760, %v2712_v28 }
 0x117   : > { %v2313_v2 = vsub.f32 %v2311_v6, %v2312_v10 }
 0x118   : > { %v2715_v25 = vsel %vm291_vm2, %v2706_v23, 0  ;;  %v2802_v37 = vsub.f32 %v2712_v28, %v2719_v33  ;;  %v12899_v23 = vmov 36  }
 0x119   : > { %v2717_v27 = vand.u32 4294901760, %v2715_v25  ;;  %12795 = vset.pattern.permute.xlu0 %v12899_v23 }
 0x11a   : > { %v2803_v40 = vand.u32 4294901760, %v2802_v37  ;;  %4658 = vperm.xlu0 %12795, %v12991_v0  }
 0x11b   : > { %1645 = vmatmul.mubr.f32.vlgmr.msra.gmra.mrb[0].mxu0 %v13114_v16  ;;  %v2796_v30 = vsub.f32 %v2715_v25, %v2717_v27 }
 0x11c   : > { %1654 = vmatpush1.msra.mxu0 %v1262_v15  ;;  %1717 = vmatprep.mubr.f32.mxu0 %v14345_v1  ;;  %v2314_v15 = vand.u32 4294901760, %v2313_v2 }
 0x11d   : > { %1752 = vmatprep.subr.mxu0 %v1751_v39  ;;  %v2797_v35 = vand.u32 4294901760, %v2796_v30 }
 0x123   : > { %1719 = vmatmul.mubr.f32.vlgmr.msra.gmra.mrb[0].mxu0 %v13114_v16  ;;  %v2297_v16 = vand.u32 4294901760, %v2296_v14 }
 0x124   : > { %1754 = vmatpush1.msra.mxu0 %v1753_v43  ;;  %1817 = vmatprep.mubr.f32.mxu0 %v14345_v1 }
 0x125   : > { %1834 = vmatprep.subr.mxu0 %v1833_v51  ;;  %v13213_v51 = vcombine.high %v13207_v48, %v13207_v48 }
 0x12b   : > { %1823 = vmatmul.mubr.f32.vlgmr.msra.gmra.mrb[0].mxu0 %v1822_v55 }
 0x12c   : > { %1840 = vmatpush1.msra.mxu0 %v1839_v54  ;;  %1903 = vmatprep.mubr.f32.mxu0 %v14345_v1 }
 0x12d   : > { %1913 = vmatprep.subr.mxu0 %v1830_v41  ;;  %v2786_v41 = vand.u32 4294901760, %v2785_v38 }
 0x133   : > { %1905 = vmatmul.mubr.f32.vlgmr.msra.gmra.mrb[0].mxu0 %v1818_v44 }
 0x134   : > { %1916 = vmatpush1.msra.mxu0 %v1836_v46  ;;  %1979 = vmatprep.mubr.f32.mxu0 %v14345_v1 }
 0x135   : > { %1989 = vmatprep.subr.mxu0 %v1751_v39 }
 0x13b   : > { %1982 = vmatmul.mubr.f32.vlgmr.msra.gmra.mrb[0].mxu0 %v1819_v47  ;;  %v3199_v47 = vpop.permute.xlu1 %3198 }
 0x13c   : > { %1991 = vmatpush1.msra.mxu0 %v1753_v43  ;;  %2054 = vmatprep.mubr.f32.mxu0 %v14345_v1 }
 0x13d   : > { %2067 = vmatprep.subr.mxu0 %v1831_v45 }
 0x143   : > { %2058 = vmatmul.mubr.f32.vlgmr.msra.gmra.mrb[0].mxu0 %v1820_v50  ;;  %v3187_v50 = vpop.permute.xlu1 %3186 }
 0x144   : > { %2071 = vmatpush1.msra.mxu0 %v1837_v49  ;;  %2134 = vmatprep.mubr.f32.mxu0 %v14345_v1  ;;  %v3185_v49 = vpop.permute.xlu0 %3184 }
 0x145   : > { %2143 = vmatprep.subr.mxu0 %v1751_v39  ;;  %v2798_v39 = vsub.f32 %v2796_v30, %v2797_v35  ;;  %v3190_v52 = vsel %vm3188_vm7, %v3187_v50, %v3185_v49  ;;  %v3189_v54 = vsel %vm3188_vm7, %v3185_v49, %v3187_v50 }
 0x146   : > { %v3197_v53 = vmul.f32 %v13213_v51, %v3190_v52  ;;  %v3196_v56 = vmul.f32 %v13207_v48, %v3189_v54  ;;  %v11940_v52 = vld [vmem:[%s14330_s2 + $0x40] sm:$0xff] }
 0x147   : > { %v2799_v42 = vand.u32 4294901760, %v2798_v39  ;;  %v3676_v22 = vpop.permute.xlu1 %3675 }
 0x148   : > { %v3206_v55 = vsel %vm291_vm2, %v3197_v53, 0  ;;  %v3203_v58 = vsel %vm291_vm2, %v3196_v56, 0 }
 0x149   : > { %v3210_v61 = vand.u32 4294901760, %v3203_v58 }
 0x14b   : > { %2136 = vmatmul.mubr.f32.vlgmr.msra.gmra.mrb[0].mxu0 %v1818_v44  ;;  %v4181_v50 = vpop.permute.xlu1 %4180 }
 0x14c   : > { %2145 = vmatpush1.msra.mxu0 %v1753_v43  ;;  %2208 = vmatprep.mubr.f32.mxu0 %v14345_v1  ;;  %v2804_v43 = vsub.f32 %v2802_v37, %v2803_v40 }
 0x14d   : > { %2227 = vmatprep.subr.mxu0 %v2226_v57 }
 0x14e   : > { %v2805_v45 = vand.u32 4294901760, %v2804_v43 }
 0x14f   : > { %v4169_v54 = vpop.permute.xlu1 %4168 }
 0x153   : > { %2210 = vmatmul.mubr.f32.vlgmr.msra.gmra.mrb[0].mxu0 %v1818_v44  ;;  %v2787_v44 = vsub.f32 %v2785_v38, %v2786_v41 }
 0x154   : > { %2229 = vmatpush1.msra.mxu0 %v2228_v62  ;;  %2292 = vmatprep.mubr.f32.mxu0 %v14345_v1 }
 0x155   : > { %2309 = vmatprep.subr.mxu0 %v2308_v13  ;;  %v2788_v46 = vand.u32 4294901760, %v2787_v44 }
 0x15b   : > { %2298 = vmatmul.mubr.f32.vlgmr.msra.gmra.mrb[0].mxu0 %v2297_v16  ;;  %v3690_v16 = vpop.permute.xlu0 %3689 }
 0x15c   : > { %2315 = vmatpush1.msra.mxu0 %v2314_v15  ;;  %2378 = vmatprep.mubr.f32.mxu0 %v14345_v1 }
 0x15d   : > { %2388 = vmatprep.subr.mxu0 %v2305_v60  ;;  %v3200_v60 = vsel %vm288_vm0, %v3199_v47, 0 }
 0x15f   : > { %v3678_v20 = vpop.permute.xlu0 %3677 }
 0x160   : > { %v3681_v25 = vsel %vm3679_vm8, %v3678_v20, %v3676_v22 }
 0x161   : > { %v3688_v26 = vmul.f32 %v13245_v24, %v3681_v25 }
 0x163   : > { %2380 = vmatmul.mubr.f32.vlgmr.msra.gmra.mrb[0].mxu0 %v13166_v4  ;;  %v3697_v28 = vsel %vm291_vm2, %v3688_v26, 0  ;;  %v4167_v53 = vpop.permute.xlu0 %4166  ;;  %v4666_v26 = vstv %s4663_s13 }
 0x164   : > { %2391 = vmatpush1.msra.mxu0 %v2311_v6  ;;  %2454 = vmatprep.mubr.f32.mxu0 %v14345_v1  ;;  %v3699_v0 = vand.u32 4294901760, %v3697_v28  ;;  %v4172_v56 = vsel %vm4170_vm9, %v4169_v54, %v4167_v53 }
 0x165   : > { %2464 = vmatprep.subr.mxu0 %v2226_v57 }
 0x16b   : > { %2457 = vmatmul.mubr.f32.vlgmr.msra.gmra.mrb[0].mxu0 %v2294_v7 }
 0x16c   : > { %2466 = vmatpush1.msra.mxu0 %v2228_v62  ;;  %2529 = vmatprep.mubr.f32.mxu0 %v14345_v1 }
 0x16d   : > { %2542 = vmatprep.subr.mxu0 %v2306_v5  ;;  %v3293_v5 = vsub.f32 %v3203_v58, %v3210_v61  ;;  %v4171_v58 = vsel %vm4170_vm9, %v4167_v53, %v4169_v54 }
 0x16f   : > { %v3294_v9 = vand.u32 4294901760, %v3293_v5 }
 0x171   : > { %v3295_v13 = vsub.f32 %v3293_v5, %v3294_v9 }
 0x173   : > { %2533 = vmatmul.mubr.f32.vlgmr.msra.gmra.mrb[0].mxu0 %v2295_v11  ;;  %v3296_v14 = vand.u32 4294901760, %v3295_v13 }
 0x174   : > { %2546 = vmatpush1.msra.mxu0 %v2312_v10  ;;  %2609 = vmatprep.mubr.f32.mxu0 %v14345_v1 }
 0x175   : > { %2618 = vmatprep.subr.mxu0 %v2226_v57  ;;  %v3208_v57 = vand.u32 4294901760, %v3206_v55 }
 0x177   : > { %v3287_v59 = vsub.f32 %v3206_v55, %v3208_v57  ;;  %v13274_v55 = vcombine.high %v11940_v52, %v11940_v52 }
 0x17b   : > { %2611 = vmatmul.mubr.f32.vlgmr.msra.gmra.mrb[0].mxu0 %v13166_v4 }
 0x17c   : > { %2620 = vmatpush1.msra.mxu0 %v2228_v62  ;;  %2683 = vmatprep.mubr.f32.mxu0 %v14345_v1  ;;  %v13226_v62 = vand.u32 4294901760, %v3200_v60 }
 0x17d   : > { %2718 = vmatprep.subr.mxu0 %v2717_v27 }
 0x17e   : > { %v3276_v6 = vsub.f32 %v3200_v60, %v13226_v62  ;;  %v4178_v60 = vmul.f32 %v11940_v52, %v4171_v58 }
 0x180   : > { %v3277_v10 = vand.u32 4294901760, %v3276_v6 }
 0x182   : > { %v3278_v2 = vsub.f32 %v3276_v6, %v3277_v10 }
 0x183   : > { %2685 = vmatmul.mubr.f32.vlgmr.msra.gmra.mrb[0].mxu0 %v13166_v4  ;;  %v3288_v4 = vand.u32 4294901760, %v3287_v59 }
 0x184   : > { %2720 = vmatpush1.msra.mxu0 %v2719_v33  ;;  %2783 = vmatprep.mubr.f32.mxu0 %v14345_v1  ;;  %v3279_v15 = vand.u32 4294901760, %v3278_v2 }
 0x185   : > { %2800 = vmatprep.subr.mxu0 %v2799_v42  ;;  %v3289_v7 = vsub.f32 %v3287_v59, %v3288_v4 }
 0x187   : > { %v3290_v11 = vand.u32 4294901760, %v3289_v7 }
 0x18b   : > { %2789 = vmatmul.mubr.f32.vlgmr.msra.gmra.mrb[0].mxu0 %v2788_v46 }
 0x18c   : > { %2806 = vmatpush1.msra.mxu0 %v2805_v45  ;;  %2869 = vmatprep.mubr.f32.mxu0 %v14345_v1 }
 0x18d   : > { %2879 = vmatprep.subr.mxu0 %v2796_v30 }
 0x193   : > { %2871 = vmatmul.mubr.f32.vlgmr.msra.gmra.mrb[0].mxu0 %v13195_v34 }
 0x194   : > { %2882 = vmatpush1.msra.mxu0 %v2802_v37  ;;  %2945 = vmatprep.mubr.f32.mxu0 %v14345_v1 }
 0x195   : > { %2955 = vmatprep.subr.mxu0 %v2717_v27 }
 0x199   : > { %v4659_v23 = vpop.permute.xlu0 %4658 }
 0x19b   : > { %2948 = vmatmul.mubr.f32.vlgmr.msra.gmra.mrb[0].mxu0 %v2785_v38 }
 0x19c   : > { %2957 = vmatpush1.msra.mxu0 %v2719_v33  ;;  %3020 = vmatprep.mubr.f32.mxu0 %v14345_v1 }
 0x19d   : > { %3033 = vmatprep.subr.mxu0 %v2797_v35 }
 0x1a3   : > { %3024 = vmatmul.mubr.f32.vlgmr.msra.gmra.mrb[0].mxu0 %v2786_v41 }
 0x1a4   : > { %3037 = vmatpush1.msra.mxu0 %v2803_v40  ;;  %3100 = vmatprep.mubr.f32.mxu0 %v14345_v1 }
 0x1a5   : > { %3109 = vmatprep.subr.mxu0 %v2717_v27  ;;  %v3680_v27 = vsel %vm3679_vm8, %v3676_v22, %v3678_v20 }
 0x1a6   : > { %v3687_v30 = vmul.f32 %v11939_v17, %v3680_v27 }
 0x1a8   : > { %v3694_v31 = vsel %vm291_vm2, %v3687_v30, 0 }
 0x1a9   : > { %v3701_v35 = vand.u32 4294901760, %v3694_v31 }
 0x1ab   : > { %3102 = vmatmul.mubr.f32.vlgmr.msra.gmra.mrb[0].mxu0 %v13195_v34  ;;  %v3784_v39 = vsub.f32 %v3694_v31, %v3701_v35 }
 0x1ac   : > { %3111 = vmatpush1.msra.mxu0 %v2719_v33  ;;  %3174 = vmatprep.mubr.f32.mxu0 %v14345_v1  ;;  %v3778_v33 = vsub.f32 %v3697_v28, %v3699_v0 }
 0x1ad   : > { %3209 = vmatprep.subr.mxu0 %v3208_v57  ;;  %v3785_v42 = vand.u32 4294901760, %v3784_v39 }
 0x1ae   : > { %v3779_v38 = vand.u32 4294901760, %v3778_v33 }
 0x1af   : > { %v3786_v45 = vsub.f32 %v3784_v39, %v3785_v42 }
 0x1b0   : > { %v3780_v41 = vsub.f32 %v3778_v33, %v3779_v38 }
 0x1b1   : > { %v3787_v47 = vand.u32 4294901760, %v3786_v45  ;;  %v12813_v45 = vld [vmem:[%s14330_s2 + $0x8] sm:$0xff] }
 0x1b2   : > { %v3781_v44 = vand.u32 4294901760, %v3780_v41 }
 0x1b3   : > { %3176 = vmatmul.mubr.f32.vlgmr.msra.gmra.mrb[0].mxu0 %v13195_v34  ;;  %v3691_v34 = vsel %vm288_vm0, %v3690_v16, 0 }
 0x1b4   : > { %3211 = vmatpush1.msra.mxu0 %v3210_v61  ;;  %3274 = vmatprep.mubr.f32.mxu0 %v14345_v1  ;;  %v13260_v37 = vand.u32 4294901760, %v3691_v34 }
 0x1b5   : > { %3291 = vmatprep.subr.mxu0 %v3290_v11 }
 0x1b6   : > { %v3767_v40 = vsub.f32 %v3691_v34, %v13260_v37 }
 0x1b8   : > { %v3768_v43 = vand.u32 4294901760, %v3767_v40 }
 0x1ba   : > { %v3769_v46 = vsub.f32 %v3767_v40, %v3768_v43 }
 0x1bb   : > { %3280 = vmatmul.mubr.f32.vlgmr.msra.gmra.mrb[0].mxu0 %v3279_v15 }
 0x1bc   : > { %3297 = vmatpush1.msra.mxu0 %v3296_v14  ;;  %3360 = vmatprep.mubr.f32.mxu0 %v14345_v1  ;;  %v3770_v49 = vand.u32 4294901760, %v3769_v46 }
 0x1bd   : > { %3370 = vmatprep.subr.mxu0 %v3287_v59 }
 0x1c3   : > { %3362 = vmatmul.mubr.f32.vlgmr.msra.gmra.mrb[0].mxu0 %v13226_v62 }
 0x1c4   : > { %3373 = vmatpush1.msra.mxu0 %v3293_v5  ;;  %3436 = vmatprep.mubr.f32.mxu0 %v14345_v1  ;;  %v4182_v5 = vsel %vm288_vm0, %v4181_v50, 0 }
 0x1c5   : > { %3446 = vmatprep.subr.mxu0 %v3208_v57  ;;  %v4257_v7 = vand.u32 4294901760, %v4182_v5 }
 0x1c7   : > { %v4258_v11 = vsub.f32 %v4182_v5, %v4257_v7 }
 0x1c9   : > { %v4259_v14 = vand.u32 4294901760, %v4258_v11 }
 0x1cb   : > { %3439 = vmatmul.mubr.f32.vlgmr.msra.gmra.mrb[0].mxu0 %v3276_v6  ;;  %v4260_v17 = vsub.f32 %v4258_v11, %v4259_v14 }
 0x1cc   : > { %3448 = vmatpush1.msra.mxu0 %v3210_v61  ;;  %3511 = vmatprep.mubr.f32.mxu0 %v14345_v1 }
 0x1cd   : > { %3524 = vmatprep.subr.mxu0 %v3288_v4  ;;  %v4261_v22 = vand.u32 4294901760, %v4260_v17 }
 0x1d3   : > { %3515 = vmatmul.mubr.f32.vlgmr.msra.gmra.mrb[0].mxu0 %v3277_v10 }
 0x1d4   : > { %3528 = vmatpush1.msra.mxu0 %v3294_v9  ;;  %3591 = vmatprep.mubr.f32.mxu0 %v14345_v1 }
 0x1d5   : > { %3600 = vmatprep.subr.mxu0 %v3208_v57  ;;  %v4179_v57 = vmul.f32 %v13274_v55, %v4172_v56 }
 0x1d7   : > { %v4188_v59 = vsel %vm291_vm2, %v4179_v57, 0 }
 0x1db   : > { %3593 = vmatmul.mubr.f32.vlgmr.msra.gmra.mrb[0].mxu0 %v13226_v62 }
 0x1dc   : > { %3602 = vmatpush1.msra.mxu0 %v3210_v61  ;;  %3665 = vmatprep.mubr.f32.mxu0 %v14345_v1  ;;  %v4190_v61 = vand.u32 4294901760, %v4188_v59 }
 0x1dd   : > { %3700 = vmatprep.subr.mxu0 %v3699_v0 }
 0x1de   : > { %v4269_v4 = vsub.f32 %v4188_v59, %v4190_v61 }
 0x1e0   : > { %v4270_v9 = vand.u32 4294901760, %v4269_v4 }
 0x1e2   : > { %v4271_v13 = vsub.f32 %v4269_v4, %v4270_v9 }
 0x1e3   : > { %3667 = vmatmul.mubr.f32.vlgmr.msra.gmra.mrb[0].mxu0 %v13226_v62  ;;  %v4185_v62 = vsel %vm291_vm2, %v4178_v60, 0 }
 0x1e4   : > { %3702 = vmatpush1.msra.mxu0 %v3701_v35  ;;  %3765 = vmatprep.mubr.f32.mxu0 %v14345_v1  ;;  %v4192_v6 = vand.u32 4294901760, %v4185_v62  ;;  %v4272_v15 = vand.u32 4294901760, %v4271_v13  ;;  %v12814_v13 = vld [vmem:[%s14330_s2] sm:$0xff] }
 0x1e5   : > { %3782 = vmatprep.subr.mxu0 %v3781_v44 }
 0x1e6   : > { %v4275_v10 = vsub.f32 %v4185_v62, %v4192_v6 }
 0x1e8   : > { %v4276_v2 = vand.u32 4294901760, %v4275_v10 }
 0x1ea   : > { %v4277_v16 = vsub.f32 %v4275_v10, %v4276_v2 }
 0x1eb   : > { %3771 = vmatmul.mubr.f32.vlgmr.msra.gmra.mrb[0].mxu0 %v3770_v49 }
 0x1ec   : > { %3788 = vmatpush1.msra.mxu0 %v3787_v47  ;;  %3851 = vmatprep.mubr.f32.mxu0 %v14345_v1  ;;  %v4278_v20 = vand.u32 4294901760, %v4277_v16 }
 0x1ed   : > { %3861 = vmatprep.subr.mxu0 %v3778_v33 }
 0x1f3   : > { %3853 = vmatmul.mubr.f32.vlgmr.msra.gmra.mrb[0].mxu0 %v13260_v37 }
 0x1f4   : > { %3864 = vmatpush1.msra.mxu0 %v3784_v39  ;;  %3927 = vmatprep.mubr.f32.mxu0 %v14345_v1 }
 0x1f5   : > { %3937 = vmatprep.subr.mxu0 %v3699_v0 }
 0x1fb   : > { %3930 = vmatmul.mubr.f32.vlgmr.msra.gmra.mrb[0].mxu0 %v3767_v40 }
 0x1fc   : > { %3939 = vmatpush1.msra.mxu0 %v3701_v35  ;;  %4002 = vmatprep.mubr.f32.mxu0 %v14345_v1 }
 0x1fd   : > { %4015 = vmatprep.subr.mxu0 %v3779_v38 }
 0x203   : > { %4006 = vmatmul.mubr.f32.vlgmr.msra.gmra.mrb[0].mxu0 %v3768_v43 }
 0x204   : > { %4019 = vmatpush1.msra.mxu0 %v3785_v42  ;;  %4082 = vmatprep.mubr.f32.mxu0 %v14345_v1 }
 0x205   : > { %4091 = vmatprep.subr.mxu0 %v3699_v0 }
 0x20b   : > { %4084 = vmatmul.mubr.f32.vlgmr.msra.gmra.mrb[0].mxu0 %v13260_v37 }
 0x20c   : > { %4093 = vmatpush1.msra.mxu0 %v3701_v35  ;;  %4156 = vmatprep.mubr.f32.mxu0 %v14345_v1  ;;  %v4691_v35 = vpop.permute.xlu1 %4690 }
 0x20d   : > { %4191 = vmatprep.subr.mxu0 %v4190_v61 }
 0x213   : > { %4158 = vmatmul.mubr.f32.vlgmr.msra.gmra.mrb[0].mxu0 %v13260_v37  ;;  %v4692_v37 = vsel %vm288_vm0, %v4691_v35, 0 }
 0x214   : > { %4193 = vmatpush1.msra.mxu0 %v4192_v6  ;;  %4256 = vmatprep.mubr.f32.mxu0 %v14345_v1  ;;  %v13347_v38 = vand.u32 4294901760, %v4692_v37 }
 0x215   : > { %4273 = vmatprep.subr.mxu0 %v4272_v15 }
 0x216   : > { %v4768_v39 = vsub.f32 %v4692_v37, %v13347_v38 }
 0x218   : > { %v4769_v40 = vand.u32 4294901760, %v4768_v39 }
 0x21a   : > { %v4770_v49 = vsub.f32 %v4768_v39, %v4769_v40 }
 0x21b   : > { %4262 = vmatmul.mubr.f32.vlgmr.msra.gmra.mrb[0].mxu0 %v4261_v22 }
 0x21c   : > { %4279 = vmatpush1.msra.mxu0 %v4278_v20  ;;  %4342 = vmatprep.mubr.f32.mxu0 %v14345_v1  ;;  %v4771_v58 = vand.u32 4294901760, %v4770_v49 }
 0x21d   : > { %4352 = vmatprep.subr.mxu0 %v4269_v4 }
 0x223   : > { %4344 = vmatmul.mubr.f32.vlgmr.msra.gmra.mrb[0].mxu0 %v4257_v7 }
 0x224   : > { %4355 = vmatpush1.msra.mxu0 %v4275_v10  ;;  %4418 = vmatprep.mubr.f32.mxu0 %v14345_v1 }
 0x225   : > { %4428 = vmatprep.subr.mxu0 %v4190_v61 }
 0x22b   : > { %4421 = vmatmul.mubr.f32.vlgmr.msra.gmra.mrb[0].mxu0 %v4258_v11 }
 0x22c   : > { %4430 = vmatpush1.msra.mxu0 %v4192_v6  ;;  %4493 = vmatprep.mubr.f32.mxu0 %v14345_v1 }
 0x22d   : > { %4506 = vmatprep.subr.mxu0 %v4270_v9 }
 0x233   : > { %4497 = vmatmul.mubr.f32.vlgmr.msra.gmra.mrb[0].mxu0 %v4259_v14 }
 0x234   : > { %4510 = vmatpush1.msra.mxu0 %v4276_v2  ;;  %4573 = vmatprep.mubr.f32.mxu0 %v14345_v1 }
 0x235   : > { %4582 = vmatprep.subr.mxu0 %v4190_v61 }
 0x23b   : > { %4575 = vmatmul.mubr.f32.vlgmr.msra.gmra.mrb[0].mxu0 %v4257_v7 }
 0x23c   : > { %4584 = vmatpush1.msra.mxu0 %v4192_v6  ;;  %4647 = vmatprep.mubr.f32.mxu0 %v14345_v1 }
 0x243   : > { %4649 = vmatmul.mubr.f32.vlgmr.msra.gmra.mrb[0].mxu0 %v4257_v7 }
 0x316   : > { %v4650_v25 = vpop.f32.mrb[0].mxu0 }
 0x317   : > { %v4661_v27 = vadd.f32 %v4659_v23, %v4650_v25  ;;  %v4652_v28 = vpop.f32.mrb[1].mxu0 }
 0x318   : > { %v4662_v30 = vadd.f32 %v4659_v23, %v4652_v28 }
 0x319   : > { %vm4664_vm10 = vcmp.gt.f32.partialorder %v4661_v27, 0.0  ;;  %v4667_v0 = vmul.f32 %v4666_v26, %v4661_v27 }
 0x31a   : > { %vm4665_vm11 = vcmp.gt.f32.partialorder %v4662_v30, 0.0  ;;  %v4668_v31 = vmul.f32 %v4666_v26, %v4662_v30 }
 0x31b   : > { %v13295_v33 = vsel %vm4664_vm10, %v4661_v27, %v4667_v0 }
 0x31c   : > { %v13297_v34 = vsel %vm4665_vm11, %v4662_v30, %v4668_v31  ;;  %4681 = vrot.lane.b32.xlu1 %v13295_v33, %s12885_s18 }
 0x31d   : > { %4683 = vrot.lane.b32.xlu0 %v13297_v34, %s12885_s18  ;;  %s14390_s18 = smov 113  }
 0x320   : > { %4673 = vrot.lane.b32.xlu1 %v13295_v33, %s12886_s19 }
 0x321   : > { %4675 = vrot.lane.b32.xlu0 %v13297_v34, %s12886_s19  ;;  %s14391_s19 = smov 100  }
 0x324   : > { %5646 = vrot.lane.b32.xlu1 %v13241_v19, %s12888_s21  ;;  %s14393_s21 = smov 111  }
 0x325   : > { %5638 = vrot.lane.b32.xlu0 %v13295_v33, %s12887_s20 }
 0x328   : > { %5640 = vrot.lane.b32.xlu1 %v13297_v34, %s12887_s20  ;;  %s14392_s20 = smov 96  }
 0x329   : > { %6131 = vrot.lane.b32.xlu0 %v13241_v19, %s12889_s22 }
 0x32c   : > { %6123 = vrot.lane.b32.xlu1 %v13295_v33, %s12890_s27 }
 0x32d   : > { %6125 = vrot.lane.b32.xlu0 %v13297_v34, %s12890_s27 }
 0x330   : > { %6608 = vrot.lane.b32.xlu1 %v13241_v19, %s12891_s29 }
 0x331   : > { %7093 = vrot.lane.b32.xlu0 %v13241_v19, %s12892_s30 }
 0x334   : > { %7085 = vrot.lane.b32.xlu1 %v13295_v33, %s12893_s10 }
 0x335   : > { %7087 = vrot.lane.b32.xlu0 %v13297_v34, %s12893_s10 }
 0x338   : > { %7578 = vrot.lane.b32.xlu1 %v13241_v19, %s12894_s16 }
 0x339   : > { %7570 = vrot.lane.b32.xlu0 %v13295_v33, %s14390_s18 }
 0x33c   : > { %7572 = vrot.lane.b32.xlu1 %v13297_v34, %s14390_s18 }
 0x33d   : > { %8063 = vrot.lane.b32.xlu0 %v13241_v19, %s14391_s19 }
 0x340   : > { %8055 = vrot.lane.b32.xlu1 %v13295_v33, %s12891_s29 }
 0x341   : > { %8057 = vrot.lane.b32.xlu0 %v13297_v34, %s12891_s29 }
 0x344   : > { %8548 = vrot.lane.b32.xlu1 %v13241_v19, %s14392_s20 }
 0x345   : > { %8540 = vrot.lane.b32.xlu0 %v13295_v33, %s14393_s21 }
 0x348   : > { %8542 = vrot.lane.b32.xlu1 %v13297_v34, %s14393_s21  ;;  %s11951_s21 = sshll.u32 %s12961_s5, 7  ;;  %s12901_s5 = smov [#allocation3]  }
 0x349   : > { %9026 = vperm.xlu0 %12795, %v13241_v19   ;;  %s14286_s16 = scalar_lea.hbm %s14334_s6, %s11951_s21  ;;  %s12823_s11 = sshll.u32 %s12901_s5, 4  ;;  %s12824_s11 = int_to_ptr.vmem [resolvable:$false] %s12823_s11 }
 0x34a   : > { %s12825_s15 = scalar_lea.vmem %s12824_s11, 256 }
 0x38e   : > { %v4682_v41 = vpop.permute.xlu1 %4681 }
 0x38f   : > { %v4684_v42 = vpop.permute.xlu0 %4683 }
 0x390   : > { %v4685_v43 = vsel %vm275_vm1, %v4682_v41, %v4684_v42  ;;  %v4686_v44 = vsel %vm275_vm1, %v4684_v42, %v4682_v41 }
 0x391   : > { %v4687_v46 = vmul.f32 %v12813_v45, %v4686_v44  ;;  %v4688_v47 = vmul.f32 %v4685_v43, %v13049_v12  ;;  %v12815_v44 = vld [vmem:[%s14330_s2 + $0x10] sm:$0xff] }
 0x392   : > { %v4674_v5 = vpop.permute.xlu1 %4673 }
 0x393   : > { %v4695_v50 = vsel %vm291_vm2, %v4687_v46, 0  ;;  %v4698_v52 = vsel %vm291_vm2, %v4688_v47, 0  ;;  %v4676_v6 = vpop.permute.xlu0 %4675 }
 0x394   : > { %v4700_v53 = vand.u32 4294901760, %v4698_v52  ;;  %v4702_v54 = vand.u32 4294901760, %v4695_v50  ;;  %v4677_v7 = vsel %vm262_vm3, %v4674_v5, %v4676_v6  ;;  %v4678_v10 = vsel %vm262_vm3, %v4676_v6, %v4674_v5 }
 0x395   : > { %v4680_v9 = vmul.f32 %v4677_v7, %v13065_v36  ;;  %v4679_v2 = vmul.f32 %v12814_v13, %v4678_v10  ;;  %v5165_v36 = vsel %vm288_vm0, %v13241_v19, 0 }
 0x396   : > { %v4779_v56 = vsub.f32 %v4698_v52, %v4700_v53  ;;  %v4785_v57 = vsub.f32 %v4695_v50, %v4702_v54  ;;  %4701 = vmatprep.subr.mxu1 %v4700_v53  ;;  %v5240_v17 = vand.u32 4294901760, %v5165_v36  ;;  %v5647_v37 = vpop.permute.xlu1 %5646 }
 0x397   : > { %4703 = vmatpush1.msra.mxu1 %v4702_v54  ;;  %v5171_v11 = vsel %vm291_vm2, %v4680_v9, 0  ;;  %v5168_v15 = vsel %vm291_vm2, %v4679_v2, 0 }
 0x398   : > { %4772 = vmatmul.mubr.f32.vlgmr.msra.gmra.mrb[0].mxu1 %v4771_v58  ;;  %v4780_v59 = vand.u32 4294901760, %v4779_v56  ;;  %v4786_v60 = vand.u32 4294901760, %v4785_v57  ;;  %v5173_v14 = vand.u32 4294901760, %v5171_v11  ;;  %v5175_v20 = vand.u32 4294901760, %v5168_v15 }
 0x399   : > { %4852 = vmatprep.mubr.f32.mxu1 %v14345_v1  ;;  %v5241_v23 = vsub.f32 %v5165_v36, %v5240_v17 }
 0x39a   : > { %v4781_v61 = vsub.f32 %v4779_v56, %v4780_v59  ;;  %v4787_v62 = vsub.f32 %v4785_v57, %v4786_v60  ;;  %v5252_v16 = vsub.f32 %v5171_v11, %v5173_v14  ;;  %v5258_v25 = vsub.f32 %v5168_v15, %v5175_v20 }
 0x39b   : > { %v5242_v27 = vand.u32 4294901760, %v5241_v23 }
 0x39c   : > { %v4782_v12 = vand.u32 4294901760, %v4781_v61  ;;  %v4788_v4 = vand.u32 4294901760, %v4787_v62  ;;  %v5253_v22 = vand.u32 4294901760, %v5252_v16  ;;  %v5259_v28 = vand.u32 4294901760, %v5258_v25 }
 0x39d   : > { %v5243_v30 = vsub.f32 %v5241_v23, %v5242_v27 }
 0x39e   : > { %4783 = vmatprep.subr.mxu1 %v4782_v12  ;;  %v5254_v26 = vsub.f32 %v5252_v16, %v5253_v22  ;;  %v5260_v0 = vsub.f32 %v5258_v25, %v5259_v28 }
 0x39f   : > { %4789 = vmatpush1.msra.mxu1 %v4788_v4  ;;  %v5244_v31 = vand.u32 4294901760, %v5243_v30 }
 0x3a0   : > { %4854 = vmatmul.mubr.f32.vlgmr.msra.gmra.mrb[0].mxu1 %v13347_v38  ;;  %4862 = vmatprep.subr.mxu1 %v4779_v56  ;;  %v5255_v19 = vand.u32 4294901760, %v5254_v26  ;;  %v5261_v35 = vand.u32 4294901760, %v5260_v0 }
 0x3a1   : > { %4865 = vmatpush1.msra.mxu1 %v4785_v57  ;;  %4928 = vmatprep.mubr.f32.mxu1 %v14345_v1 }
 0x3a2   : > { %4938 = vmatprep.subr.mxu1 %v4700_v53 }
 0x3a8   : > { %4931 = vmatmul.mubr.f32.vlgmr.msra.gmra.mrb[0].mxu1 %v4768_v39  ;;  %v5639_v39 = vpop.permute.xlu0 %5638 }
 0x3a9   : > { %4940 = vmatpush1.msra.mxu1 %v4702_v54  ;;  %5003 = vmatprep.mubr.f32.mxu1 %v14345_v1 }
 0x3aa   : > { %5016 = vmatprep.subr.mxu1 %v4780_v59 }
 0x3ac   : > { %v6132_v5 = vpop.permute.xlu0 %6131 }
 0x3ad   : > { %v6133_v36 = vsel %vm288_vm0, %v6132_v5, 0 }
 0x3b0   : > { %5007 = vmatmul.mubr.f32.vlgmr.msra.gmra.mrb[0].mxu1 %v4769_v40  ;;  %v6126_v7 = vpop.permute.xlu0 %6125 }
 0x3b1   : > { %5020 = vmatpush1.msra.mxu1 %v4786_v60  ;;  %5083 = vmatprep.mubr.f32.mxu1 %v14345_v1 }
 0x3b2   : > { %5092 = vmatprep.subr.mxu1 %v4700_v53 }
 0x3b8   : > { %5085 = vmatmul.mubr.f32.vlgmr.msra.gmra.mrb[0].mxu1 %v13347_v38 }
 0x3b9   : > { %5094 = vmatpush1.msra.mxu1 %v4702_v54  ;;  %5157 = vmatprep.mubr.f32.mxu1 %v14345_v1 }
 0x3ba   : > { %5174 = vmatprep.subr.mxu1 %v5173_v14 }
 0x3c0   : > { %5159 = vmatmul.mubr.f32.vlgmr.msra.gmra.mrb[0].mxu1 %v13347_v38  ;;  %v5641_v38 = vpop.permute.xlu1 %5640 }
 0x3c1   : > { %5176 = vmatpush1.msra.mxu1 %v5175_v20  ;;  %5239 = vmatprep.mubr.f32.mxu1 %v14345_v1  ;;  %v5642_v40 = vsel %vm1240_vm4, %v5639_v39, %v5641_v38  ;;  %v5643_v42 = vsel %vm1240_vm4, %v5641_v38, %v5639_v39  ;;  %v6613_v39 = vsel %vm291_vm2, %v13295_v33, 0 }
 0x3c2   : > { %5256 = vmatprep.subr.mxu1 %v5255_v19  ;;  %v5645_v41 = vmul.f32 %v5642_v40, %v13100_v63  ;;  %v5644_v45 = vmul.f32 %v12815_v44, %v5643_v42  ;;  %v5648_v63 = vsel %vm288_vm0, %v5647_v37, 0  ;;  %v6620_v42 = vand.u32 4294901760, %v6613_v39 }
 0x3c3   : > { %v5723_v50 = vand.u32 4294901760, %v5648_v63 }
 0x3c4   : > { %v5654_v43 = vsel %vm291_vm2, %v5645_v41, 0  ;;  %v5651_v47 = vsel %vm291_vm2, %v5644_v45, 0  ;;  %v6124_v6 = vpop.permute.xlu1 %6123  ;;  %v6703_v44 = vsub.f32 %v6613_v39, %v6620_v42 }
 0x3c5   : > { %v5656_v46 = vand.u32 4294901760, %v5654_v43  ;;  %v5658_v52 = vand.u32 4294901760, %v5651_v47  ;;  %v5724_v54 = vsub.f32 %v5648_v63, %v5723_v50  ;;  %v6127_v9 = vsel %vm1731_vm5, %v6124_v6, %v6126_v7 }
 0x3c6   : > { %v6130_v10 = vmul.f32 %v6127_v9, %v13134_v32  ;;  %v6128_v11 = vsel %vm1731_vm5, %v6126_v7, %v6124_v6  ;;  %v6704_v63 = vand.u32 4294901760, %v6703_v44 }
 0x3c7   : > { %v5735_v49 = vsub.f32 %v5654_v43, %v5656_v46  ;;  %v5741_v56 = vsub.f32 %v5651_v47, %v5658_v52  ;;  %v5725_v58 = vand.u32 4294901760, %v5724_v54  ;;  %v6129_v2 = vmul.f32 %v13128_v29, %v6128_v11 }
 0x3c8   : > { %5245 = vmatmul.mubr.f32.vlgmr.msra.gmra.mrb[0].mxu1 %v5244_v31  ;;  %v6139_v13 = vsel %vm291_vm2, %v6130_v10, 0  ;;  %v6616_v31 = vsel %vm291_vm2, %v13297_v34, 0  ;;  %v6609_v37 = vpop.permute.xlu1 %6608 }
 0x3c9   : > { %5262 = vmatpush1.msra.mxu1 %v5261_v35  ;;  %5325 = vmatprep.mubr.f32.mxu1 %v14345_v1  ;;  %v5736_v53 = vand.u32 4294901760, %v5735_v49  ;;  %v5742_v59 = vand.u32 4294901760, %v5741_v56  ;;  %v5726_v61 = vsub.f32 %v5724_v54, %v5725_v58  ;;  %v6136_v32 = vsel %vm291_vm2, %v6129_v2, 0 }
 0x3ca   : > { %5335 = vmatprep.subr.mxu1 %v5252_v16  ;;  %v6208_v16 = vand.u32 4294901760, %v6133_v36  ;;  %v6618_v35 = vand.u32 4294901760, %v6616_v31  ;;  %v6610_v38 = vsel %vm288_vm0, %v6609_v37, 0 }
 0x3cb   : > { %v5737_v57 = vsub.f32 %v5735_v49, %v5736_v53  ;;  %v5743_v62 = vsub.f32 %v5741_v56, %v5742_v59  ;;  %v5727_v12 = vand.u32 4294901760, %v5726_v61  ;;  %v6685_v41 = vand.u32 4294901760, %v6610_v38 }
 0x3cc   : > { %v6697_v40 = vsub.f32 %v6616_v31, %v6618_v35 }
 0x3cd   : > { %v5738_v60 = vand.u32 4294901760, %v5737_v57  ;;  %v5744_v4 = vand.u32 4294901760, %v5743_v62  ;;  %v6686_v34 = vsub.f32 %v6610_v38, %v6685_v41 }
 0x3ce   : > { %v6698_v43 = vand.u32 4294901760, %v6697_v40 }
 0x3d0   : > { %5327 = vmatmul.mubr.f32.vlgmr.msra.gmra.mrb[0].mxu1 %v5240_v17  ;;  %v6699_v45 = vsub.f32 %v6697_v40, %v6698_v43 }
 0x3d1   : > { %5338 = vmatpush1.msra.mxu1 %v5258_v25  ;;  %5401 = vmatprep.mubr.f32.mxu1 %v14345_v1 }
 0x3d2   : > { %5411 = vmatprep.subr.mxu1 %v5173_v14  ;;  %v6700_v47 = vand.u32 4294901760, %v6699_v45  ;;  %v9047_v45 = vld [vmem:[%s14331_s3 + $0x80] sm:$0xff] }
 0x3d8   : > { %5404 = vmatmul.mubr.f32.vlgmr.msra.gmra.mrb[0].mxu1 %v5241_v23 }
 0x3d9   : > { %5413 = vmatpush1.msra.mxu1 %v5175_v20  ;;  %5476 = vmatprep.mubr.f32.mxu1 %v14345_v1 }
 0x3da   : > { %5489 = vmatprep.subr.mxu1 %v5253_v22  ;;  %v6209_v22 = vsub.f32 %v6133_v36, %v6208_v16 }
 0x3dc   : > { %v6210_v25 = vand.u32 4294901760, %v6209_v22 }
 0x3e0   : > { %5480 = vmatmul.mubr.f32.vlgmr.msra.gmra.mrb[0].mxu1 %v5242_v27 }
 0x3e1   : > { %5493 = vmatpush1.msra.mxu1 %v5259_v28  ;;  %5556 = vmatprep.mubr.f32.mxu1 %v14345_v1  ;;  %v6211_v28 = vsub.f32 %v6209_v22, %v6210_v25 }
 0x3e2   : > { %5565 = vmatprep.subr.mxu1 %v5173_v14  ;;  %v6141_v14 = vand.u32 4294901760, %v6139_v13 }
 0x3e3   : > { %v6212_v30 = vand.u32 4294901760, %v6211_v28 }
 0x3e4   : > { %v6220_v15 = vsub.f32 %v6139_v13, %v6141_v14 }
 0x3e8   : > { %5558 = vmatmul.mubr.f32.vlgmr.msra.gmra.mrb[0].mxu1 %v5240_v17 }
 0x3e9   : > { %5567 = vmatpush1.msra.mxu1 %v5175_v20  ;;  %5630 = vmatprep.mubr.f32.mxu1 %v14345_v1  ;;  %v6221_v20 = vand.u32 4294901760, %v6220_v15 }
 0x3ea   : > { %5657 = vmatprep.subr.mxu1 %v5656_v46 }
 0x3eb   : > { %v6222_v23 = vsub.f32 %v6220_v15, %v6221_v20 }
 0x3ed   : > { %v6223_v27 = vand.u32 4294901760, %v6222_v23 }
 0x3f0   : > { %5632 = vmatmul.mubr.f32.vlgmr.msra.gmra.mrb[0].mxu1 %v5240_v17  ;;  %v6143_v17 = vand.u32 4294901760, %v6136_v32 }
 0x3f1   : > { %5659 = vmatpush1.msra.mxu1 %v5658_v52  ;;  %5722 = vmatprep.mubr.f32.mxu1 %v14345_v1 }
 0x3f2   : > { %5739 = vmatprep.subr.mxu1 %v5738_v60  ;;  %v6226_v29 = vsub.f32 %v6136_v32, %v6143_v17 }
 0x3f4   : > { %v6227_v26 = vand.u32 4294901760, %v6226_v29 }
 0x3f6   : > { %v6228_v19 = vsub.f32 %v6226_v29, %v6227_v26 }
 0x3f8   : > { %5728 = vmatmul.mubr.f32.vlgmr.msra.gmra.mrb[0].mxu1 %v5727_v12  ;;  %v6229_v0 = vand.u32 4294901760, %v6228_v19 }
 0x3f9   : > { %5745 = vmatpush1.msra.mxu1 %v5744_v4  ;;  %5808 = vmatprep.mubr.f32.mxu1 %v14345_v1 }
 0x3fa   : > { %5818 = vmatprep.subr.mxu1 %v5735_v49  ;;  %v6705_v49 = vsub.f32 %v6703_v44, %v6704_v63 }
 0x400   : > { %5810 = vmatmul.mubr.f32.vlgmr.msra.gmra.mrb[0].mxu1 %v5723_v50 }
 0x401   : > { %5821 = vmatpush1.msra.mxu1 %v5741_v56  ;;  %5884 = vmatprep.mubr.f32.mxu1 %v14345_v1 }
 0x402   : > { %5894 = vmatprep.subr.mxu1 %v5656_v46 }
 0x408   : > { %5887 = vmatmul.mubr.f32.vlgmr.msra.gmra.mrb[0].mxu1 %v5724_v54  ;;  %v7086_v54 = vpop.permute.xlu1 %7085 }
 0x409   : > { %5896 = vmatpush1.msra.mxu1 %v5658_v52  ;;  %5959 = vmatprep.mubr.f32.mxu1 %v14345_v1 }
 0x40a   : > { %5972 = vmatprep.subr.mxu1 %v5736_v53  ;;  %v7094_v53 = vpop.permute.xlu0 %7093 }
 0x40b   : > { %v7095_v12 = vsel %vm288_vm0, %v7094_v53, 0  ;;  %v9050_v53 = vld [vmem:[%s14331_s3 + $0x98] sm:$0xff] }
 0x40c   : > { %v7170_v5 = vand.u32 4294901760, %v7095_v12 }
 0x40e   : > { %v7088_v56 = vpop.permute.xlu0 %7087  ;;  %v7171_v9 = vsub.f32 %v7095_v12, %v7170_v5 }
 0x40f   : > { %v7090_v57 = vsel %vm2697_vm6, %v7088_v56, %v7086_v54 }
 0x410   : > { %5963 = vmatmul.mubr.f32.vlgmr.msra.gmra.mrb[0].mxu1 %v5725_v58  ;;  %v7092_v58 = vmul.f32 %v7090_v57, %v13182_v21  ;;  %v7172_v11 = vand.u32 4294901760, %v7171_v9 }
 0x411   : > { %5976 = vmatpush1.msra.mxu1 %v5742_v59  ;;  %6039 = vmatprep.mubr.f32.mxu1 %v14345_v1  ;;  %v7089_v59 = vsel %vm2697_vm6, %v7086_v54, %v7088_v56 }
 0x412   : > { %6048 = vmatprep.subr.mxu1 %v5656_v46  ;;  %v6687_v46 = vand.u32 4294901760, %v6686_v34  ;;  %v7101_v60 = vsel %vm291_vm2, %v7092_v58, 0  ;;  %v7091_v61 = vmul.f32 %v13176_v18, %v7089_v59  ;;  %v9121_v59 = vand.u32 4294901760, %v9050_v53 }
 0x413   : > { %v7103_v62 = vand.u32 4294901760, %v7101_v60 }
 0x414   : > { %v6688_v33 = vsub.f32 %v6686_v34, %v6687_v46  ;;  %v7098_v21 = vsel %vm291_vm2, %v7091_v61, 0  ;;  %v9034_v61 = vld [vmem:[%s14331_s3 + $0x18] sm:$0xff] }
 0x415   : > { %v7182_v4 = vsub.f32 %v7101_v60, %v7103_v62  ;;  %v7105_v6 = vand.u32 4294901760, %v7098_v21  ;;  %v9033_v60 = vld [vmem:[%s14331_s3 + $0x10] sm:$0xff] }
 0x417   : > { %v7183_v7 = vand.u32 4294901760, %v7182_v4  ;;  %v7188_v18 = vsub.f32 %v7098_v21, %v7105_v6 }
 0x418   : > { %6041 = vmatmul.mubr.f32.vlgmr.msra.gmra.mrb[0].mxu1 %v5723_v50 }
 0x419   : > { %6050 = vmatpush1.msra.mxu1 %v5658_v52  ;;  %6113 = vmatprep.mubr.f32.mxu1 %v14345_v1  ;;  %v6706_v52 = vand.u32 4294901760, %v6705_v49  ;;  %v7184_v10 = vsub.f32 %v7182_v4, %v7183_v7  ;;  %v7189_v13 = vand.u32 4294901760, %v7188_v18  ;;  %v9032_v49 = vld [vmem:[%s14331_s3 + $0x8] sm:$0xff] }
 0x41a   : > { %6142 = vmatprep.subr.mxu1 %v6141_v14  ;;  %v9067_v57 = vand.u32 4294901760, %v9032_v49 }
 0x41b   : > { %v7185_v2 = vand.u32 4294901760, %v7184_v10  ;;  %v7190_v36 = vsub.f32 %v7188_v18, %v7189_v13 }
 0x420   : > { %6115 = vmatmul.mubr.f32.vlgmr.msra.gmra.mrb[0].mxu1 %v5723_v50  ;;  %v6689_v50 = vand.u32 4294901760, %v6688_v33 }
 0x421   : > { %6144 = vmatpush1.msra.mxu1 %v6143_v17  ;;  %6207 = vmatprep.mubr.f32.mxu1 %v14345_v1 }
 0x422   : > { %6224 = vmatprep.subr.mxu1 %v6223_v27 }
 0x428   : > { %6213 = vmatmul.mubr.f32.vlgmr.msra.gmra.mrb[0].mxu1 %v6212_v30 }
 0x429   : > { %6230 = vmatpush1.msra.mxu1 %v6229_v0  ;;  %6293 = vmatprep.mubr.f32.mxu1 %v14345_v1 }
 0x42a   : > { %6303 = vmatprep.subr.mxu1 %v6220_v15  ;;  %v7191_v15 = vand.u32 4294901760, %v7190_v36  ;;  %v9035_v36 = vld [vmem:[%s14331_s3 + $0x20] sm:$0xff] }
 0x430   : > { %6295 = vmatmul.mubr.f32.vlgmr.msra.gmra.mrb[0].mxu1 %v6208_v16 }
 0x431   : > { %6306 = vmatpush1.msra.mxu1 %v6226_v29  ;;  %6369 = vmatprep.mubr.f32.mxu1 %v14345_v1 }
 0x432   : > { %6379 = vmatprep.subr.mxu1 %v6141_v14 }
 0x438   : > { %6372 = vmatmul.mubr.f32.vlgmr.msra.gmra.mrb[0].mxu1 %v6209_v22 }
 0x439   : > { %6381 = vmatpush1.msra.mxu1 %v6143_v17  ;;  %6444 = vmatprep.mubr.f32.mxu1 %v14345_v1 }
 0x43a   : > { %6457 = vmatprep.subr.mxu1 %v6221_v20  ;;  %v7571_v20 = vpop.permute.xlu0 %7570 }
 0x440   : > { %6448 = vmatmul.mubr.f32.vlgmr.msra.gmra.mrb[0].mxu1 %v6210_v25 }
 0x441   : > { %6461 = vmatpush1.msra.mxu1 %v6227_v26  ;;  %6524 = vmatprep.mubr.f32.mxu1 %v14345_v1 }
 0x442   : > { %6533 = vmatprep.subr.mxu1 %v6141_v14  ;;  %v7173_v14 = vsub.f32 %v7171_v9, %v7172_v11 }
 0x444   : > { %v7174_v32 = vand.u32 4294901760, %v7173_v14  ;;  %v9052_v14 = vld [vmem:[%s14331_s3 + $0xa8] sm:$0xff] }
 0x448   : > { %6526 = vmatmul.mubr.f32.vlgmr.msra.gmra.mrb[0].mxu1 %v6208_v16 }
 0x449   : > { %6535 = vmatpush1.msra.mxu1 %v6143_v17  ;;  %6598 = vmatprep.mubr.f32.mxu1 %v14345_v1 }
 0x44a   : > { %6619 = vmatprep.subr.mxu1 %v6618_v35 }
 0x450   : > { %6600 = vmatmul.mubr.f32.vlgmr.msra.gmra.mrb[0].mxu1 %v6208_v16  ;;  %v7579_v16 = vpop.permute.xlu1 %7578 }
 0x451   : > { %6621 = vmatpush1.msra.mxu1 %v6620_v42  ;;  %6684 = vmatprep.mubr.f32.mxu1 %v14345_v1 }
 0x452   : > { %6701 = vmatprep.subr.mxu1 %v6700_v47  ;;  %v9112_v47 = vand.u32 4294901760, %v9047_v45 }
 0x454   : > { %v7573_v17 = vpop.permute.xlu1 %7572 }
 0x455   : > { %v7575_v22 = vsel %vm3188_vm7, %v7573_v17, %v7571_v20  ;;  %v7574_v23 = vsel %vm3188_vm7, %v7571_v20, %v7573_v17 }
 0x456   : > { %v7577_v29 = vmul.f32 %v7575_v22, %v13213_v51  ;;  %v7576_v26 = vmul.f32 %v13207_v48, %v7574_v23  ;;  %v7580_v51 = vsel %vm288_vm0, %v7579_v16, 0  ;;  %v9053_v16 = vld [vmem:[%s14331_s3 + $0xb0] sm:$0xff]  ;;  %v9127_v22 = vand.u32 4294901760, %v9052_v14 }
 0x457   : > { %v13457_v30 = vand.u32 4294901760, %v7580_v51 }
 0x458   : > { %6690 = vmatmul.mubr.f32.vlgmr.msra.gmra.mrb[0].mxu1 %v6689_v50  ;;  %v7586_v25 = vsel %vm291_vm2, %v7577_v29, 0  ;;  %v7583_v28 = vsel %vm291_vm2, %v7576_v26, 0  ;;  %v8056_v54 = vpop.permute.xlu1 %8055  ;;  %v9054_v29 = vld [vmem:[%s14331_s3 + $0xb8] sm:$0xff]  ;;  %v9076_v26 = vand.u32 4294901760, %v9035_v36 }
 0x459   : > { %6707 = vmatpush1.msra.mxu1 %v6706_v52  ;;  %6770 = vmatprep.mubr.f32.mxu1 %v14345_v1  ;;  %v13449_v27 = vand.u32 4294901760, %v7586_v25  ;;  %v13459_v0 = vand.u32 4294901760, %v7583_v28  ;;  %v13464_v31 = vsub.f32 %v7580_v51, %v13457_v30  ;;  %v9049_v52 = vld [vmem:[%s14331_s3 + $0x90] sm:$0xff] }
 0x45a   : > { %6780 = vmatprep.subr.mxu1 %v6697_v40  ;;  %v9118_v58 = vand.u32 4294901760, %v9049_v52 }
 0x45b   : > { %v13455_v19 = vsub.f32 %v7586_v25, %v13449_v27  ;;  %v7657_v38 = vand.u32 4294901760, %v13464_v31 }
 0x45d   : > { %v7668_v48 = vand.u32 4294901760, %v13455_v19 }
 0x45f   : > { %v7669_v37 = vsub.f32 %v13455_v19, %v7668_v48 }
 0x460   : > { %6772 = vmatmul.mubr.f32.vlgmr.msra.gmra.mrb[0].mxu1 %v6685_v41 }
 0x461   : > { %6783 = vmatpush1.msra.mxu1 %v6703_v44  ;;  %6846 = vmatprep.mubr.f32.mxu1 %v14345_v1  ;;  %v7670_v40 = vand.u32 4294901760, %v7669_v37  ;;  %v13483_v44 = vpop.permute.xlu0 %8063  ;;  %v9130_v37 = vand.u32 4294901760, %v9053_v16 }
 0x462   : > { %6856 = vmatprep.subr.mxu1 %v6618_v35 }
 0x465   : > { %v8058_v56 = vpop.permute.xlu0 %8057 }
 0x466   : > { %v8059_v17 = vsel %vm3679_vm8, %v8056_v54, %v8058_v56 }
 0x468   : > { %6849 = vmatmul.mubr.f32.vlgmr.msra.gmra.mrb[0].mxu1 %v6686_v34 }
 0x469   : > { %6858 = vmatpush1.msra.mxu1 %v6620_v42  ;;  %6921 = vmatprep.mubr.f32.mxu1 %v14345_v1 }
 0x46a   : > { %6934 = vmatprep.subr.mxu1 %v6698_v43 }
 0x470   : > { %6925 = vmatmul.mubr.f32.vlgmr.msra.gmra.mrb[0].mxu1 %v6687_v46  ;;  %v9048_v46 = vld [vmem:[%s14331_s3 + $0x88] sm:$0xff] }
 0x471   : > { %6938 = vmatpush1.msra.mxu1 %v6704_v63  ;;  %7001 = vmatprep.mubr.f32.mxu1 %v14345_v1  ;;  %v9031_v63 = vld [vmem:[%s14331_s3] sm:$0xff]  ;;  %v9115_v33 = vand.u32 4294901760, %v9048_v46 }
 0x472   : > { %7010 = vmatprep.subr.mxu1 %v6618_v35  ;;  %v13468_v35 = vsub.f32 %v7583_v28, %v13459_v0  ;;  %v9064_v50 = vand.u32 4294901760, %v9031_v63  ;;  %v9037_v28 = vld [vmem:[%s14331_s3 + $0x30] sm:$0xff] }
 0x473   : > { %v13515_v12 = vsub.f32 %v9048_v46, %v9115_v33 }
 0x474   : > { %v7674_v39 = vand.u32 4294901760, %v13468_v35  ;;  %v13517_v21 = vsub.f32 %v9031_v63, %v9064_v50  ;;  %v13561_v25 = vpack.c.bf16 %v9067_v57, %v9064_v50  ;;  %v13586_v63 = vsub.f32 %v9053_v16, %v9130_v37 }
 0x478   : > { %7003 = vmatmul.mubr.f32.vlgmr.msra.gmra.mrb[0].mxu1 %v6685_v41 }
 0x479   : > { %7012 = vmatpush1.msra.mxu1 %v6620_v42  ;;  %7075 = vmatprep.mubr.f32.mxu1 %v14345_v1  ;;  %v7675_v42 = vsub.f32 %v13468_v35, %v7674_v39 }
 0x47a   : > { %7104 = vmatprep.subr.mxu1 %v7103_v62 }
 0x47b   : > { %v7676_v34 = vand.u32 4294901760, %v7675_v42  ;;  %v13574_v42 = vsub.f32 %v9035_v36, %v9076_v26 }
 0x480   : > { %7077 = vmatmul.mubr.f32.vlgmr.msra.gmra.mrb[0].mxu1 %v6685_v41  ;;  %v7658_v41 = vsub.f32 %v13464_v31, %v7657_v38 }
 0x481   : > { %7106 = vmatpush1.msra.mxu1 %v7105_v6  ;;  %7169 = vmatprep.mubr.f32.mxu1 %v14345_v1 }
 0x482   : > { %7186 = vmatprep.subr.mxu1 %v7185_v2  ;;  %v7659_v43 = vand.u32 4294901760, %v7658_v41  ;;  %v9051_v2 = vld [vmem:[%s14331_s3 + $0xa0] sm:$0xff] }
 0x488   : > { %7175 = vmatmul.mubr.f32.vlgmr.msra.gmra.mrb[0].mxu1 %v7174_v32  ;;  %v13547_v32 = vpack.c.bf16 %v9115_v33, %v9112_v47  ;;  %v9082_v33 = vand.u32 4294901760, %v9037_v28 }
 0x489   : > { %7192 = vmatpush1.msra.mxu1 %v7191_v15  ;;  %7255 = vmatprep.mubr.f32.mxu1 %v14345_v1  ;;  %v9124_v15 = vand.u32 4294901760, %v9051_v2 }
 0x48a   : > { %7265 = vmatprep.subr.mxu1 %v7182_v4  ;;  %v9070_v4 = vand.u32 4294901760, %v9033_v60  ;;  %12247 = vmatprep.subr.bf16.mxu0 %v13547_v32 }
 0x48b   : > { %v13559_v23 = vsub.f32 %v9051_v2, %v9124_v15  ;;  %12249 = vmatpush3.bf16.msra.mxu0 %v13561_v25 }
 0x48c   : > { %v13527_v10 = vsub.f32 %v9033_v60, %v9070_v4 }
 0x490   : > { %7257 = vmatmul.mubr.f32.vlgmr.msra.gmra.mrb[0].mxu1 %v7170_v5 }
 0x491   : > { %7268 = vmatpush1.msra.mxu1 %v7188_v18  ;;  %7331 = vmatprep.mubr.f32.mxu1 %v14345_v1  ;;  %v8060_v18 = vsel %vm3679_vm8, %v8058_v56, %v8056_v54  ;;  %v13613_v54 = vpack.c.bf16 %v9127_v22, %v9124_v15 }
 0x492   : > { %7341 = vmatprep.subr.mxu1 %v7103_v62 }
 0x498   : > { %7334 = vmatmul.mubr.f32.vlgmr.msra.gmra.mrb[0].mxu1 %v7171_v9  ;;  %v9073_v9 = vand.u32 4294901760, %v9034_v61 }
 0x499   : > { %7343 = vmatpush1.msra.mxu1 %v7105_v6  ;;  %7406 = vmatprep.mubr.f32.mxu1 %v14345_v1 }
 0x49a   : > { %7419 = vmatprep.subr.mxu1 %v7183_v7  ;;  %v13523_v7 = vsub.f32 %v9050_v53, %v9121_v59 }
 0x4a0   : > { %7410 = vmatmul.mubr.f32.vlgmr.msra.gmra.mrb[0].mxu1 %v7172_v11  ;;  %v13529_v11 = vsub.f32 %v9034_v61, %v9073_v9 }
 0x4a1   : > { %7423 = vmatpush1.msra.mxu1 %v7189_v13  ;;  %7486 = vmatprep.mubr.f32.mxu1 %v14345_v1  ;;  %v8062_v13 = vmul.f32 %v8060_v18, %v13245_v24  ;;  %v9036_v24 = vld [vmem:[%s14331_s3 + $0x28] sm:$0xff] }
 0x4a2   : > { %7495 = vmatprep.subr.mxu1 %v7103_v62  ;;  %v13513_v62 = vsub.f32 %v9047_v45, %v9112_v47  ;;  %v9079_v51 = vand.u32 4294901760, %v9036_v24  ;;  %v9038_v45 = vld [vmem:[%s14331_s3 + $0x38] sm:$0xff]  ;;  %v13588_v47 = vpack.c.bf16 %v9073_v9, %v9070_v4 }
 0x4a3   : > { %v8071_v20 = vsel %vm291_vm2, %v8062_v13, 0  ;;  %v9085_v50 = vand.u32 4294901760, %v9038_v45 }
 0x4a4   : > { %v13581_v46 = vand.u32 4294901760, %v8071_v20  ;;  %v13628_v4 = vpack.c.bf16 %v9079_v51, %v9076_v26 }
 0x4a6   : > { %v13603_v53 = vsub.f32 %v8071_v20, %v13581_v46 }
 0x4a8   : > { %7488 = vmatmul.mubr.f32.vlgmr.msra.gmra.mrb[0].mxu1 %v7170_v5  ;;  %v8153_v61 = vand.u32 4294901760, %v13603_v53 }
 0x4a9   : > { %7497 = vmatpush1.msra.mxu1 %v7105_v6  ;;  %7560 = vmatprep.mubr.f32.mxu1 %v14345_v1  ;;  %v13521_v6 = vsub.f32 %v9049_v52, %v9118_v58  ;;  %v13596_v52 = vsub.f32 %v9037_v28, %v9082_v33 }
 0x4aa   : > { %7589 = vmatprep.subr.mxu1 %v13449_v27  ;;  %v8154_v16 = vsub.f32 %v13603_v53, %v8153_v61 }
 0x4b0   : > { %7562 = vmatmul.mubr.f32.vlgmr.msra.gmra.mrb[0].mxu1 %v7170_v5  ;;  %v13519_v5 = vsub.f32 %v9032_v49, %v9067_v57  ;;  %v9040_v57 = vld [vmem:[%s14331_s3 + $0x48] sm:$0xff] }
 0x4b1   : > { %7591 = vmatpush1.msra.mxu1 %v13459_v0  ;;  %7654 = vmatprep.mubr.f32.mxu1 %v14345_v1  ;;  %v9091_v2 = vand.u32 4294901760, %v9040_v57 }
 0x4b2   : > { %7671 = vmatprep.subr.mxu1 %v7670_v40  ;;  %v12816_v40 = vld [vmem:[%s14330_s2 + $0x38] sm:$0xff] }
 0x4b3   : > { %v8061_v41 = vmul.f32 %v12816_v40, %v8059_v17  ;;  %v13648_v17 = vpack.c.bf16 %v9085_v50, %v9082_v33 }
 0x4b8   : > { %7660 = vmatmul.mubr.f32.vlgmr.msra.gmra.mrb[0].mxu1 %v7659_v43  ;;  %v13576_v43 = vsub.f32 %v9036_v24, %v9079_v51 }
 0x4b9   : > { %7677 = vmatpush1.msra.mxu1 %v7676_v34  ;;  %7740 = vmatprep.mubr.f32.mxu1 %v14345_v1  ;;  %v9133_v34 = vand.u32 4294901760, %v9054_v29 }
 0x4ba   : > { %7750 = vmatprep.subr.mxu1 %v13455_v19  ;;  %v13566_v19 = vsub.f32 %v9052_v14, %v9127_v22 }
 0x4bb   : > { %v13593_v49 = vsub.f32 %v9054_v29, %v9133_v34  ;;  %v13641_v24 = vpack.c.bf16 %v9133_v34, %v9130_v37  ;;  %v8155_v29 = vand.u32 4294901760, %v8154_v16 }
 0x4c0   : > { %7742 = vmatmul.mubr.f32.vlgmr.msra.gmra.mrb[0].mxu1 %v13457_v30 }
 0x4c1   : > { %7753 = vmatpush1.msra.mxu1 %v13468_v35  ;;  %7816 = vmatprep.mubr.f32.mxu1 %v14345_v1  ;;  %v13605_v35 = vsub.f32 %v9038_v45, %v9085_v50  ;;  %v8541_v45 = vpop.permute.xlu0 %8540 }
 0x4c2   : > { %7826 = vmatprep.subr.mxu1 %v13449_v27 }
 0x4c8   : > { %7819 = vmatmul.mubr.f32.vlgmr.msra.gmra.mrb[0].mxu1 %v13464_v31  ;;  %v8065_v31 = vsel %vm288_vm0, %v13483_v44, 0  ;;  %v9039_v44 = vld [vmem:[%s14331_s3 + $0x40] sm:$0xff] }
 0x4c9   : > { %7828 = vmatpush1.msra.mxu1 %v13459_v0  ;;  %7891 = vmatprep.mubr.f32.mxu1 %v14345_v1  ;;  %v13618_v56 = vand.u32 4294901760, %v8065_v31  ;;  %v9088_v9 = vand.u32 4294901760, %v9039_v44 }
 0x4ca   : > { %7904 = vmatprep.subr.mxu1 %v7668_v48  ;;  %v13568_v48 = vpack.c.bf16 %v9121_v59, %v9118_v58 }
 0x4cb   : > { %v8141_v14 = vsub.f32 %v8065_v31, %v13618_v56  ;;  %v13639_v36 = vsub.f32 %v9039_v44, %v9088_v9  ;;  %v13657_v37 = vpack.c.bf16 %v9091_v2, %v9088_v9 }
 0x4cc   : > { %12251 = vmatprep.subr.bf16.mxu0 %v13568_v48 }
 0x4cd   : > { %12253 = vmatpush3.bf16.msra.mxu0 %v13588_v47  ;;  %v8142_v20 = vand.u32 4294901760, %v8141_v14 }
 0x4ce   : > { %12255 = vmatprep.subr.bf16.mxu0 %v13613_v54 }
 0x4cf   : > { %v8143_v51 = vsub.f32 %v8141_v14, %v8142_v20 }
 0x4d0   : > { %7895 = vmatmul.mubr.f32.vlgmr.msra.gmra.mrb[0].mxu1 %v7657_v38  ;;  %v8068_v38 = vsel %vm291_vm2, %v8061_v41, 0 }
 0x4d1   : > { %7908 = vmatpush1.msra.mxu1 %v7674_v39  ;;  %7971 = vmatprep.mubr.f32.mxu1 %v14345_v1  ;;  %v9055_v39 = vld [vmem:[%s14331_s3 + $0xc0] sm:$0xff]  ;;  %v13623_v58 = vand.u32 4294901760, %v8068_v38  ;;  %v8144_v40 = vand.u32 4294901760, %v8143_v51  ;;  %v14354_v51 = vand.u32 4294901760, %v13517_v21 }
 0x4d2   : > { %7980 = vmatprep.subr.mxu1 %v13449_v27  ;;  %v9056_v27 = vld [vmem:[%s14331_s3 + $0xc8] sm:$0xff]  ;;  %v9136_v59 = vand.u32 4294901760, %v9055_v39  ;;  %12257 = vmatpush3.bf16.msra.mxu0 %v13628_v4 }
 0x4d3   : > { %v9139_v60 = vand.u32 4294901760, %v9056_v27  ;;  %v8158_v15 = vsub.f32 %v8068_v38, %v13623_v58  ;;  %12259 = vmatprep.subr.bf16.mxu0 %v13641_v24 }
 0x4d4   : > { %v13632_v18 = vsub.f32 %v9055_v39, %v9136_v59 }
 0x4d5   : > { %v13634_v13 = vsub.f32 %v9056_v27, %v9139_v60  ;;  %v8159_v22 = vand.u32 4294901760, %v8158_v15  ;;  %v13654_v26 = vpack.c.bf16 %v9139_v60, %v9136_v59 }
 0x4d6   : > { %14394 = vst [vmem:[#allocation7_spill] sm:$0xff] %v13632_v18  ;;  %12261 = vmatpush3.bf16.msra.mxu0 %v13648_v17 }
 0x4d7   : > { %14395 = vst [vmem:[#allocation8_spill] sm:$0xff] %v13634_v13  ;;  %v8160_v28 = vsub.f32 %v8158_v15, %v8159_v22  ;;  %12263 = vmatprep.subr.bf16.mxu0 %v13654_v26 }
 0x4d8   : > { %7973 = vmatmul.mubr.f32.vlgmr.msra.gmra.mrb[0].mxu1 %v13457_v30 }
 0x4d9   : > { %7982 = vmatpush1.msra.mxu1 %v13459_v0  ;;  %8045 = vmatprep.mubr.f32.mxu1 %v14345_v1  ;;  %v13644_v0 = vsub.f32 %v9040_v57, %v9091_v2  ;;  %v8161_v41 = vand.u32 4294901760, %v8160_v28  ;;  %v14353_v28 = vand.u32 4294901760, %v13519_v5 }
 0x4da   : > { %8074 = vmatprep.subr.mxu1 %v13581_v46  ;;  %12265 = vmatpush3.bf16.msra.mxu0 %v13657_v37 }
 0x4db   : > { %14396 = vst [vmem:[#allocation9_spill] sm:$0xff] %v13644_v0 }
 0x4e0   : > { %8047 = vmatmul.mubr.f32.vlgmr.msra.gmra.mrb[0].mxu1 %v13457_v30  ;;  %v8549_v30 = vpop.permute.xlu1 %8548 }
 0x4e1   : > { %8076 = vmatpush1.msra.mxu1 %v13623_v58  ;;  %8139 = vmatprep.mubr.f32.mxu1 %v14345_v1 }
 0x4e2   : > { %8156 = vmatprep.subr.mxu1 %v8155_v29  ;;  %v14355_v29 = vand.u32 4294901760, %v13515_v12 }
 0x4e4   : > { %v8543_v34 = vpop.permute.xlu1 %8542 }
 0x4e5   : > { %v8545_v33 = vsel %vm4170_vm9, %v8543_v34, %v8541_v45  ;;  %v8544_v31 = vsel %vm4170_vm9, %v8541_v45, %v8543_v34  ;;  %v14351_v34 = vand.u32 4294901760, %v13523_v7  ;;  %v14350_v45 = vand.u32 4294901760, %v13527_v10 }
 0x4e6   : > { %v8547_v50 = vmul.f32 %v8545_v33, %v13274_v55  ;;  %v8550_v55 = vsel %vm288_vm0, %v8549_v30, 0  ;;  %v14352_v30 = vand.u32 4294901760, %v13521_v6  ;;  %v14343_v33 = vand.u32 4294901760, %v13529_v11 }
 0x4e7   : > { %v13680_v57 = vand.u32 4294901760, %v8550_v55 }
 0x4e8   : > { %8145 = vmatmul.mubr.f32.vlgmr.msra.gmra.mrb[0].mxu1 %v8144_v40  ;;  %v8556_v38 = vsel %vm291_vm2, %v8547_v50, 0  ;;  %v9179_v50 = vsub.f32 %v13517_v21, %v14354_v51 }
 0x4e9   : > { %8162 = vmatpush1.msra.mxu1 %v8161_v41  ;;  %8225 = vmatprep.mubr.f32.mxu1 %v14345_v1  ;;  %v8558_v27 = vand.u32 4294901760, %v8556_v38  ;;  %v9298_v41 = vsub.f32 %v13515_v12, %v14355_v29 }
 0x4ea   : > { %8235 = vmatprep.subr.mxu1 %v13603_v53  ;;  %v12817_v53 = vld [vmem:[%s14330_s2 + $0x40] sm:$0xff] }
 0x4eb   : > { %v8546_v39 = vmul.f32 %v12817_v53, %v8544_v31  ;;  %v8637_v8 = vsub.f32 %v8556_v38, %v8558_v27  ;;  %v9186_v31 = vsub.f32 %v13519_v5, %v14353_v28  ;;  %v14342_v38 = vand.u32 4294901760, %v13559_v23 }
 0x4ec   : > { %v14341_v53 = vand.u32 4294901760, %v13566_v19 }
 0x4ed   : > { %v8553_v44 = vsel %vm291_vm2, %v8546_v39, 0  ;;  %v8638_v60 = vand.u32 4294901760, %v8637_v8 }
 0x4ee   : > { %v13682_v59 = vand.u32 4294901760, %v8553_v44 }
 0x4ef   : > { %v8639_v9 = vsub.f32 %v8637_v8, %v8638_v60 }
 0x4f0   : > { %8227 = vmatmul.mubr.f32.vlgmr.msra.gmra.mrb[0].mxu1 %v13618_v56 }
 0x4f1   : > { %8238 = vmatpush1.msra.mxu1 %v8158_v15  ;;  %8301 = vmatprep.mubr.f32.mxu1 %v14345_v1  ;;  %v8640_v15 = vand.u32 4294901760, %v8639_v9  ;;  %v9319_v9 = vsub.f32 %v13559_v23, %v14342_v38 }
 0x4f2   : > { %8311 = vmatprep.subr.mxu1 %v13581_v46 }
 0x4f8   : > { %8304 = vmatmul.mubr.f32.vlgmr.msra.gmra.mrb[0].mxu1 %v8141_v14 }
 0x4f9   : > { %8313 = vmatpush1.msra.mxu1 %v13623_v58  ;;  %8376 = vmatprep.mubr.f32.mxu1 %v14345_v1 }
 0x4fa   : > { %8389 = vmatprep.subr.mxu1 %v8153_v61  ;;  %v8626_v61 = vsub.f32 %v8550_v55, %v13680_v57  ;;  %v9299_v55 = vand.u32 4294901760, %v9298_v41  ;;  %v13745_v41 = vld [vmem:[%s14331_s3 + $0xd0] sm:$0xff] }
 0x4fc   : > { %v8627_v2 = vand.u32 4294901760, %v8626_v61 }
 0x4fe   : > { %v8628_v16 = vsub.f32 %v8626_v61, %v8627_v2 }
 0x500   : > { %8380 = vmatmul.mubr.f32.vlgmr.msra.gmra.mrb[0].mxu1 %v8142_v20  ;;  %v8629_v20 = vand.u32 4294901760, %v8628_v16  ;;  %v9187_v16 = vand.u32 4294901760, %v9186_v31 }
 0x501   : > { %8393 = vmatpush1.msra.mxu1 %v8159_v22  ;;  %8456 = vmatprep.mubr.f32.mxu1 %v14345_v1 }
 0x502   : > { %8465 = vmatprep.subr.mxu1 %v13581_v46  ;;  %v8643_v46 = vsub.f32 %v8553_v44, %v13682_v59  ;;  %v9305_v44 = vsub.f32 %v13521_v6, %v14352_v30 }
 0x504   : > { %v8644_v14 = vand.u32 4294901760, %v8643_v46 }
 0x508   : > { %8458 = vmatmul.mubr.f32.vlgmr.msra.gmra.mrb[0].mxu1 %v13618_v56 }
 0x509   : > { %8467 = vmatpush1.msra.mxu1 %v13623_v58  ;;  %8530 = vmatprep.mubr.f32.mxu1 %v14345_v1  ;;  %v8645_v58 = vsub.f32 %v8643_v46, %v8644_v14 }
 0x50a   : > { %8559 = vmatprep.subr.mxu1 %v8558_v27 }
 0x50b   : > { %v8646_v22 = vand.u32 4294901760, %v8645_v58  ;;  %v9306_v58 = vand.u32 4294901760, %v9305_v44  ;;  %v9320_v44 = vand.u32 4294901760, %v9319_v9 }
 0x510   : > { %8532 = vmatmul.mubr.f32.vlgmr.msra.gmra.mrb[0].mxu1 %v13618_v56  ;;  %v14356_v56 = vand.u32 4294901760, %v13513_v62 }
 0x511   : > { %8561 = vmatpush1.msra.mxu1 %v13682_v59  ;;  %8624 = vmatprep.mubr.f32.mxu1 %v14345_v1 }
 0x512   : > { %8641 = vmatprep.subr.mxu1 %v8640_v15  ;;  %v9291_v40 = vsub.f32 %v13513_v62, %v14356_v56 }
 0x514   : > { %v9292_v39 = vand.u32 4294901760, %v9291_v40  ;;  %v14348_v40 = vand.u32 4294901760, %v13593_v49 }
 0x516   : > { %v12278_v15 = vpack.c.bf16 %v9299_v55, %v9292_v39 }
 0x518   : > { %8630 = vmatmul.mubr.f32.vlgmr.msra.gmra.mrb[0].mxu1 %v8629_v20 }
 0x519   : > { %8647 = vmatpush1.msra.mxu1 %v8646_v22  ;;  %8710 = vmatprep.mubr.f32.mxu1 %v14345_v1  ;;  %v14347_v22 = vand.u32 4294901760, %v13586_v63 }
 0x51a   : > { %8720 = vmatprep.subr.mxu1 %v8637_v8  ;;  %v9312_v8 = vsub.f32 %v13523_v7, %v14351_v34 }
 0x51b   : > { %v9333_v9 = vsub.f32 %v13586_v63, %v14347_v22  ;;  %v14360_v22 = vand.u32 4294901760, %v13632_v18 }
 0x51c   : > { %v9313_v20 = vand.u32 4294901760, %v9312_v8 }
 0x520   : > { %8712 = vmatmul.mubr.f32.vlgmr.msra.gmra.mrb[0].mxu1 %v13680_v57 }
 0x521   : > { %8723 = vmatpush1.msra.mxu1 %v8643_v46  ;;  %8786 = vmatprep.mubr.f32.mxu1 %v14345_v1  ;;  %v9180_v46 = vand.u32 4294901760, %v9179_v50  ;;  %v13750_v50 = vld [vmem:[%s14331_s3 + $0xd8] sm:$0xff] }
 0x522   : > { %8796 = vmatprep.subr.mxu1 %v8558_v27 }
 0x523   : > { %v12280_v38 = vpack.c.bf16 %v9187_v16, %v9180_v46  ;;  %v9340_v46 = vsub.f32 %v13593_v49, %v14348_v40  ;;  %v13784_v16 = vld [vmem:[%s14331_s3 + $0xe0] sm:$0xff]  ;;  %v14362_v40 = vand.u32 4294901760, %v13634_v13 }
 0x525   : > { %v9341_v51 = vand.u32 4294901760, %v9340_v46 }
 0x528   : > { %8789 = vmatmul.mubr.f32.vlgmr.msra.gmra.mrb[0].mxu1 %v8626_v61  ;;  %v9200_v61 = vsub.f32 %v13529_v11, %v14343_v33  ;;  %v12282_v33 = vpack.c.bf16 %v9313_v20, %v9306_v58  ;;  %v13789_v58 = vld [vmem:[%s14331_s3 + $0xe8] sm:$0xff] }
 0x529   : > { %8798 = vmatpush1.msra.mxu1 %v13682_v59  ;;  %8861 = vmatprep.mubr.f32.mxu1 %v14345_v1 }
 0x52a   : > { %8874 = vmatprep.subr.mxu1 %v8638_v60  ;;  %v9193_v60 = vsub.f32 %v13527_v10, %v14350_v45  ;;  %v9201_v31 = vand.u32 4294901760, %v9200_v61  ;;  %v14357_v61 = vand.u32 4294901760, %v13750_v50 }
 0x52c   : > { %v9194_v39 = vand.u32 4294901760, %v9193_v60  ;;  %v14358_v60 = vand.u32 4294901760, %v13745_v41 }
 0x52e   : > { %v12284_v20 = vpack.c.bf16 %v9201_v31, %v9194_v39  ;;  %v13798_v28 = vsub.f32 %v13745_v41, %v14358_v60  ;;  %v13803_v39 = vsub.f32 %v13750_v50, %v14357_v61  ;;  %v14368_v31 = vand.u32 4294901760, %v13784_v16 }
 0x52f   : > { %v9347_v61 = vsub.f32 %v13632_v18, %v14360_v22  ;;  %v9354_v60 = vsub.f32 %v13634_v13, %v14362_v40  ;;  %v14399_v40 = vand.u32 4294901760, %v13639_v36  ;;  %v14400_v13 = vand.u32 4294901760, %v13644_v0 }
 0x530   : > { %8865 = vmatmul.mubr.f32.vlgmr.msra.gmra.mrb[0].mxu1 %v8627_v2  ;;  %v9326_v2 = vsub.f32 %v13566_v19, %v14341_v53  ;;  %14397 = vst [vmem:[#allocation10_spill] sm:$0xff] %v13798_v28 }
 0x531   : > { %8878 = vmatpush1.msra.mxu1 %v8644_v14  ;;  %8941 = vmatprep.mubr.f32.mxu1 %v14345_v1  ;;  %v14349_v14 = vand.u32 4294901760, %v13576_v43  ;;  %v9235_v46 = vsub.f32 %v13639_v36, %v14399_v40  ;;  %v14406_v40 = vand.u32 4294901760, %v13803_v39 }
 0x532   : > { %8950 = vmatprep.subr.mxu1 %v8558_v27  ;;  %v14344_v27 = vand.u32 4294901760, %v13574_v42  ;;  %v9327_v8 = vand.u32 4294901760, %v9326_v2  ;;  %v14359_v2 = vand.u32 4294901760, %v13596_v52 }
 0x533   : > { %v9214_v53 = vsub.f32 %v13576_v43, %v14349_v14 }
 0x534   : > { %v9207_v55 = vsub.f32 %v13574_v42, %v14344_v27  ;;  %v13766_v27 = vld [vmem:[%s14331_s3 + $0x50] sm:$0xff]  ;;  %v12286_v14 = vpack.c.bf16 %v9327_v8, %v9320_v44  ;;  %v13815_v44 = vld [vmem:[%s14331_s3 + $0x68] sm:$0xff]  ;;  %v9334_v8 = vand.u32 4294901760, %v9333_v9  ;;  %v9221_v29 = vsub.f32 %v13596_v52, %v14359_v2 }
 0x535   : > { %v9215_v45 = vand.u32 4294901760, %v9214_v53  ;;  %v14363_v34 = vand.u32 4294901760, %v13766_v27  ;;  %v13810_v53 = vld [vmem:[%s14331_s3 + $0x60] sm:$0xff] }
 0x536   : > { %v12290_v9 = vpack.c.bf16 %v9341_v51, %v9334_v8  ;;  %v9222_v22 = vand.u32 4294901760, %v9221_v29 }
 0x537   : > { %v13835_v2 = vsub.f32 %v13766_v27, %v14363_v34 }
 0x538   : > { %8943 = vmatmul.mubr.f32.vlgmr.msra.gmra.mrb[0].mxu1 %v13680_v57 }
 0x539   : > { %8952 = vmatpush1.msra.mxu1 %v13682_v59  ;;  %9015 = vmatprep.mubr.f32.mxu1 %v14345_v1  ;;  %v13771_v59 = vld [vmem:[%s14331_s3 + $0x58] sm:$0xff]  ;;  %v9208_v1 = vand.u32 4294901760, %v9207_v55  ;;  %v14371_v55 = vand.u32 4294901760, %v13789_v58 }
 0x53a   : > { %12279 = vmatprep.subr.bf16.mxu1 %v12278_v15  ;;  %v14361_v15 = vand.u32 4294901760, %v13605_v35  ;;  %v14364_v30 = vand.u32 4294901760, %v13771_v59 }
 0x53b   : > { %v13854_v34 = vsub.f32 %v13789_v58, %v14371_v55  ;;  %v9236_v55 = vand.u32 4294901760, %v9235_v46 }
 0x53c   : > { %v9228_v56 = vsub.f32 %v13605_v35, %v14361_v15  ;;  %v9348_v15 = vand.u32 4294901760, %v9347_v61 }
 0x53e   : > { %v9229_v3 = vand.u32 4294901760, %v9228_v56  ;;  %v14403_v56 = vand.u32 4294901760, %v13815_v44 }
 0x540   : > { %9017 = vmatmul.mubr.f32.vlgmr.msra.gmra.mrb[0].mxu1 %v13680_v57  ;;  %v13840_v57 = vsub.f32 %v13771_v59, %v14364_v30  ;;  %v12288_v30 = vpack.c.bf16 %v9215_v45, %v9208_v1  ;;  %v14401_v1 = vand.u32 4294901760, %v13810_v53  ;;  %v13872_v51 = vsub.f32 %v13815_v44, %v14403_v56 }
 0x541   : > { %12281 = vmatpush3.bf16.msra.mxu1 %v12280_v38  ;;  %v13849_v38 = vsub.f32 %v13784_v16, %v14368_v31  ;;  %v9242_v31 = vsub.f32 %v13644_v0, %v14400_v13  ;;  %v14405_v45 = vand.u32 4294901760, %v13798_v28  ;;  %v12292_v8 = vpack.c.bf16 %v9229_v3, %v9222_v22 }
 0x542   : > { %12283 = vmatprep.subr.bf16.mxu1 %v12282_v33  ;;  %v9355_v33 = vand.u32 4294901760, %v9354_v60  ;;  %v13867_v29 = vsub.f32 %v13810_v53, %v14401_v1  ;;  %14404 = vst [vmem:[#allocation13_spill] sm:$0xff] %v13872_v51  ;;  %v9368_v60 = vsub.f32 %v13803_v39, %v14406_v40  ;;  %v14407_v56 = vand.u32 4294901760, %v13835_v2 }
 0x543   : > { %14398 = vst [vmem:[#allocation11_spill] sm:$0xff] %v13849_v38  ;;  %v9361_v13 = vsub.f32 %v13798_v28, %v14405_v45  ;;  %v9243_v18 = vand.u32 4294901760, %v9242_v31  ;;  %v14408_v0 = vand.u32 4294901760, %v13840_v57  ;;  %v14379_v40 = vand.u32 4294901760, %v13872_v51 }
 0x544   : > { %14402 = vst [vmem:[#allocation12_spill] sm:$0xff] %v13867_v29  ;;  %v12294_v1 = vpack.c.bf16 %v9355_v33, %v9348_v15  ;;  %v14380_v28 = vand.u32 4294901760, %v13867_v29  ;;  %v14409_v3 = vand.u32 4294901760, %v13849_v38 }
 0x545   : > { %12285 = vmatpush3.bf16.msra.mxu1 %v12284_v20  ;;  %v9256_v45 = vsub.f32 %v13840_v57, %v14408_v0  ;;  %v9362_v61 = vand.u32 4294901760, %v9361_v13  ;;  %v9369_v20 = vand.u32 4294901760, %v9368_v60  ;;  %v12296_v31 = vpack.c.bf16 %v9243_v18, %v9236_v55 }
 0x546   : > { %12287 = vmatprep.subr.bf16.mxu1 %v12286_v14  ;;  %v9249_v14 = vsub.f32 %v13835_v2, %v14407_v56  ;;  %v9375_v22 = vsub.f32 %v13849_v38, %v14409_v3  ;;  %v9263_v0 = vsub.f32 %v13867_v29, %v14380_v28 }
 0x547   : > { %v9257_v33 = vand.u32 4294901760, %v9256_v45  ;;  %v12298_v13 = vpack.c.bf16 %v9369_v20, %v9362_v61  ;;  %v9062_v61 = vld [vmem:[%s14331_s3 + $0xf8] sm:$0xff] }
 0x548   : > { %v9250_v46 = vand.u32 4294901760, %v9249_v14  ;;  %v9376_v60 = vand.u32 4294901760, %v9375_v22  ;;  %v9264_v38 = vand.u32 4294901760, %v9263_v0  ;;  %v9045_v14 = vld [vmem:[%s14331_s3 + $0x70] sm:$0xff] }
 0x549   : > { %12289 = vmatpush3.bf16.msra.mxu1 %v12288_v30  ;;  %v14410_v30 = vand.u32 4294901760, %v13854_v34  ;;  %v9106_v45 = vand.u32 4294901760, %v9045_v14 }
 0x54a   : > { %12291 = vmatprep.subr.bf16.mxu1 %v12290_v9  ;;  %v9270_v9 = vsub.f32 %v13872_v51, %v14379_v40  ;;  %v12300_v3 = vpack.c.bf16 %v9257_v33, %v9250_v46  ;;  %v14414_v51 = vand.u32 4294901760, %v13771_v59  ;;  %v14418_v59 = vand.u32 4294901760, %v13815_v44 }
 0x54b   : > { %v9382_v15 = vsub.f32 %v13854_v34, %v14410_v30  ;;  %v13918_v46 = vsub.f32 %v9045_v14, %v9106_v45 }
 0x54c   : > { %v9271_v30 = vand.u32 4294901760, %v9270_v9 }
 0x54d   : > { %12293 = vmatpush3.bf16.msra.mxu1 %v12292_v8  ;;  %v9383_v56 = vand.u32 4294901760, %v9382_v15  ;;  %v9061_v8 = vld [vmem:[%s14331_s3 + $0xf0] sm:$0xff] }
 0x54e   : > { %12295 = vmatprep.subr.bf16.mxu1 %v12294_v1  ;;  %v12304_v55 = vpack.c.bf16 %v9271_v30, %v9264_v38  ;;  %v9154_v20 = vand.u32 4294901760, %v9061_v8  ;;  %v9157_v1 = vand.u32 4294901760, %v9062_v61  ;;  %v9046_v38 = vld [vmem:[%s14331_s3 + $0x78] sm:$0xff] }
 0x54f   : > { %v12302_v18 = vpack.c.bf16 %v9383_v56, %v9376_v60  ;;  %v9109_v22 = vand.u32 4294901760, %v9046_v38 }
 0x550   : > { %v13914_v15 = vsub.f32 %v9061_v8, %v9154_v20 }
 0x551   : > { %12297 = vmatpush3.bf16.msra.mxu1 %v12296_v31  ;;  %v13916_v31 = vsub.f32 %v9062_v61, %v9157_v1  ;;  %v13920_v33 = vsub.f32 %v9046_v38, %v9109_v22  ;;  %v14411_v38 = vand.u32 4294901760, %v13745_v41  ;;  %v14415_v41 = vand.u32 4294901760, %v13784_v16 }
 0x552   : > { %12299 = vmatprep.subr.bf16.mxu1 %v12298_v13  ;;  %v14378_v0 = vand.u32 4294901760, %v13914_v15  ;;  %v14384_v13 = vand.u32 4294901760, %v13918_v46  ;;  %v13970_v16 = vpack.c.bf16 %v9109_v22, %v9106_v45 }
 0x553   : > { %v14381_v9 = vand.u32 4294901760, %v13916_v31  ;;  %v9283_v60 = vand.u32 4294901760, %v13920_v33  ;;  %v12340_v44 = vpack.c.bf16 %v13920_v33, %v13918_v46 }
 0x554   : > { %v9389_v56 = vsub.f32 %v13914_v15, %v14378_v0  ;;  %v9277_v30 = vsub.f32 %v13918_v46, %v14384_v13  ;;  %v14412_v0 = vand.u32 4294901760, %v13750_v50  ;;  %v14416_v50 = vand.u32 4294901760, %v13789_v58 }
 0x555   : > { %12301 = vmatpush3.bf16.msra.mxu1 %v12300_v3  ;;  %v9396_v3 = vsub.f32 %v13916_v31, %v14381_v9  ;;  %v14413_v9 = vand.u32 4294901760, %v13766_v27  ;;  %v14417_v27 = vand.u32 4294901760, %v13810_v53  ;;  %v12310_v58 = vpack.c.bf16 %v13515_v12, %v13513_v62 }
 0x556   : > { %12303 = vmatprep.subr.bf16.mxu1 %v12302_v18  ;;  %v9284_v18 = vsub.f32 %v13920_v33, %v9283_v60  ;;  %v9278_v61 = vand.u32 4294901760, %v9277_v30  ;;  %v13942_v40 = vpack.c.bf16 %v14412_v0, %v14411_v38  ;;  %v13956_v0 = vpack.c.bf16 %v14416_v50, %v14415_v41 }
 0x557   : > { %v9397_v8 = vand.u32 4294901760, %v9396_v3  ;;  %v13948_v13 = vpack.c.bf16 %v14414_v51, %v14413_v9  ;;  %v13963_v51 = vpack.c.bf16 %v14418_v59, %v14417_v27  ;;  %v12338_v53 = vpack.c.bf16 %v13916_v31, %v13914_v15 }
 0x558   : > { %v9285_v14 = vand.u32 4294901760, %v9284_v18  ;;  %12267 = vmatprep.subr.bf16.mxu0 %v13942_v40  ;;  %v12312_v38 = vpack.c.bf16 %v13519_v5, %v13517_v21  ;;  %v12314_v50 = vpack.c.bf16 %v13523_v7, %v13521_v6  ;;  %v12316_v27 = vpack.c.bf16 %v13529_v11, %v13527_v10 }
 0x559   : > { %12305 = vmatpush3.bf16.msra.mxu1 %v12304_v55  ;;  %v9390_v55 = vand.u32 4294901760, %v9389_v56  ;;  %12269 = vmatpush3.bf16.msra.mxu0 %v13948_v13  ;;  %v12318_v59 = vpack.c.bf16 %v13566_v19, %v13559_v23 }
 0x55a   : > { %v12308_v29 = vpack.c.bf16 %v9285_v14, %v9278_v61  ;;  %12271 = vmatprep.subr.bf16.mxu0 %v13956_v0 }
 0x55b   : > { %v12306_v28 = vpack.c.bf16 %v9397_v8, %v9390_v55 }
 0x55d   : > { %12307 = vmatprep.subr.bf16.mxu1 %v12306_v28  ;;  %v13966_v28 = vpack.c.bf16 %v9157_v1, %v9154_v20  ;;  %12273 = vmatpush3.bf16.msra.mxu0 %v13963_v51 }
 0x55e   : > { %12309 = vmatpush3.bf16.msra.mxu1 %v12308_v29  ;;  %v9027_v29 = vpop.permute.xlu0 %9026 }
 0x55f   : > { %12343 = vmatprep.subr.bf16.mxu1 %v13547_v32  ;;  %12275 = vmatprep.subr.bf16.mxu0 %v13966_v28 }
 0x561   : > { %12277 = vmatpush3.bf16.msra.mxu0 %v13970_v16 }
 0x562   : > { %12311 = vmatprep.subr.bf16.mxu0 %v12310_v58  ;;  %v12320_v58 = vpack.c.bf16 %v13576_v43, %v13574_v42 }
 0x613   : > { %v9018_v20 = vpop.f32.mrb[0].mxu1 }
 0x614   : > { %v13979_v1 = vadd.f32 %v9027_v29, %v9018_v20  ;;  %v9020_v9 = vpop.f32.mrb[1].mxu1  ;;  %v12324_v20 = vpack.c.bf16 %v13605_v35, %v13596_v52 }
 0x615   : > { %v13981_v56 = vadd.f32 %v9027_v29, %v9020_v9  ;;  %v12322_v29 = vpack.c.bf16 %v13593_v49, %v13586_v63  ;;  %v14419_v9 = vld [vmem:[#allocation7_spill] sm:$0xff] }
 0x616   : > { %v13984_v45 = vand.u32 4294901760, %v13979_v1 }
 0x617   : > { %v13987_v22 = vand.u32 4294901760, %v13981_v56 }
 0x618   : > { %v13991_v3 = vsub.f32 %v13979_v1, %v13984_v45 }
 0x619   : > { %v9160_v30 = vsub.f32 %v13981_v56, %v13987_v22  ;;  %9400 = vmatprep.mubr.f32.mxu1 %v13987_v22 }
 0x61a   : > { %v9167_v18 = vand.u32 4294901760, %v13991_v3  ;;  %9402 = vmatmul.mubr.f32.vlgmr.msra.gmra.mrb[2].mxu1 %v13984_v45 }
 0x61b   : > { %12345 = vmatpush3.bf16.msra.mxu1 %v13561_v25  ;;  %v9161_v55 = vand.u32 4294901760, %v9160_v30 }
 0x61c   : > { %12347 = vmatprep.subr.bf16.mxu1 %v13568_v48  ;;  %v9168_v8 = vsub.f32 %v13991_v3, %v9167_v18 }
 0x61d   : > { %9644 = vmatprep.mubr.f32.mxu1 %v9161_v55  ;;  %v9162_v61 = vsub.f32 %v9160_v30, %v9161_v55 }
 0x61e   : > { %v9169_v41 = vand.u32 4294901760, %v9168_v8  ;;  %v14421_v8 = vld [vmem:[#allocation9_spill] sm:$0xff] }
 0x61f   : > { %12349 = vmatpush3.bf16.msra.mxu1 %v13588_v47  ;;  %v9163_v14 = vand.u32 4294901760, %v9162_v61  ;;  %v12328_v61 = vpack.c.bf16 %v14421_v8, %v13639_v36 }
 0x620   : > { %12351 = vmatprep.subr.bf16.mxu1 %v13613_v54 }
 0x621   : > { %9164 = vmatprep.mubr.f32.mxu0 %v9163_v14  ;;  %v14422_v14 = vld [vmem:[#allocation10_spill] sm:$0xff] }
 0x622   : > { %9170 = vmatmul.mubr.f32.vlgmr.msra.gmra.mrb[2].mxu0 %v9169_v41  ;;  %v12332_v41 = vpack.c.bf16 %v13840_v57, %v13835_v2 }
 0x623   : > { %12313 = vmatpush3.bf16.msra.mxu0 %v12312_v38  ;;  %12353 = vmatpush3.bf16.msra.mxu1 %v13628_v4  ;;  %v12330_v38 = vpack.c.bf16 %v13803_v39, %v14422_v14 }
 0x624   : > { %9537 = vmatprep.mubr.f32.mxu0 %v9160_v30  ;;  %12315 = vmatprep.subr.bf16.mxu0 %v12314_v50  ;;  %v14420_v30 = vld [vmem:[#allocation8_spill] sm:$0xff]  ;;  %v14423_v50 = vld [vmem:[#allocation11_spill] sm:$0xff] }
 0x625   : > { %12355 = vmatprep.subr.bf16.mxu1 %v13641_v24  ;;  %v12326_v55 = vpack.c.bf16 %v14420_v30, %v14419_v9 }
 0x627   : > { %12317 = vmatpush3.bf16.msra.mxu0 %v12316_v27  ;;  %12357 = vmatpush3.bf16.msra.mxu1 %v13648_v17  ;;  %v12334_v27 = vpack.c.bf16 %v13854_v34, %v14423_v50 }
 0x628   : > { %12319 = vmatprep.subr.bf16.mxu0 %v12318_v59  ;;  %12359 = vmatprep.subr.bf16.mxu1 %v13654_v26  ;;  %v14424_v59 = vld [vmem:[#allocation12_spill] sm:$0xff] }
 0x62b   : > { %12321 = vmatpush3.bf16.msra.mxu0 %v12320_v58  ;;  %12361 = vmatpush3.bf16.msra.mxu1 %v13657_v37  ;;  %v14425_v58 = vld [vmem:[#allocation13_spill] sm:$0xff] }
 0x62c   : > { %12323 = vmatprep.subr.bf16.mxu0 %v12322_v29  ;;  %12363 = vmatprep.subr.bf16.mxu1 %v13942_v40  ;;  %v12336_v29 = vpack.c.bf16 %v14425_v58, %v14424_v59 }
 0x62f   : > { %12325 = vmatpush3.bf16.msra.mxu0 %v12324_v20  ;;  %12365 = vmatpush3.bf16.msra.mxu1 %v13948_v13  ;;  %v14426_v20 = vand.u32 4294901760, %v13513_v62  ;;  %v14430_v62 = vand.u32 4294901760, %v13521_v6  ;;  %v14435_v6 = vand.u32 4294901760, %v13566_v19  ;;  %v14441_v19 = vand.u32 4294901760, %v13605_v35 }
 0x630   : > { %12327 = vmatprep.subr.bf16.mxu0 %v12326_v55  ;;  %12367 = vmatprep.subr.bf16.mxu1 %v13956_v0  ;;  %v14427_v55 = vand.u32 4294901760, %v13515_v12  ;;  %v14431_v12 = vand.u32 4294901760, %v13523_v7  ;;  %v14436_v7 = vand.u32 4294901760, %v13574_v42  ;;  %v14442_v42 = vand.u32 4294901760, %v14419_v9 }
 0x631   : > { %v14447_v35 = vand.u32 4294901760, %v13803_v39  ;;  %v14452_v39 = vand.u32 4294901760, %v14424_v59 }
 0x633   : > { %12329 = vmatpush3.bf16.msra.mxu0 %v12328_v61  ;;  %12369 = vmatpush3.bf16.msra.mxu1 %v13963_v51  ;;  %v12374_v61 = vpack.c.bf16 %v14427_v55, %v14426_v20 }
 0x634   : > { %12331 = vmatprep.subr.bf16.mxu0 %v12330_v38  ;;  %12371 = vmatprep.subr.bf16.mxu1 %v13966_v28 }
 0x637   : > { %12333 = vmatpush3.bf16.msra.mxu0 %v12332_v41  ;;  %12373 = vmatpush3.bf16.msra.mxu1 %v13970_v16 }
 0x638   : > { %12335 = vmatprep.subr.bf16.mxu0 %v12334_v27  ;;  %12407 = vmatprep.subr.bf16.mxu1 %v13547_v32  ;;  %v14428_v32 = vand.u32 4294901760, %v13517_v21  ;;  %v14433_v21 = vand.u32 4294901760, %v13529_v11  ;;  %v14439_v11 = vand.u32 4294901760, %v13593_v49  ;;  %v14445_v49 = vand.u32 4294901760, %v14421_v8 }
 0x63a   : > { %9648 = vmatmul.mubr.f32.vlgmr.msra.gmra.mrb[4].mxu1 %v9167_v18 }
 0x63b   : > { %12337 = vmatpush3.bf16.msra.mxu0 %v12336_v29  ;;  %12409 = vmatpush3.bf16.msra.mxu1 %v13561_v25  ;;  %v14429_v25 = vand.u32 4294901760, %v13519_v5  ;;  %v14434_v5 = vand.u32 4294901760, %v13559_v23  ;;  %v14440_v23 = vand.u32 4294901760, %v13596_v52  ;;  %v14446_v52 = vand.u32 4294901760, %v14422_v14 }
 0x63c   : > { %9918 = vmatprep.mubr.f32.mxu1 %v13987_v22  ;;  %12339 = vmatprep.subr.bf16.mxu0 %v12338_v53  ;;  %v12378_v53 = vpack.c.bf16 %v14431_v12, %v14430_v62  ;;  %v14456_v14 = vmov 0.0  }
 0x63d   : > { %12411 = vmatprep.subr.bf16.mxu1 %v13568_v48  ;;  %v12376_v18 = vpack.c.bf16 %v14429_v25, %v14428_v32  ;;  %v14432_v48 = vand.u32 4294901760, %v13527_v10  ;;  %v14438_v10 = vand.u32 4294901760, %v13586_v63  ;;  %v14444_v63 = vand.u32 4294901760, %v13639_v36 }
 0x63e   : > { %v14450_v36 = vand.u32 4294901760, %v14423_v50 }
 0x63f   : > { %12341 = vmatpush3.bf16.msra.mxu0 %v12340_v44  ;;  %12413 = vmatpush3.bf16.msra.mxu1 %v13588_v47  ;;  %v12380_v47 = vpack.c.bf16 %v14433_v21, %v14432_v48  ;;  %v14437_v44 = vand.u32 4294901760, %v13576_v43  ;;  %v14443_v43 = vand.u32 4294901760, %v14420_v30 }
 0x640   : > { %12375 = vmatprep.subr.bf16.mxu0 %v12374_v61  ;;  %12415 = vmatprep.subr.bf16.mxu1 %v13613_v54  ;;  %v12382_v54 = vpack.c.bf16 %v14435_v6, %v14434_v5 }
 0x642   : > { %9540 = vmatmul.mubr.f32.vlgmr.msra.gmra.mrb[4].mxu0 %v13991_v3  ;;  %v14448_v3 = vand.u32 4294901760, %v13835_v2  ;;  %v14454_v2 = vand.u32 4294901760, %v13914_v15  ;;  %v11942_v15 = vld [vmem:[%s14329_s1 + $0x8] sm:$0xf] }
 0x643   : > { %12377 = vmatpush3.bf16.msra.mxu0 %v12376_v18  ;;  %9814 = vmatprep.mubr.f32.mxu0 %v13987_v22  ;;  %v12384_v22 = vpack.c.bf16 %v14437_v44, %v14436_v7  ;;  %v9928_v61 = vsel %vm288_vm0, %v11942_v15, 0 }
 0x644   : > { %12417 = vmatpush3.bf16.msra.mxu1 %v13628_v4  ;;  %12379 = vmatprep.subr.bf16.mxu0 %v12378_v53  ;;  %v12386_v4 = vpack.c.bf16 %v14439_v11, %v14438_v10  ;;  %v9999_v32 = vand.u32 4294901760, %v9928_v61 }
 0x645   : > { %12419 = vmatprep.subr.bf16.mxu1 %v13641_v24  ;;  %v12388_v24 = vpack.c.bf16 %v14441_v19, %v14440_v23  ;;  %10385 = vrot.lane.b32.xlu1 %v11942_v15, %s12883_s12 }
 0x646   : > { %v10000_v12 = vsub.f32 %v9928_v61, %v9999_v32 }
 0x647   : > { %12381 = vmatpush3.bf16.msra.mxu0 %v12380_v47 }
 0x648   : > { %12421 = vmatpush3.bf16.msra.mxu1 %v13648_v17  ;;  %12383 = vmatprep.subr.bf16.mxu0 %v12382_v54  ;;  %v12390_v17 = vpack.c.bf16 %v14443_v43, %v14442_v42  ;;  %v10001_v48 = vand.u32 4294901760, %v10000_v12 }
 0x649   : > { %12423 = vmatprep.subr.bf16.mxu1 %v13654_v26  ;;  %v12392_v26 = vpack.c.bf16 %v14445_v49, %v14444_v63 }
 0x64a   : > { %v10002_v6 = vsub.f32 %v10000_v12, %v10001_v48 }
 0x64b   : > { %12385 = vmatpush3.bf16.msra.mxu0 %v12384_v22 }
 0x64c   : > { %12425 = vmatpush3.bf16.msra.mxu1 %v13657_v37  ;;  %12387 = vmatprep.subr.bf16.mxu0 %v12386_v4  ;;  %v12394_v37 = vpack.c.bf16 %v14447_v35, %v14446_v52  ;;  %v10003_v44 = vand.u32 4294901760, %v10002_v6 }
 0x64d   : > { %12427 = vmatprep.subr.bf16.mxu1 %v13942_v40  ;;  %v14449_v40 = vand.u32 4294901760, %v13840_v57  ;;  %v14455_v57 = vand.u32 4294901760, %v13916_v31 }
 0x64f   : > { %12389 = vmatpush3.bf16.msra.mxu0 %v12388_v24  ;;  %v12396_v9 = vpack.c.bf16 %v14449_v40, %v14448_v3 }
 0x650   : > { %12429 = vmatpush3.bf16.msra.mxu1 %v13948_v13  ;;  %12391 = vmatprep.subr.bf16.mxu0 %v12390_v17  ;;  %v14451_v13 = vand.u32 4294901760, %v13854_v34  ;;  %v14457_v34 = vand.u32 4294901760, %v13918_v46 }
 0x651   : > { %12431 = vmatprep.subr.bf16.mxu1 %v13956_v0  ;;  %v14453_v0 = vand.u32 4294901760, %v14425_v58 }
 0x652   : > { %v12398_v30 = vpack.c.bf16 %v14451_v13, %v14450_v36  ;;  %v10846_v36 = vld [vmem:[%s14332_s4 + $0x8] sm:$0xff]  ;;  %v10848_v13 = vld [vmem:[%s14332_s4 + $0x18] sm:$0xff] }
 0x653   : > { %12393 = vmatpush3.bf16.msra.mxu0 %v12392_v26  ;;  %v12400_v8 = vpack.c.bf16 %v14453_v0, %v14452_v39  ;;  %v10857_v39 = vand.u32 4294901760, %v10846_v36  ;;  %v10861_v0 = vand.u32 4294901760, %v10848_v13 }
 0x654   : > { %12433 = vmatpush3.bf16.msra.mxu1 %v13963_v51  ;;  %12395 = vmatprep.subr.bf16.mxu0 %v12394_v37  ;;  %v12402_v51 = vpack.c.bf16 %v14455_v57, %v14454_v2 }
 0x655   : > { %12435 = vmatprep.subr.bf16.mxu1 %v13966_v28  ;;  %v12404_v28 = vpack.c.bf16 %v9283_v60, %v14457_v34 }
 0x657   : > { %12397 = vmatpush3.bf16.msra.mxu0 %v12396_v9 }
 0x658   : > { %12437 = vmatpush3.bf16.msra.mxu1 %v13970_v16  ;;  %12399 = vmatprep.subr.bf16.mxu0 %v12398_v30  ;;  %v10845_v30 = vld [vmem:[%s14332_s4] sm:$0xff] }
 0x659   : > { %12216 = vmatprep.subr.mxu1 %v14456_v14  ;;  %v10859_v2 = vand.u32 4294901760, %v10845_v30 }
 0x65b   : > { %9920 = vmatmul.mubr.f32.vlgmr.msra.gmra.mrb[6].mxu1 %v13984_v45  ;;  %12401 = vmatpush3.bf16.msra.mxu0 %v12400_v8  ;;  %v10847_v8 = vld [vmem:[%s14332_s4 + $0x10] sm:$0xff]  ;;  %v14189_v34 = vsub.f32 %v10845_v30, %v10859_v2 }
 0x65c   : > { %12403 = vmatprep.subr.bf16.mxu0 %v12402_v51  ;;  %12218 = vmatprep.mubr.msk.f32.mxu1 %vm12900_vm12, %v14456_v14  ;;  %v10863_v57 = vand.u32 4294901760, %v10847_v8  ;;  %v14187_v51 = vpack.c.bf16 %v10861_v0, %v10857_v39 }
 0x65e   : > { %v14193_v15 = vsub.f32 %v10847_v8, %v10863_v57 }
 0x65f   : > { %12405 = vmatpush3.bf16.msra.mxu0 %v12404_v28  ;;  %v14191_v28 = vpack.c.bf16 %v10863_v57, %v10859_v2 }
 0x660   : > { %12186 = vmatprep.subr.mxu0 %v14456_v14 }
 0x662   : > { %9816 = vmatmul.mubr.f32.vlgmr.msra.gmra.mrb[6].mxu0 %v13984_v45 }
 0x663   : > { %12188 = vmatprep.mubr.msk.f32.mxu0 %vm12900_vm12, %v14456_v14 }
 0x6b7   : > { %v10386_v19 = vpop.permute.xlu1 %10385 }
 0x6b8   : > { %v10389_v24 = vsel %vm288_vm0, %v10386_v19, 0 }
 0x6b9   : > { %v10459_v42 = vand.u32 4294901760, %v10389_v24 }
 0x6bb   : > { %v10460_v43 = vsub.f32 %v10389_v24, %v10459_v42 }
 0x6bd   : > { %v10461_v17 = vand.u32 4294901760, %v10460_v43 }
 0x6bf   : > { %v10462_v63 = vsub.f32 %v10460_v43, %v10461_v17 }
 0x6c1   : > { %v10463_v35 = vand.u32 4294901760, %v10462_v63 }
 0x6ed   : > { %v12019_v31 = vpop.f32.mrb[2].mxu1 }
 0x6ee   : > { %v12020_v46 = vpop.f32.mrb[3].mxu1 }
 0x6ef   : > { %v12021_v33 = vadd.f32 %v12020_v46, %v12019_v31  ;;  %v14200_v31 = vsub.f32 %v10846_v36, %v10857_v39  ;;  %v14202_v46 = vsub.f32 %v10848_v13, %v10861_v0 }
 0x6f5   : > { %v11984_v60 = vpop.f32.mrb[2].mxu0 }
 0x6f6   : > { %v11985_v16 = vpop.f32.mrb[3].mxu0 }
 0x6f7   : > { %v11986_v38 = vadd.f32 %v11985_v16, %v11984_v60  ;;  %v10951_v60 = vand.u32 4294901760, %v14202_v46  ;;  %v10945_v16 = vand.u32 4294901760, %v14189_v34 }
 0x6f9   : > { %v9404_v45 = vadd.f32 %v12021_v33, %v11986_v38  ;;  %v10939_v33 = vand.u32 4294901760, %v14200_v31  ;;  %v10957_v38 = vand.u32 4294901760, %v14193_v15 }
 0x70d   : > { %v12089_v41 = vpop.f32.mrb[4].mxu1 }
 0x70e   : > { %v12090_v50 = vpop.f32.mrb[5].mxu1 }
 0x70f   : > { %v12091_v27 = vadd.f32 %v12090_v50, %v12089_v41  ;;  %v10952_v41 = vsub.f32 %v14202_v46, %v10951_v60  ;;  %v10946_v50 = vsub.f32 %v14189_v34, %v10945_v16 }
 0x715   : > { %v12054_v59 = vpop.f32.mrb[4].mxu0 }
 0x716   : > { %v12055_v58 = vpop.f32.mrb[5].mxu0 }
 0x717   : > { %v12056_v29 = vadd.f32 %v12055_v58, %v12054_v59  ;;  %v10953_v58 = vand.u32 4294901760, %v10952_v41 }
 0x719   : > { %v9542_v20 = vadd.f32 %v12056_v29, %v9404_v45  ;;  %v10940_v45 = vsub.f32 %v14200_v31, %v10939_v33  ;;  %v10947_v29 = vand.u32 4294901760, %v10946_v50 }
 0x71b   : > { %v9650_v55 = vadd.f32 %v12091_v27, %v9542_v20  ;;  %v10958_v27 = vsub.f32 %v14193_v15, %v10957_v38  ;;  %v10941_v59 = vand.u32 4294901760, %v10940_v45 }
 0x71d   : > { %v10959_v20 = vand.u32 4294901760, %v10958_v27 }
 0x71f   : > { %v12444_v61 = vpack.c.bf16 %v10959_v20, %v10947_v29 }
 0x72e   : > { %v12159_v25 = vpop.f32.mrb[6].mxu1 }
 0x72f   : > { %v12160_v18 = vpop.f32.mrb[7].mxu1 }
 0x730   : > { %v12161_v62 = vadd.f32 %v12160_v18, %v12159_v25  ;;  %v12448_v25 = vpack.c.bf16 %v14193_v15, %v14189_v34  ;;  %v12454_v18 = vpack.c.bf16 %v10951_v60, %v10939_v33 }
 0x735   : > { %v12124_v53 = vpop.f32.mrb[6].mxu0 }
 0x736   : > { %v12125_v21 = vpop.f32.mrb[7].mxu0 }
 0x737   : > { %v12126_v47 = vadd.f32 %v12125_v21, %v12124_v53  ;;  %v10850_v21 = vld [vmem:[%s14332_s4 + $0x28] sm:$0xff] }
 0x738   : > { %v11351_v6 = vand.u32 4294901760, %v10850_v21 }
 0x739   : > { %v9818_v5 = vadd.f32 %v12126_v47, %v9650_v55  ;;  %v12442_v55 = vpack.c.bf16 %v10953_v58, %v10941_v59  ;;  %v10852_v47 = vld [vmem:[%s14332_s4 + $0x38] sm:$0xff] }
 0x73b   : > { %v9922_v54 = vadd.f32 %v12161_v62, %v9818_v5  ;;  %v14216_v62 = vpack.c.bf16 %v10957_v38, %v10945_v16  ;;  %v10849_v5 = vld [vmem:[%s14332_s4 + $0x20] sm:$0xff] }
 0x73d   : > { %10387 = vrot.lane.b32.xlu0 %v9922_v54, %s12891_s29  ;;  %v9931_v7 = vsel %vm291_vm2, %v9922_v54, 0  ;;  %v11355_v54 = vand.u32 4294901760, %v10852_v47  ;;  %s243_s29 = sand.u32 1, %s12873_s24  }
 0x73e   : > { %v9934_v22 = vand.u32 4294901760, %v9931_v7  ;;  %s11931_s20 = sshll.u32 %s243_s29, 3  ;;  %s11854_s14 = scalar_lea.sflag [#allocation4], %s243_s29 }
 0x73f   : > { %s245_s22 = scalar_lea.vmem [#allocation3], %s11931_s20 }
 0x740   : > { %v10011_v10 = vsub.f32 %v9931_v7, %v9934_v22  ;;  %12187 = vmatpush3.msra.mxu0 %v9934_v22  ;;  %v10851_v7 = vld [vmem:[%s14332_s4 + $0x30] sm:$0xff]  ;;  %s11868_s27 = sshll.u32 %s245_s22, 4  ;;  %s14288_s27 = int_to_ptr.vmem [resolvable:$true] %s11868_s27 }
 0x741   : > { %12189 = vmatmul.mubr.f32.vlgmr.msra.gmra.mrb[8].mxu0 %v10003_v44  ;;  %12191 = vmatprep.subr.mxu0 %v14456_v14  ;;  %v11353_v44 = vand.u32 4294901760, %v10849_v5  ;;  %p12826_p0 = scmp.lt.s32.totalorder %s14288_s27, %s12824_s11 }
 0x742   : > { %v10012_v11 = vand.u32 4294901760, %v10011_v10  ;;  %12193 = vmatprep.mubr.msk.f32.mxu0 %vm12900_vm12, %v14456_v14 }
 0x744   : > { %v10013_v4 = vsub.f32 %v10011_v10, %v10012_v11 }
 0x746   : > { %v10014_v23 = vand.u32 4294901760, %v10013_v4 }
 0x748   : > { %12192 = vmatpush3.msra.mxu0 %v10014_v23 }
 0x749   : > { %12194 = vmatmul.mubr.f32.vlgmr.msra.gmra.mrb[8].mxu0 %v9999_v32  ;;  %12196 = vmatprep.subr.mxu0 %v14456_v14 }
 0x74a   : > { %12197 = vmatpush3.msra.mxu0 %v10011_v10  ;;  %12198 = vmatprep.mubr.msk.f32.mxu0 %vm12900_vm12, %v14456_v14  ;;  %v14230_v10 = vpack.c.bf16 %v11355_v54, %v11351_v6 }
 0x74b   : > { %12201 = vmatprep.subr.mxu0 %v14456_v14 }
 0x751   : > { %12199 = vmatmul.mubr.f32.vlgmr.msra.gmra.mrb[8].mxu0 %v10000_v12 }
 0x752   : > { %12202 = vmatpush3.msra.mxu0 %v9934_v22  ;;  %12203 = vmatprep.mubr.msk.f32.mxu0 %vm12900_vm12, %v14456_v14 }
 0x753   : > { %12206 = vmatprep.subr.mxu0 %v14456_v14 }
 0x759   : > { %12204 = vmatmul.mubr.f32.vlgmr.msra.gmra.mrb[8].mxu0 %v10001_v48 }
 0x75a   : > { %12207 = vmatpush3.msra.mxu0 %v10012_v11  ;;  %12208 = vmatprep.mubr.msk.f32.mxu0 %vm12900_vm12, %v14456_v14  ;;  %v14232_v11 = vsub.f32 %v10849_v5, %v11353_v44 }
 0x75b   : > { %12211 = vmatprep.subr.mxu0 %v14456_v14 }
 0x761   : > { %12209 = vmatmul.mubr.f32.vlgmr.msra.gmra.mrb[8].mxu0 %v9999_v32 }
 0x762   : > { %12212 = vmatpush3.msra.mxu0 %v9934_v22  ;;  %12213 = vmatprep.mubr.msk.f32.mxu0 %vm12900_vm12, %v14456_v14  ;;  %v11357_v22 = vand.u32 4294901760, %v10851_v7 }
 0x763   : > { %12439 = vmatprep.subr.bf16.mxu0 %v14187_v51 }
 0x764   : > { %v14234_v4 = vpack.c.bf16 %v11357_v22, %v11353_v44  ;;  %v14236_v23 = vsub.f32 %v10851_v7, %v11357_v22 }
 0x769   : > { %12214 = vmatmul.mubr.f32.vlgmr.msra.gmra.mrb[8].mxu0 %v9999_v32  ;;  %v12446_v32 = vpack.c.bf16 %v14202_v46, %v14200_v31  ;;  %v12472_v31 = vpack.c.bf16 %v14236_v23, %v14232_v11 }
 0x76a   : > { %10925 = vmatprep.mubr.f32.mxu0 %v14456_v14  ;;  %12441 = vmatpush1.bf16.msra.mxu0 %v14191_v28 }
 0x76b   : > { %12443 = vmatprep.subr.bf16.mxu0 %v12442_v55 }
 0x7af   : > { %v10388_v49 = vpop.permute.xlu0 %10387 }
 0x7b0   : > { %v10391_v26 = vsel %vm291_vm2, %v10388_v49, 0  ;;  %v11439_v49 = vand.u32 4294901760, %v14232_v11 }
 0x7b1   : > { %v10394_v52 = vand.u32 4294901760, %v10391_v26 }
 0x7b3   : > { %v10471_v37 = vsub.f32 %v10391_v26, %v10394_v52  ;;  %12217 = vmatpush3.msra.mxu1 %v10394_v52  ;;  %v11451_v26 = vand.u32 4294901760, %v14236_v23 }
 0x7b4   : > { %12219 = vmatmul.mubr.f32.vlgmr.msra.gmra.mrb[8].mxu1 %v10463_v35  ;;  %12221 = vmatprep.subr.mxu1 %v14456_v14 }
 0x7b5   : > { %v10472_v3 = vand.u32 4294901760, %v10471_v37  ;;  %12223 = vmatprep.mubr.msk.f32.mxu1 %vm12900_vm12, %v14456_v14  ;;  %v12480_v16 = vpack.c.bf16 %v11451_v26, %v11439_v49 }
 0x7b7   : > { %v10473_v40 = vsub.f32 %v10471_v37, %v10472_v3 }
 0x7b9   : > { %v10474_v9 = vand.u32 4294901760, %v10473_v40 }
 0x7bb   : > { %12222 = vmatpush3.msra.mxu1 %v10474_v9 }
 0x7bc   : > { %12224 = vmatmul.mubr.f32.vlgmr.msra.gmra.mrb[8].mxu1 %v10459_v42  ;;  %12226 = vmatprep.subr.mxu1 %v14456_v14 }
 0x7bd   : > { %12227 = vmatpush3.msra.mxu1 %v10471_v37  ;;  %12228 = vmatprep.mubr.msk.f32.mxu1 %vm12900_vm12, %v14456_v14  ;;  %v11440_v37 = vsub.f32 %v14232_v11, %v11439_v49 }
 0x7be   : > { %12231 = vmatprep.subr.mxu1 %v14456_v14 }
 0x7bf   : > { %v11441_v30 = vand.u32 4294901760, %v11440_v37 }
 0x7c4   : > { %12229 = vmatmul.mubr.f32.vlgmr.msra.gmra.mrb[8].mxu1 %v10460_v43  ;;  %v14242_v43 = vsub.f32 %v10852_v47, %v11355_v54 }
 0x7c5   : > { %12232 = vmatpush3.msra.mxu1 %v10394_v52  ;;  %12233 = vmatprep.mubr.msk.f32.mxu1 %vm12900_vm12, %v14456_v14 }
 0x7c6   : > { %12236 = vmatprep.subr.mxu1 %v14456_v14  ;;  %v11445_v63 = vand.u32 4294901760, %v14242_v43 }
 0x7c8   : > { %v11446_v35 = vsub.f32 %v14242_v43, %v11445_v63 }
 0x7ca   : > { %v11447_v36 = vand.u32 4294901760, %v11446_v35 }
 0x7cc   : > { %12234 = vmatmul.mubr.f32.vlgmr.msra.gmra.mrb[8].mxu1 %v10461_v17 }
 0x7cd   : > { %12237 = vmatpush3.msra.mxu1 %v10472_v3  ;;  %12238 = vmatprep.mubr.msk.f32.mxu1 %vm12900_vm12, %v14456_v14  ;;  %v11452_v3 = vsub.f32 %v14236_v23, %v11451_v26 }
 0x7ce   : > { %12241 = vmatprep.subr.mxu1 %v14456_v14 }
 0x7cf   : > { %v11453_v39 = vand.u32 4294901760, %v11452_v3 }
 0x7d1   : > { %v12468_v2 = vpack.c.bf16 %v11453_v39, %v11441_v30 }
 0x7d4   : > { %12239 = vmatmul.mubr.f32.vlgmr.msra.gmra.mrb[8].mxu1 %v10459_v42 }
 0x7d5   : > { %12242 = vmatpush3.msra.mxu1 %v10394_v52  ;;  %12243 = vmatprep.mubr.msk.f32.mxu1 %vm12900_vm12, %v14456_v14 }
 0x7d6   : > { %12463 = vmatprep.subr.bf16.mxu1 %v14230_v10 }
 0x7dc   : > { %12244 = vmatmul.mubr.f32.vlgmr.msra.gmra.mrb[8].mxu1 %v10459_v42  ;;  %v14240_v42 = vsub.f32 %v10850_v21, %v11351_v6  ;;  %v12818_v21 = vld [vmem:[%s13002_s17] sm:$0xff]  ;;  %s12819_s17 = scalar_lea.vmem %s14288_s27, 128 }
 0x7dd   : > { %11419 = vmatprep.mubr.f32.mxu1 %v14456_v14  ;;  %12465 = vmatpush1.bf16.msra.mxu1 %v14234_v4  ;;  %p12820_p11 = scmp.ne.s32.totalorder %s14288_s27, %s12819_s17  ;;  %p12827_p1 = scmp.lt.s32.totalorder %s12825_s15, %s12819_s17 }
 0x7de   : > { %v11433_v17 = vand.u32 4294901760, %v14240_v42  ;;  %v12470_v15 = vpack.c.bf16 %v14242_v43, %v14240_v42 }
 0x7df   : > { %p12821_p12 = pnand %p12820_p11, %p12978_p5  ;;  %p12828_p2 = por %p12827_p1, %p12826_p0 }
 0x7e0   : > { %v11434_v52 = vsub.f32 %v14240_v42, %v11433_v17  ;;  %v12478_v60 = vpack.c.bf16 %v11445_v63, %v11433_v17 }
 0x7e1   : > { %p12822_p13 = pneg %p12821_p12 }
 0x7e2   : > { %v11435_v9 = vand.u32 4294901760, %v11434_v52 }
 0x7e3   : > { %p12829_p3 = pnand %p12828_p2, %p12822_p13 }
 0x7e4   : > { %v12466_v8 = vpack.c.bf16 %v11447_v36, %v11435_v9 }
 0x7e6   : > { %12467 = vmatprep.subr.bf16.mxu1 %v12466_v8 }
 0x83c   : > { %v10375_v12 = vpop.f32.mrb[8].mxu0 }
 0x83d   : > { %v11943_v53 = vmul.f32 -1.442695, %v10375_v12  ;;  %v12215_v48 = vpop.f32.mrb[9].mxu0 }
 0x83f   : > { %12805 = vpow2.f32 %v11943_v53 }
 0x849   : > { %v12806_v19 = vpop.eup %12805 }
 0x84a   : > { %v10382_v24 = vadd.f32 1.0, %v12806_v19 }
 0x84c   : > { %12807 = vrcp.f32 %v10382_v24 }
 0x856   : > { %v12808_v40 = vpop.eup %12807 }
 0x857   : > { %v10855_v13 = vsel %vm10853_vm13, %v12808_v40, 0 }
 0x858   : > { %v10926_v0 = vand.u32 4294901760, %v10855_v13 }
 0x85a   : > { %v10927_v57 = vsub.f32 %v10855_v13, %v10926_v0 }
 0x85c   : > { %v10928_v34 = vand.u32 4294901760, %v10927_v57 }
 0x85e   : > { %v10929_v46 = vsub.f32 %v10927_v57, %v10928_v34 }
 0x860   : > { %v10930_v33 = vand.u32 4294901760, %v10929_v46 }
 0x862   : > { %10931 = vmatmul.mubr.f32.vlgmr.msra.gmra.mrb[10].mxu0 %v10930_v33 }
 0x863   : > { %12445 = vmatpush1.bf16.msra.mxu0 %v12444_v61  ;;  %11021 = vmatprep.mubr.f32.mxu0 %v14456_v14 }
 0x864   : > { %12447 = vmatprep.subr.bf16.mxu0 %v12446_v32 }
 0x86a   : > { %11023 = vmatmul.mubr.f32.vlgmr.msra.gmra.mrb[10].mxu0 %v10926_v0 }
 0x86b   : > { %12449 = vmatpush1.bf16.msra.mxu0 %v12448_v25  ;;  %11101 = vmatprep.mubr.f32.mxu0 %v14456_v14 }
 0x86c   : > { %12451 = vmatprep.subr.bf16.mxu0 %v14187_v51 }
 0x872   : > { %11104 = vmatmul.mubr.f32.vlgmr.msra.gmra.mrb[10].mxu0 %v10927_v57 }
 0x873   : > { %12453 = vmatpush1.bf16.msra.mxu0 %v14191_v28  ;;  %11178 = vmatprep.mubr.f32.mxu0 %v14456_v14 }
 0x874   : > { %12455 = vmatprep.subr.bf16.mxu0 %v12454_v18 }
 0x87a   : > { %11182 = vmatmul.mubr.f32.vlgmr.msra.gmra.mrb[10].mxu0 %v10928_v34 }
 0x87b   : > { %12457 = vmatpush1.bf16.msra.mxu0 %v14216_v62  ;;  %11264 = vmatprep.mubr.f32.mxu0 %v14456_v14 }
 0x87c   : > { %12459 = vmatprep.subr.bf16.mxu0 %v14187_v51 }
 0x882   : > { %11266 = vmatmul.mubr.f32.vlgmr.msra.gmra.mrb[10].mxu0 %v10926_v0 }
 0x883   : > { %12461 = vmatpush1.bf16.msra.mxu0 %v14191_v28  ;;  %11340 = vmatprep.mubr.f32.mxu0 %v14456_v14 }
 0x88a   : > { %11342 = vmatmul.mubr.f32.vlgmr.msra.gmra.mrb[10].mxu0 %v10926_v0 }
 0x8af   : > { %v10835_v38 = vpop.f32.mrb[8].mxu1 }
 0x8b0   : > { %v11944_v45 = vmul.f32 -1.442695, %v10835_v38  ;;  %v12245_v41 = vpop.f32.mrb[9].mxu1 }
 0x8b2   : > { %12809 = vpow2.f32 %v11944_v45 }
 0x8bc   : > { %v12810_v50 = vpop.eup %12809 }
 0x8bd   : > { %v10842_v27 = vadd.f32 1.0, %v12810_v50 }
 0x8bf   : > { %12811 = vrcp.f32 %v10842_v27 }
 0x8c9   : > { %v12812_v59 = vpop.eup %12811 }
 0x8ca   : > { %v11349_v58 = vsel %vm10853_vm13, %v12812_v59, 0 }
 0x8cb   : > { %v11420_v29 = vand.u32 4294901760, %v11349_v58 }
 0x8cd   : > { %v11421_v20 = vsub.f32 %v11349_v58, %v11420_v29 }
 0x8cf   : > { %v11422_v55 = vand.u32 4294901760, %v11421_v20 }
 0x8d1   : > { %v11423_v51 = vsub.f32 %v11421_v20, %v11422_v55 }
 0x8d3   : > { %v11424_v61 = vand.u32 4294901760, %v11423_v51 }
 0x8d5   : > { %11425 = vmatmul.mubr.f32.vlgmr.msra.gmra.mrb[10].mxu1 %v11424_v61 }
 0x8d6   : > { %12469 = vmatpush1.bf16.msra.mxu1 %v12468_v2  ;;  %11515 = vmatprep.mubr.f32.mxu1 %v14456_v14 }
 0x8d7   : > { %12471 = vmatprep.subr.bf16.mxu1 %v12470_v15 }
 0x8dd   : > { %11517 = vmatmul.mubr.f32.vlgmr.msra.gmra.mrb[10].mxu1 %v11420_v29 }
 0x8de   : > { %12473 = vmatpush1.bf16.msra.mxu1 %v12472_v31  ;;  %11595 = vmatprep.mubr.f32.mxu1 %v14456_v14 }
 0x8df   : > { %12475 = vmatprep.subr.bf16.mxu1 %v14230_v10 }
 0x8e5   : > { %11598 = vmatmul.mubr.f32.vlgmr.msra.gmra.mrb[10].mxu1 %v11421_v20 }
 0x8e6   : > { %12477 = vmatpush1.bf16.msra.mxu1 %v14234_v4  ;;  %11672 = vmatprep.mubr.f32.mxu1 %v14456_v14 }
 0x8e7   : > { %12479 = vmatprep.subr.bf16.mxu1 %v12478_v60 }
 0x8ed   : > { %11676 = vmatmul.mubr.f32.vlgmr.msra.gmra.mrb[10].mxu1 %v11422_v55 }
 0x8ee   : > { %12481 = vmatpush1.bf16.msra.mxu1 %v12480_v16  ;;  %11758 = vmatprep.mubr.f32.mxu1 %v14456_v14 }
 0x8ef   : > { %12483 = vmatprep.subr.bf16.mxu1 %v14230_v10 }
 0x8f5   : > { %11760 = vmatmul.mubr.f32.vlgmr.msra.gmra.mrb[10].mxu1 %v11420_v29 }
 0x8f6   : > { %12485 = vmatpush1.bf16.msra.mxu1 %v14234_v4  ;;  %11834 = vmatprep.mubr.f32.mxu1 %v14456_v14  ;;  %v14458_v14 = vld [vmem:[#allocation6_spill] sm:$0xff] }
 0x8fd   : > { %11836 = vmatmul.mubr.f32.vlgmr.msra.gmra.mrb[10].mxu1 %v11420_v29 }
 0x95d   : > { %v11343_v28 = vpop.f32.mrb[10].mxu0 }
 0x95e   : > { %v11345_v32 = vpop.f32.mrb[11].mxu0 }
 0x9d0   : > { %v11837_v25 = vpop.f32.mrb[10].mxu1 }
 0x9d1   : > { %v11842_v18 = vmul.f32 %v11837_v25, %v11343_v28  ;;  %v11839_v62 = vpop.f32.mrb[11].mxu1 }
 0x9d2   : > { %v11843_v12 = vmul.f32 %v11839_v62, %v11345_v32 }
 0x9d3   : > { %v11844_v53 = vmul.f32 %v11842_v18, %v13979_v1 }
 0x9d4   : > { %v11845_v48 = vmul.f32 %v11843_v12, %v13981_v56 }
 0x9d5   : > { %v11846_v47 = vadd.f32 %v12818_v21, %v11844_v53 }
 0x9d6   : > { %v11847_v5 = vadd.f32 %v11845_v48, %v14458_v14 }
 0x9d8   : > { %v11850_v6 = vcombine.low %v11846_v47, %v11847_v5 }
 0x9da   : > { %11852 = vst [vmem:[%s245_s22] sm:$0xff] %v11850_v6 }
 0x9db   : > { %12832 = shalt.err (!%p12829_p3)
}
 0x9dc   : > { %s12833_s13 = scalar_lea.hbm %s14286_s16, 128  ;;  %s12837_s12 = scalar_lea.hbm %s14334_s6, 256 }
 0x9dd   : > { %p12834_p4 = scmp.ne.s32.totalorder %s14286_s16, %s12833_s13  ;;  %p12838_p9 = scmp.lt.u32.totalorder %s14286_s16, %s14334_s6 }
 0x9de   : > { %p12839_p10 = scmp.lt.u32.totalorder %s12837_s12, %s12833_s13  ;;  %p12841_p12 = scmp.lt.u32.totalorder %s12833_s13, %s14286_s16 }
 0x9df   : > { %p12835_p7 = pnand %p12834_p4, %p12978_p5 }
 0x9e0   : > { %p12840_p11 = por %p12839_p10, %p12838_p9 }
 0x9e1   : > { %p12836_p8 = pneg %p12835_p7 }
 0x9e2   : > { %p12842_p13 = por %p12841_p12, %p12840_p11 }
 0x9e4   : > { %p12843_p0 = pnand %p12842_p13, %p12836_p8 }
 0x9e6   : > { %12846 = shalt.err (!%p12843_p0)
}
 0x9e7   : > { %12738 = dma.vmem_to_hbm [thread:$0]  (%p12978_p5), %s14288_s27, 128, %s14286_s16, %s11854_s14  }
 0x9e8 PF: > { %p12744_p1 = scmp.ge.s32.totalorder %s12881_s26, 2  ;;  %s11880_s21 = sand.u32 1, %s12869_s23  }
 0x9e9   : > { %s11881_s22 = scalar_lea.sflag [#allocation4], %s11880_s21 }
 0x9ea   : > { %p12741_p2 = pnand %p12744_p1, %p12982_p6 }
 0x9ec   : > { %12864 = dma.done.wait (!%p12741_p2), %s11881_s22, 128  }
 0x9ed   : > { %12866 = vsyncadd (!%p12741_p2), %s11881_s22, 4294967168  ;;  %p17_p3 = scmp.ge.s32.totalorder %s12965_s28, 4   ;;  %s14459_s23 = smov %s12873_s24 }
 0x9ee   : > { %s14460_s24 = smov %s12877_s25  ;;  %s14461_s25 = smov %s12976_s7 }
 0x9ef   : > { %s14462_s26 = smov %s12965_s28  ;;  %19 = sbr.rel (!%p17_p3) target bundleno = 5 (0x5), region = 88 }
 0x9f6   :  { %11886 = vsyncpa [#allocation4], 1 }
 0x9f7   :  { %11888 = vsyncpa [#allocation4 + $0x1], 1 }

</bundles_post_ra>
